<compile_context>
chip_gen: v7x
topology: tpu7x:2x2x1
jax: 0.10.0
libtpu: 0.0.40
codegen_flags: <defaults>
</compile_context>

<pallas_src>
import functools
import math

import jax
import jax.numpy as jnp
from jax.experimental import pallas as pl
from jax.experimental.pallas import tpu as pltpu


_MAX_TK = 2048  # max K tile (multiple of 256; safe for v7x's 64 MiB VMEM)


def _round_up(x, m):
    return (x + m - 1) // m * m


def _cdiv(a, b):
    return -(-a // b)


@functools.lru_cache(maxsize=None)
def _vmem_limit_bytes():
    """Per-generation VMEM budget: ~3/4 of capacity, capped at 96 MiB, fallback 48 MiB."""
    try:
        cap = int(pltpu.get_tpu_info().vmem_capacity_bytes)
    except Exception:
        return 48 * 1024 * 1024
    return int(min(cap * 3 // 4, 96 * 1024 * 1024))


def _k_tiles(K):
    """Pick (Kp, tk, nk) with tk*nk minimizing zero padding, tk <= _MAX_TK."""
    Kp = _round_up(K, 128)
    nk0 = max(1, _cdiv(Kp, _MAX_TK))
    best = None
    for nk in range(nk0, nk0 + 4):
        tk = _round_up(_cdiv(Kp, nk), 128)
        pad = tk * nk - Kp
        if best is None or pad < best[2]:
            best = (tk, nk, pad)
        if pad == 0:
            break
    tk, nk, _ = best
    return tk * nk, tk, nk


def _n_tile(N, full_n):
    Np = _round_up(N, 128)
    if full_n or Np <= 256:
        tn = Np
    elif Np % 256 == 0:
        tn = 256            # full 256-wide MXU passes on v6e/v7x (two passes on v5e)
    else:
        tn = 128
    return Np, tn


def _m_tiles(M, n_other_parallel):
    """Pick (Mp, tm, n_m); split M in two when there would otherwise be a single
    parallel grid point (keeps both v7x TensorCores busy and enables pipelining)."""
    Mp = _round_up(M, 16)
    n_m = max(1, _cdiv(Mp, 512))          # cap tm around 512 to bound VMEM
    tm = _round_up(_cdiv(Mp, n_m), 16)
    if n_m * n_other_parallel < 2 and Mp >= 32:
        n_m = 2
        tm = _round_up(_cdiv(Mp, n_m), 16)
    Mp = tm * n_m
    return Mp, tm, n_m


def _layernorm(y, g, beta, *, eps, n_valid):
    if n_valid == y.shape[-1]:
        mu = jnp.mean(y, axis=-1, keepdims=True)
        var = jnp.mean(jnp.square(y - mu), axis=-1, keepdims=True)
    else:  # padded lanes (zero weight/bias) excluded from the statistics
        lane = jax.lax.broadcasted_iota(jnp.int32, y.shape, 1)
        mask = lane < n_valid
        mu = jnp.sum(jnp.where(mask, y, 0.0), axis=-1, keepdims=True) / n_valid
        var = jnp.sum(jnp.where(mask, jnp.square(y - mu), 0.0),
                      axis=-1, keepdims=True) / n_valid
    return (y - mu) * jax.lax.rsqrt(var + eps) * g + beta


# --------------------------------------------------------------------------
# Fused matmul + bias + ReLU Pallas kernel (used by the conv layers)
# --------------------------------------------------------------------------

def _mm_kernel(x_ref, w_ref, b_ref, o_ref, *, relu, nk):
    def finish(y):
        y = y + b_ref[...]
        if relu:
            y = jnp.maximum(y, 0.0)
        return y.astype(o_ref.dtype)

    if nk == 1:
        # single K step: compute, apply epilogue, store once
        o_ref[...] = finish(jnp.dot(x_ref[...], w_ref[...],
                                    preferred_element_type=jnp.float32))
    else:
        k = pl.program_id(2)
        part = jnp.dot(x_ref[...], w_ref[...], preferred_element_type=jnp.float32)

        @pl.when(k == 0)
        def _():                       # first step assigns (no zero-init pass)
            o_ref[...] = part

        @pl.when(k > 0)
        def _():                       # accumulate into the resident f32 block
            o_ref[...] += part

        @pl.when(k == nk - 1)
        def _():
            o_ref[...] = finish(o_ref[...])


def prep_linear(w, b, *, full_n=False):
    """Pre-cast (bf16) and pre-pad a (K, N) weight + bias for the Pallas matmul."""
    K, N = w.shape
    Kp, tk, nk = _k_tiles(K)
    Np, tn = _n_tile(N, full_n)
    wp = jnp.pad(w.astype(jnp.bfloat16), ((0, Kp - K), (0, Np - N)))
    bp = jnp.pad(b.astype(jnp.float32), (0, Np - N)).reshape(1, Np)
    return dict(w=wp, b=bp, K=K, N=N, tk=tk, nk=nk, tn=tn)


def prep_conv(w_hwio, b):
    """Conv weight (KH,KW,Cin,Cout) -> (Cin*KH*KW, Cout) matrix matching the
    channel-major feature order of lax.conv_general_dilated_patches."""
    KH, KW, Cin, Cout = w_hwio.shape
    wmat = jnp.transpose(w_hwio, (2, 0, 1, 3)).reshape(Cin * KH * KW, Cout)
    d = prep_linear(wmat, b)
    d.update(kh=KH, kw=KW, cin=Cin)
    return d


def matmul_bias_act(x, prep, *, relu=True, out_dtype=jnp.float32):
    """y = relu(x @ w + b) with bf16 inputs and f32 MXU accumulation."""
    M, K = x.shape
    assert K == prep["K"]
    wp, bp = prep["w"], prep["b"]
    Kp, Np = wp.shape
    tk, nk, tn, N = prep["tk"], prep["nk"], prep["tn"], prep["N"]
    if nk > 1:
        out_dtype = jnp.float32      # multi-step K accumulates into the f32 output

    n_n = Np // tn
    Mp, tm, n_m = _m_tiles(M, n_n)
    xp = jnp.pad(x.astype(jnp.bfloat16), ((0, Mp - M), (0, Kp - K)))

    kernel = functools.partial(_mm_kernel, relu=relu, nk=nk)
    out_bytes = jnp.dtype(out_dtype).itemsize
    out = pl.pallas_call(
        kernel,
        out_shape=jax.ShapeDtypeStruct((Mp, Np), out_dtype),
        grid_spec=pltpu.PrefetchScalarGridSpec(
            num_scalar_prefetch=0,
            grid=(n_m, n_n, nk),
            in_specs=[
                pl.BlockSpec((tm, tk), lambda m, n, k: (m, k)),
                pl.BlockSpec((tk, tn), lambda m, n, k: (k, n)),
                pl.BlockSpec((1, tn), lambda m, n, k: (0, n)),
            ],
            out_specs=pl.BlockSpec((tm, tn), lambda m, n, k: (m, n)),
        ),
        compiler_params=pltpu.CompilerParams(
            dimension_semantics=("parallel", "parallel", "arbitrary"),
            vmem_limit_bytes=_vmem_limit_bytes()),
        cost_estimate=pl.CostEstimate(
            flops=2 * Mp * Kp * Np,
            transcendentals=0,
            bytes_accessed=Mp * Kp * 2 + Kp * Np * 2 + Mp * Np * out_bytes),
    )(xp, wp, bp)
    return out[:M, :N]


# --------------------------------------------------------------------------
# Fused FC1 -> ReLU -> FC2 -> ReLU -> LayerNorm Pallas kernel (single call)
# --------------------------------------------------------------------------

def _fc_fused_kernel(x_ref, w1_ref, b1_ref, w2_ref, b2_ref, g_ref, bt_ref,
                     o_ref, acc_ref, *, nk, eps, n_valid):
    k = pl.program_id(1)
    part = jnp.dot(x_ref[...], w1_ref[...], preferred_element_type=jnp.float32)

    @pl.when(k == 0)
    def _():
        acc_ref[...] = part

    @pl.when(k > 0)
    def _():
        acc_ref[...] += part

    @pl.when(k == nk - 1)
    def _():
        h = jnp.maximum(acc_ref[...] + b1_ref[...], 0.0).astype(jnp.bfloat16)
        y = jnp.dot(h, w2_ref[...], preferred_element_type=jnp.float32)
        y = jnp.maximum(y + b2_ref[...], 0.0)
        y = _layernorm(y, g_ref[...], bt_ref[...], eps=eps, n_valid=n_valid)
        o_ref[...] = y.astype(o_ref.dtype)


def prep_fc_fused(lw1, lb1, lw2, lb2, gamma, beta):
    """Pre-cast/pad both FC weights + LN params for the single fused pallas_call."""
    K, H = lw1.shape
    H2, N = lw2.shape
    assert H == H2 and gamma.shape == (N,) and beta.shape == (N,)
    Kp, tk, nk = _k_tiles(K)
    Hp = _round_up(H, 128)
    Np = _round_up(N, 128)
    w1 = jnp.pad(lw1.astype(jnp.bfloat16), ((0, Kp - K), (0, Hp - H)))
    b1 = jnp.pad(lb1.astype(jnp.float32), (0, Hp - H)).reshape(1, Hp)
    w2 = jnp.pad(lw2.astype(jnp.bfloat16), ((0, Hp - H), (0, Np - N)))
    b2 = jnp.pad(lb2.astype(jnp.float32), (0, Np - N)).reshape(1, Np)
    g = jnp.pad(gamma.astype(jnp.float32), (0, Np - N)).reshape(1, Np)
    bt = jnp.pad(beta.astype(jnp.float32), (0, Np - N)).reshape(1, Np)
    return dict(w1=w1, b1=b1, w2=w2, b2=b2, g=g, bt=bt,
                K=K, H=H, N=N, tk=tk, nk=nk)


def fc1_fc2_ln(x, prep, *, eps=1e-5):
    """y = LayerNorm(relu(relu(x@w1+b1)@w2+b2)) in one pallas_call."""
    M, K = x.shape
    assert K == prep["K"]
    w1, b1, w2, b2, g, bt = (prep["w1"], prep["b1"], prep["w2"], prep["b2"],
                             prep["g"], prep["bt"])
    Kp, Hp = w1.shape
    _, Np = w2.shape
    tk, nk, N = prep["tk"], prep["nk"], prep["N"]

    Mp, tm, n_m = _m_tiles(M, 1)
    xp = jnp.pad(x.astype(jnp.bfloat16), ((0, Mp - M), (0, Kp - K)))

    kernel = functools.partial(_fc_fused_kernel, nk=nk, eps=eps, n_valid=N)
    out = pl.pallas_call(
        kernel,
        out_shape=jax.ShapeDtypeStruct((Mp, Np), jnp.float32),
        grid_spec=pltpu.PrefetchScalarGridSpec(
            num_scalar_prefetch=0,
            grid=(n_m, nk),
            in_specs=[
                pl.BlockSpec((tm, tk), lambda m, k: (m, k)),
                pl.BlockSpec((tk, Hp), lambda m, k: (k, 0)),
                pl.BlockSpec((1, Hp), lambda m, k: (0, 0)),
                pl.BlockSpec((Hp, Np), lambda m, k: (0, 0)),
                pl.BlockSpec((1, Np), lambda m, k: (0, 0)),
                pl.BlockSpec((1, Np), lambda m, k: (0, 0)),
                pl.BlockSpec((1, Np), lambda m, k: (0, 0)),
            ],
            out_specs=pl.BlockSpec((tm, Np), lambda m, k: (m, 0)),
            scratch_shapes=[pltpu.VMEM((tm, Hp), jnp.float32)],
        ),
        compiler_params=pltpu.CompilerParams(
            dimension_semantics=("parallel", "arbitrary"),
            vmem_limit_bytes=_vmem_limit_bytes()),
        cost_estimate=pl.CostEstimate(
            flops=2 * Mp * Kp * Hp + 2 * Mp * Hp * Np,
            transcendentals=0,
            bytes_accessed=(Mp * Kp * 2 + Kp * Hp * 2 + Hp * Np * 2
                            + Mp * Np * 4)),
    )(xp, w1, b1, w2, b2, g, bt)
    return out[:M, :N]


# --------------------------------------------------------------------------
# Conv via fused patch extraction + Pallas matmul; tiny pool in plain JAX
# --------------------------------------------------------------------------

def conv2d_relu(x, prep, *, stride, pad, out_dtype=jnp.bfloat16):
    """x: (N,H,W,Cin) NHWC. Returns (N,Hout,Wout,Cout) in out_dtype."""
    N, H, W, Cin = x.shape
    KH, KW = prep["kh"], prep["kw"]
    assert Cin == prep["cin"]
    Hout = (H + 2 * pad - KH) // stride + 1
    Wout = (W + 2 * pad - KW) // stride + 1
    # TODO(synk): extract the KH*KW taps in-kernel from a VMEM-resident padded input
    # (memory_space=pl.ANY) instead of materializing the im2col tensor in HBM.
    patches = jax.lax.conv_general_dilated_patches(
        x.astype(jnp.bfloat16), (KH, KW), (stride, stride),
        [(pad, pad), (pad, pad)],
        dimension_numbers=("NHWC", "HWIO", "NHWC"))   # features: (Cin,KH,KW) major->minor
    patches = patches.reshape(N * Hout * Wout, Cin * KH * KW)
    y = matmul_bias_act(patches, prep, relu=True, out_dtype=out_dtype)
    return y.reshape(N, Hout, Wout, prep["N"])


def adaptive_avgpool_6x6(x):
    """x: (N,H,W,C) with H,W divisible by 6 (evenly-divisible adaptive pool)."""
    N, H, W, C = x.shape
    # TODO(synk): general AdaptiveAvgPool2d with uneven bins not implemented.
    assert H % 6 == 0 and W % 6 == 0
    return x.reshape(N, 6, H // 6, 6, W // 6, C).mean(axis=(2, 4))


# --------------------------------------------------------------------------
# FCN forward
# --------------------------------------------------------------------------

def fcn_forward(x_nchw, pp):
    N = x_nchw.shape[0]
    x = jnp.transpose(x_nchw, (0, 2, 3, 1))                 # NCHW -> NHWC
    x = conv2d_relu(x, pp["c1"], stride=4, pad=2, out_dtype=jnp.bfloat16)
    x = conv2d_relu(x, pp["c2"], stride=1, pad=2, out_dtype=jnp.bfloat16)
    x = conv2d_relu(x, pp["c3"], stride=1, pad=1, out_dtype=jnp.float32)
    x = adaptive_avgpool_6x6(x)                              # (N,6,6,256) f32
    x = jnp.transpose(x, (0, 3, 1, 2)).reshape(N, -1)        # torch flatten order (C,H,W)
    x = fc1_fc2_ln(x, pp["fc"])                              # FC1+ReLU+FC2+ReLU+LN fused
    return x


def prepare_params(p):
    """Hoist weight cast/pad/reorder out of the forward pass (done once)."""
    return dict(
        c1=prep_conv(p["w1"], p["b1"]),
        c2=prep_conv(p["w2"], p["b2"]),
        c3=prep_conv(p["w3"], p["b3"]),
        fc=prep_fc_fused(p["lw1"], p["lb1"], p["lw2"], p["lb2"],
                         p["gamma"], p["beta"]),
    )


# --------------------------------------------------------------------------
# Pure-JAX reference (same bf16-input / f32-accumulation numerics)
# --------------------------------------------------------------------------

def ref_forward(x_nchw, p):
    bf = jnp.bfloat16

    def conv(x, w_hwio, b, stride, pad):
        y = jax.lax.conv_general_dilated(
            x.astype(bf), w_hwio.astype(bf), (stride, stride),
            [(pad, pad), (pad, pad)],
            dimension_numbers=("NCHW", "HWIO", "NCHW"),
            preferred_element_type=jnp.float32)
        return jax.nn.relu(y + b[None, :, None, None])

    x = conv(x_nchw, p["w1"], p["b1"], 4, 2)
    x = conv(x, p["w2"], p["b2"], 1, 2)
    x = conv(x, p["w3"], p["b3"], 1, 1)
    n, c, h, w = x.shape
    x = x.reshape(n, c, 6, h // 6, 6, w // 6).mean(axis=(3, 5))
    x = x.reshape(n, -1)
    x = jax.nn.relu(jnp.dot(x.astype(bf), p["lw1"].astype(bf),
                            preferred_element_type=jnp.float32) + p["lb1"])
    x = jax.nn.relu(jnp.dot(x.astype(bf), p["lw2"].astype(bf),
                            preferred_element_type=jnp.float32) + p["lb2"])
    mu = x.mean(-1, keepdims=True)
    var = ((x - mu) ** 2).mean(-1, keepdims=True)
    return (x - mu) / jnp.sqrt(var + 1e-5) * p["gamma"] + p["beta"]


# --------------------------------------------------------------------------
# Deterministic synthetic parameters
# --------------------------------------------------------------------------

def init_params(key, output_dim):
    ks = jax.random.split(key, 8)

    def u(k, shape, scale):
        return jax.random.uniform(k, shape, jnp.float32, -scale, scale)

    fin1 = 11 * 11 * 1
    fin2 = 5 * 5 * 64
    fin3 = 3 * 3 * 128
    flat = 256 * 6 * 6
    hid = 2 * output_dim
    return dict(
        w1=u(ks[0], (11, 11, 1, 64), 1.0 / math.sqrt(fin1)),
        b1=u(ks[1], (64,), 1.0 / math.sqrt(fin1)),
        w2=u(ks[2], (5, 5, 64, 128), 1.0 / math.sqrt(fin2)),
        b2=u(ks[3], (128,), 1.0 / math.sqrt(fin2)),
        w3=u(ks[4], (3, 3, 128, 256), 1.0 / math.sqrt(fin3)),
        b3=u(ks[5], (256,), 1.0 / math.sqrt(fin3)),
        # xavier_uniform (gain=1) + zero bias, as in the module's init loop
        lw1=u(ks[6], (flat, hid), math.sqrt(6.0 / (flat + hid))),
        lb1=jnp.zeros((hid,), jnp.float32),
        lw2=u(ks[7], (hid, output_dim), math.sqrt(6.0 / (hid + output_dim))),
        lb2=jnp.zeros((output_dim,), jnp.float32),
        # nn.LayerNorm default init (not touched by the module's init loop)
        gamma=jnp.ones((output_dim,), jnp.float32),
        beta=jnp.zeros((output_dim,), jnp.float32),
    )


if __name__ == "__main__":
    OUTPUT_DIM = 128   # small test size (module default is 1024); architecture otherwise identical
    key = jax.random.PRNGKey(0)
    kx, kp = jax.random.split(key)
    # 54x54 single-channel input -> conv1 gives 12x12, evenly pooled to 6x6.
    x = jax.random.normal(kx, (2, 1, 54, 54), jnp.float32)
    params = init_params(kp, OUTPUT_DIM)
    pp = prepare_params(params)        # weights pre-cast to bf16 & pre-padded once

    fwd = jax.jit(lambda inp: fcn_forward(inp, pp))
    out = jax.block_until_ready(fwd(x))
    assert out.shape == (2, OUTPUT_DIM)

    ref = ref_forward(x, params)
    err = float(jnp.max(jnp.abs(out - ref)))
    assert jnp.allclose(out, ref, rtol=5e-3, atol=5e-3), err

    print("KERNEL_OK")
</pallas_src>

<mosaic_0001>
module attributes {stable_mosaic.version = 11 : i64} {
  func.func @_mm_kernel(%arg0: i32, %arg1: i32, %arg2: i32, %arg3: memref<144x128xbf16, #tpu.memory_space<vmem>>, %arg4: memref<128x128xbf16, #tpu.memory_space<vmem>>, %arg5: memref<1x128xf32, #tpu.memory_space<vmem>>, %arg6: memref<144x128xbf16, #tpu.memory_space<vmem>>) attributes {dimension_semantics = [#tpu.dimension_semantics<parallel>, #tpu.dimension_semantics<parallel>, #tpu.dimension_semantics<arbitrary>], iteration_bounds = array<i64: 2, 1, 1>, scalar_prefetch = 0 : i64, scratch_operands = 0 : i64, tpu.core_type = #tpu.core_type<tc>, window_params = [{transform_indices = @transform_0, window_bounds = array<i64: 144, 128>}, {transform_indices = @transform_1, window_bounds = array<i64: 128, 128>}, {transform_indices = @transform_2, window_bounds = array<i64: 1, 128>}, {transform_indices = @transform_3, window_bounds = array<i64: 144, 128>}]} {
    %c0 = arith.constant 0 : index
    %c0_0 = arith.constant 0 : index
    %0 = vector.load %arg3[%c0, %c0_0] : memref<144x128xbf16, #tpu.memory_space<vmem>>, vector<144x128xbf16>
    %c0_1 = arith.constant 0 : index
    %c0_2 = arith.constant 0 : index
    %1 = vector.load %arg4[%c0_1, %c0_2] : memref<128x128xbf16, #tpu.memory_space<vmem>>, vector<128x128xbf16>
    %cst = arith.constant dense<0.000000e+00> : vector<144x128xf32>
    %2 = tpu.matmul %0, %1, %cst {dimension_numbers = #tpu.dot_dimension_numbers<[1], [0], [0], [1], [0, 0, 1, 1], [], []>} : vector<144x128xbf16>, vector<128x128xbf16>, vector<144x128xf32> -> vector<144x128xf32>
    %c0_3 = arith.constant 0 : index
    %c0_4 = arith.constant 0 : index
    %3 = vector.load %arg5[%c0_3, %c0_4] : memref<1x128xf32, #tpu.memory_space<vmem>>, vector<1x128xf32>
    %4 = vector.broadcast %3 : vector<1x128xf32> to vector<144x128xf32>
    %5 = arith.addf %2, %4 : vector<144x128xf32>
    %cst_5 = arith.constant 0.000000e+00 : f32
    %6 = vector.broadcast %cst_5 : f32 to vector<144x128xf32>
    %7 = arith.maximumf %5, %6 : vector<144x128xf32>
    %8 = arith.truncf %7 : vector<144x128xf32> to vector<144x128xbf16>
    %c0_6 = arith.constant 0 : index
    %c0_7 = arith.constant 0 : index
    %9 = vector.load %arg6[%c0_6, %c0_7] : memref<144x128xbf16, #tpu.memory_space<vmem>>, vector<144x128xbf16>
    tpu.vector_store %arg6[%c0_6, %c0_7], %8 {strides = array<i32>} : memref<144x128xbf16, #tpu.memory_space<vmem>>, vector<144x128xbf16>,
    return
  }
  func.func @transform_0(%arg0: i32, %arg1: i32, %arg2: i32) -> (i32, i32) {
    %c0_i32 = arith.constant 0 : i32
    return %arg0, %arg2 : i32, i32
  }
  func.func @transform_1(%arg0: i32, %arg1: i32, %arg2: i32) -> (i32, i32) {
    %c0_i32 = arith.constant 0 : i32
    return %arg2, %arg1 : i32, i32
  }
  func.func @transform_2(%arg0: i32, %arg1: i32, %arg2: i32) -> (i32, i32) {
    %c0_i32 = arith.constant 0 : i32
    %c0_i32_0 = arith.constant 0 : i32
    return %c0_i32, %arg1 : i32, i32
  }
  func.func @transform_3(%arg0: i32, %arg1: i32, %arg2: i32) -> (i32, i32) {
    %c0_i32 = arith.constant 0 : i32
    return %arg0, %arg1 : i32, i32
  }
}

module attributes {stable_mosaic.version = 11 : i64} {
  func.func @_mm_kernel(%arg0: i32, %arg1: i32, %arg2: i32, %arg3: memref<144x1664xbf16, #tpu.memory_space<vmem>>, %arg4: memref<1664x128xbf16, #tpu.memory_space<vmem>>, %arg5: memref<1x128xf32, #tpu.memory_space<vmem>>, %arg6: memref<144x128xbf16, #tpu.memory_space<vmem>>) attributes {dimension_semantics = [#tpu.dimension_semantics<parallel>, #tpu.dimension_semantics<parallel>, #tpu.dimension_semantics<arbitrary>], iteration_bounds = array<i64: 2, 1, 1>, scalar_prefetch = 0 : i64, scratch_operands = 0 : i64, tpu.core_type = #tpu.core_type<tc>, window_params = [{transform_indices = @transform_0, window_bounds = array<i64: 144, 1664>}, {transform_indices = @transform_1, window_bounds = array<i64: 1664, 128>}, {transform_indices = @transform_2, window_bounds = array<i64: 1, 128>}, {transform_indices = @transform_3, window_bounds = array<i64: 144, 128>}]} {
    %c0 = arith.constant 0 : index
    %c0_0 = arith.constant 0 : index
    %0 = vector.load %arg3[%c0, %c0_0] : memref<144x1664xbf16, #tpu.memory_space<vmem>>, vector<144x1664xbf16>
    %c0_1 = arith.constant 0 : index
    %c0_2 = arith.constant 0 : index
    %1 = vector.load %arg4[%c0_1, %c0_2] : memref<1664x128xbf16, #tpu.memory_space<vmem>>, vector<1664x128xbf16>
    %cst = arith.constant dense<0.000000e+00> : vector<144x128xf32>
    %2 = tpu.matmul %0, %1, %cst {dimension_numbers = #tpu.dot_dimension_numbers<[1], [0], [0], [1], [0, 0, 1, 1], [], []>} : vector<144x1664xbf16>, vector<1664x128xbf16>, vector<144x128xf32> -> vector<144x128xf32>
    %c0_3 = arith.constant 0 : index
    %c0_4 = arith.constant 0 : index
    %3 = vector.load %arg5[%c0_3, %c0_4] : memref<1x128xf32, #tpu.memory_space<vmem>>, vector<1x128xf32>
    %4 = vector.broadcast %3 : vector<1x128xf32> to vector<144x128xf32>
    %5 = arith.addf %2, %4 : vector<144x128xf32>
    %cst_5 = arith.constant 0.000000e+00 : f32
    %6 = vector.broadcast %cst_5 : f32 to vector<144x128xf32>
    %7 = arith.maximumf %5, %6 : vector<144x128xf32>
    %8 = arith.truncf %7 : vector<144x128xf32> to vector<144x128xbf16>
    %c0_6 = arith.constant 0 : index
    %c0_7 = arith.constant 0 : index
    %9 = vector.load %arg6[%c0_6, %c0_7] : memref<144x128xbf16, #tpu.memory_space<vmem>>, vector<144x128xbf16>
    tpu.vector_store %arg6[%c0_6, %c0_7], %8 {strides = array<i32>} : memref<144x128xbf16, #tpu.memory_space<vmem>>, vector<144x128xbf16>,
    return
  }
  func.func @transform_0(%arg0: i32, %arg1: i32, %arg2: i32) -> (i32, i32) {
    %c0_i32 = arith.constant 0 : i32
    return %arg0, %arg2 : i32, i32
  }
  func.func @transform_1(%arg0: i32, %arg1: i32, %arg2: i32) -> (i32, i32) {
    %c0_i32 = arith.constant 0 : i32
    return %arg2, %arg1 : i32, i32
  }
  func.func @transform_2(%arg0: i32, %arg1: i32, %arg2: i32) -> (i32, i32) {
    %c0_i32 = arith.constant 0 : i32
    %c0_i32_0 = arith.constant 0 : i32
    return %c0_i32, %arg1 : i32, i32
  }
  func.func @transform_3(%arg0: i32, %arg1: i32, %arg2: i32) -> (i32, i32) {
    %c0_i32 = arith.constant 0 : i32
    return %arg0, %arg1 : i32, i32
  }
}

module attributes {stable_mosaic.version = 11 : i64} {
  func.func @_mm_kernel(%arg0: i32, %arg1: i32, %arg2: i32, %arg3: memref<144x1152xbf16, #tpu.memory_space<vmem>>, %arg4: memref<1152x256xbf16, #tpu.memory_space<vmem>>, %arg5: memref<1x256xf32, #tpu.memory_space<vmem>>, %arg6: memref<144x256xf32, #tpu.memory_space<vmem>>) attributes {dimension_semantics = [#tpu.dimension_semantics<parallel>, #tpu.dimension_semantics<parallel>, #tpu.dimension_semantics<arbitrary>], iteration_bounds = array<i64: 2, 1, 1>, scalar_prefetch = 0 : i64, scratch_operands = 0 : i64, tpu.core_type = #tpu.core_type<tc>, window_params = [{transform_indices = @transform_0, window_bounds = array<i64: 144, 1152>}, {transform_indices = @transform_1, window_bounds = array<i64: 1152, 256>}, {transform_indices = @transform_2, window_bounds = array<i64: 1, 256>}, {transform_indices = @transform_3, window_bounds = array<i64: 144, 256>}]} {
    %c0 = arith.constant 0 : index
    %c0_0 = arith.constant 0 : index
    %0 = vector.load %arg3[%c0, %c0_0] : memref<144x1152xbf16, #tpu.memory_space<vmem>>, vector<144x1152xbf16>
    %c0_1 = arith.constant 0 : index
    %c0_2 = arith.constant 0 : index
    %1 = vector.load %arg4[%c0_1, %c0_2] : memref<1152x256xbf16, #tpu.memory_space<vmem>>, vector<1152x256xbf16>
    %cst = arith.constant dense<0.000000e+00> : vector<144x256xf32>
    %2 = tpu.matmul %0, %1, %cst {dimension_numbers = #tpu.dot_dimension_numbers<[1], [0], [0], [1], [0, 0, 1, 1], [], []>} : vector<144x1152xbf16>, vector<1152x256xbf16>, vector<144x256xf32> -> vector<144x256xf32>
    %c0_3 = arith.constant 0 : index
    %c0_4 = arith.constant 0 : index
    %3 = vector.load %arg5[%c0_3, %c0_4] : memref<1x256xf32, #tpu.memory_space<vmem>>, vector<1x256xf32>
    %4 = vector.broadcast %3 : vector<1x256xf32> to vector<144x256xf32>
    %5 = arith.addf %2, %4 : vector<144x256xf32>
    %cst_5 = arith.constant 0.000000e+00 : f32
    %6 = vector.broadcast %cst_5 : f32 to vector<144x256xf32>
    %7 = arith.maximumf %5, %6 : vector<144x256xf32>
    %c0_6 = arith.constant 0 : index
    %c0_7 = arith.constant 0 : index
    %8 = vector.load %arg6[%c0_6, %c0_7] : memref<144x256xf32, #tpu.memory_space<vmem>>, vector<144x256xf32>
    tpu.vector_store %arg6[%c0_6, %c0_7], %7 {strides = array<i32>} : memref<144x256xf32, #tpu.memory_space<vmem>>, vector<144x256xf32>,
    return
  }
  func.func @transform_0(%arg0: i32, %arg1: i32, %arg2: i32) -> (i32, i32) {
    %c0_i32 = arith.constant 0 : i32
    return %arg0, %arg2 : i32, i32
  }
  func.func @transform_1(%arg0: i32, %arg1: i32, %arg2: i32) -> (i32, i32) {
    %c0_i32 = arith.constant 0 : i32
    return %arg2, %arg1 : i32, i32
  }
  func.func @transform_2(%arg0: i32, %arg1: i32, %arg2: i32) -> (i32, i32) {
    %c0_i32 = arith.constant 0 : i32
    %c0_i32_0 = arith.constant 0 : i32
    return %c0_i32, %arg1 : i32, i32
  }
  func.func @transform_3(%arg0: i32, %arg1: i32, %arg2: i32) -> (i32, i32) {
    %c0_i32 = arith.constant 0 : i32
    return %arg0, %arg1 : i32, i32
  }
}

module attributes {stable_mosaic.version = 11 : i64} {
  func.func @_fc_fused_kernel(%arg0: i32, %arg1: i32, %arg2: memref<16x1536xbf16, #tpu.memory_space<vmem>>, %arg3: memref<1536x256xbf16, #tpu.memory_space<vmem>>, %arg4: memref<1x256xf32, #tpu.memory_space<vmem>>, %arg5: memref<256x128xbf16, #tpu.memory_space<vmem>>, %arg6: memref<1x128xf32, #tpu.memory_space<vmem>>, %arg7: memref<1x128xf32, #tpu.memory_space<vmem>>, %arg8: memref<1x128xf32, #tpu.memory_space<vmem>>, %arg9: memref<16x128xf32, #tpu.memory_space<vmem>>, %arg10: memref<16x256xf32, #tpu.memory_space<vmem>>) attributes {dimension_semantics = [#tpu.dimension_semantics<parallel>, #tpu.dimension_semantics<arbitrary>], iteration_bounds = array<i64: 1, 6>, scalar_prefetch = 0 : i64, scratch_operands = 1 : i64, tpu.core_type = #tpu.core_type<tc>, window_params = [{transform_indices = @transform_0, window_bounds = array<i64: 16, 1536>}, {transform_indices = @transform_1, window_bounds = array<i64: 1536, 256>}, {pipeline_mode = #tpu.pipeline_mode<synchronous>, transform_indices = @transform_2, window_bounds = array<i64: 1, 256>}, {pipeline_mode = #tpu.pipeline_mode<synchronous>, transform_indices = @transform_3, window_bounds = array<i64: 256, 128>}, {pipeline_mode = #tpu.pipeline_mode<synchronous>, transform_indices = @transform_4, window_bounds = array<i64: 1, 128>}, {pipeline_mode = #tpu.pipeline_mode<synchronous>, transform_indices = @transform_5, window_bounds = array<i64: 1, 128>}, {pipeline_mode = #tpu.pipeline_mode<synchronous>, transform_indices = @transform_6, window_bounds = array<i64: 1, 128>}, {transform_indices = @transform_7, window_bounds = array<i64: 16, 128>}]} {
    %c0 = arith.constant 0 : index
    %c0_0 = arith.constant 0 : index
    %0 = vector.load %arg2[%c0, %c0_0] : memref<16x1536xbf16, #tpu.memory_space<vmem>>, vector<16x1536xbf16>
    %c0_1 = arith.constant 0 : index
    %c0_2 = arith.constant 0 : index
    %1 = vector.load %arg3[%c0_1, %c0_2] : memref<1536x256xbf16, #tpu.memory_space<vmem>>, vector<1536x256xbf16>
    %cst = arith.constant dense<0.000000e+00> : vector<16x256xf32>
    %2 = tpu.matmul %0, %1, %cst {dimension_numbers = #tpu.dot_dimension_numbers<[1], [0], [0], [1], [0, 0, 1, 1], [], []>} : vector<16x1536xbf16>, vector<1536x256xbf16>, vector<16x256xf32> -> vector<16x256xf32>
    %c0_i32 = arith.constant 0 : i32
    %3 = arith.cmpi eq, %arg1, %c0_i32 : i32
    %4 = arith.extui %3 : i1 to i32
    %c0_i32_3 = arith.constant 0 : i32
    %5 = arith.cmpi ne, %4, %c0_i32_3 : i32
    scf.if %5 {
      %c0_7 = arith.constant 0 : index
      %c0_8 = arith.constant 0 : index
      %12 = vector.load %arg10[%c0_7, %c0_8] : memref<16x256xf32, #tpu.memory_space<vmem>>, vector<16x256xf32>
      tpu.vector_store %arg10[%c0_7, %c0_8], %2 {strides = array<i32>} : memref<16x256xf32, #tpu.memory_space<vmem>>, vector<16x256xf32>,
    } else {
    }
    %c0_i32_4 = arith.constant 0 : i32
    %6 = arith.cmpi sgt, %arg1, %c0_i32_4 : i32
    %7 = arith.extui %6 : i1 to i32
    %c0_i32_5 = arith.constant 0 : i32
    %8 = arith.cmpi ne, %7, %c0_i32_5 : i32
    scf.if %8 {
      %c0_7 = arith.constant 0 : index
      %c0_8 = arith.constant 0 : index
      %12 = vector.load %arg10[%c0_7, %c0_8] : memref<16x256xf32, #tpu.memory_space<vmem>>, vector<16x256xf32>
      %13 = arith.addf %12, %2 : vector<16x256xf32>
      %c0_9 = arith.constant 0 : index
      %c0_10 = arith.constant 0 : index
      %14 = vector.load %arg10[%c0_9, %c0_10] : memref<16x256xf32, #tpu.memory_space<vmem>>, vector<16x256xf32>
      tpu.vector_store %arg10[%c0_9, %c0_10], %13 {strides = array<i32>} : memref<16x256xf32, #tpu.memory_space<vmem>>, vector<16x256xf32>,
    } else {
    }
    %c5_i32 = arith.constant 5 : i32
    %9 = arith.cmpi eq, %arg1, %c5_i32 : i32
    %10 = arith.extui %9 : i1 to i32
    %c0_i32_6 = arith.constant 0 : i32
    %11 = arith.cmpi ne, %10, %c0_i32_6 : i32
    scf.if %11 {
      %c0_7 = arith.constant 0 : index
      %c0_8 = arith.constant 0 : index
      %12 = vector.load %arg10[%c0_7, %c0_8] : memref<16x256xf32, #tpu.memory_space<vmem>>, vector<16x256xf32>
      %c0_9 = arith.constant 0 : index
      %c0_10 = arith.constant 0 : index
      %13 = vector.load %arg4[%c0_9, %c0_10] : memref<1x256xf32, #tpu.memory_space<vmem>>, vector<1x256xf32>
      %14 = vector.broadcast %13 : vector<1x256xf32> to vector<16x256xf32>
      %15 = arith.addf %12, %14 : vector<16x256xf32>
      %cst_11 = arith.constant 0.000000e+00 : f32
      %16 = vector.broadcast %cst_11 : f32 to vector<16x256xf32>
      %17 = arith.maximumf %15, %16 : vector<16x256xf32>
      %18 = arith.truncf %17 : vector<16x256xf32> to vector<16x256xbf16>
      %c0_12 = arith.constant 0 : index
      %c0_13 = arith.constant 0 : index
      %19 = vector.load %arg5[%c0_12, %c0_13] : memref<256x128xbf16, #tpu.memory_space<vmem>>, vector<256x128xbf16>
      %cst_14 = arith.constant dense<0.000000e+00> : vector<16x128xf32>
      %20 = tpu.matmul %18, %19, %cst_14 {dimension_numbers = #tpu.dot_dimension_numbers<[1], [0], [0], [1], [0, 0, 1, 1], [], []>} : vector<16x256xbf16>, vector<256x128xbf16>, vector<16x128xf32> -> vector<16x128xf32>
      %c0_15 = arith.constant 0 : index
      %c0_16 = arith.constant 0 : index
      %21 = vector.load %arg6[%c0_15, %c0_16] : memref<1x128xf32, #tpu.memory_space<vmem>>, vector<1x128xf32>
      %22 = vector.broadcast %21 : vector<1x128xf32> to vector<16x128xf32>
      %23 = arith.addf %20, %22 : vector<16x128xf32>
      %cst_17 = arith.constant 0.000000e+00 : f32
      %24 = vector.broadcast %cst_17 : f32 to vector<16x128xf32>
      %25 = arith.maximumf %23, %24 : vector<16x128xf32>
      %c0_18 = arith.constant 0 : index
      %c0_19 = arith.constant 0 : index
      %26 = vector.load %arg7[%c0_18, %c0_19] : memref<1x128xf32, #tpu.memory_space<vmem>>, vector<1x128xf32>
      %c0_20 = arith.constant 0 : index
      %c0_21 = arith.constant 0 : index
      %27 = vector.load %arg8[%c0_20, %c0_21] : memref<1x128xf32, #tpu.memory_space<vmem>>, vector<1x128xf32>
      %cst_22 = arith.constant dense<0.000000e+00> : vector<16xf32>
      %28 = vector.multi_reduction <add>, %25, %cst_22 [1] : vector<16x128xf32> to vector<16xf32>
      %29 = vector.shape_cast %28 : vector<16xf32> to vector<16x1xf32>
      %cst_23 = arith.constant 1.280000e+02 : f32
      %30 = vector.broadcast %cst_23 : f32 to vector<16x1xf32>
      %31 = arith.divf %29, %30 : vector<16x1xf32>
      %32 = vector.broadcast %31 : vector<16x1xf32> to vector<16x128xf32>
      %33 = arith.subf %25, %32 : vector<16x128xf32>
      %34 = arith.mulf %33, %33 : vector<16x128xf32>
      %cst_24 = arith.constant dense<0.000000e+00> : vector<16xf32>
      %35 = vector.multi_reduction <add>, %34, %cst_24 [1] : vector<16x128xf32> to vector<16xf32>
      %36 = vector.shape_cast %35 : vector<16xf32> to vector<16x1xf32>
      %cst_25 = arith.constant 1.280000e+02 : f32
      %37 = vector.broadcast %cst_25 : f32 to vector<16x1xf32>
      %38 = arith.divf %36, %37 : vector<16x1xf32>
      %39 = vector.broadcast %31 : vector<16x1xf32> to vector<16x128xf32>
      %40 = arith.subf %25, %39 : vector<16x128xf32>
      %cst_26 = arith.constant 9.99999974E-6 : f32
      %41 = vector.broadcast %cst_26 : f32 to vector<16x1xf32>
      %42 = arith.addf %38, %41 : vector<16x1xf32>
      %43 = math.rsqrt %42 : vector<16x1xf32>
      %44 = vector.broadcast %43 : vector<16x1xf32> to vector<16x128xf32>
      %45 = arith.mulf %40, %44 : vector<16x128xf32>
      %46 = vector.broadcast %26 : vector<1x128xf32> to vector<16x128xf32>
      %47 = arith.mulf %45, %46 : vector<16x128xf32>
      %48 = vector.broadcast %27 : vector<1x128xf32> to vector<16x128xf32>
      %49 = arith.addf %47, %48 : vector<16x128xf32>
      %c0_27 = arith.constant 0 : index
      %c0_28 = arith.constant 0 : index
      %50 = vector.load %arg9[%c0_27, %c0_28] : memref<16x128xf32, #tpu.memory_space<vmem>>, vector<16x128xf32>
      tpu.vector_store %arg9[%c0_27, %c0_28], %49 {strides = array<i32>} : memref<16x128xf32, #tpu.memory_space<vmem>>, vector<16x128xf32>,
    } else {
    }
    return
  }
  func.func @transform_0(%arg0: i32, %arg1: i32) -> (i32, i32) {
    %c0_i32 = arith.constant 0 : i32
    return %arg0, %arg1 : i32, i32
  }
  func.func @transform_1(%arg0: i32, %arg1: i32) -> (i32, i32) {
    %c0_i32 = arith.constant 0 : i32
    %c0_i32_0 = arith.constant 0 : i32
    return %arg1, %c0_i32 : i32, i32
  }
  func.func @transform_2(%arg0: i32, %arg1: i32) -> (i32, i32) {
    %c0_i32 = arith.constant 0 : i32
    %c0_i32_0 = arith.constant 0 : i32
    %c0_i32_1 = arith.constant 0 : i32
    return %c0_i32, %c0_i32_0 : i32, i32
  }
  func.func @transform_3(%arg0: i32, %arg1: i32) -> (i32, i32) {
    %c0_i32 = arith.constant 0 : i32
    %c0_i32_0 = arith.constant 0 : i32
    %c0_i32_1 = arith.constant 0 : i32
    return %c0_i32, %c0_i32_0 : i32, i32
  }
  func.func @transform_4(%arg0: i32, %arg1: i32) -> (i32, i32) {
    %c0_i32 = arith.constant 0 : i32
    %c0_i32_0 = arith.constant 0 : i32
    %c0_i32_1 = arith.constant 0 : i32
    return %c0_i32, %c0_i32_0 : i32, i32
  }
  func.func @transform_5(%arg0: i32, %arg1: i32) -> (i32, i32) {
    %c0_i32 = arith.constant 0 : i32
    %c0_i32_0 = arith.constant 0 : i32
    %c0_i32_1 = arith.constant 0 : i32
    return %c0_i32, %c0_i32_0 : i32, i32
  }
  func.func @transform_6(%arg0: i32, %arg1: i32) -> (i32, i32) {
    %c0_i32 = arith.constant 0 : i32
    %c0_i32_0 = arith.constant 0 : i32
    %c0_i32_1 = arith.constant 0 : i32
    return %c0_i32, %c0_i32_0 : i32, i32
  }
  func.func @transform_7(%arg0: i32, %arg1: i32) -> (i32, i32) {
    %c0_i32 = arith.constant 0 : i32
    %c0_i32_0 = arith.constant 0 : i32
    return %arg0, %c0_i32 : i32, i32
  }
}

</mosaic_0001>

<bundles_post_ra>
// kernel: _lambda_.4
= control target key start
LH: loop header
LB: loop body
LE: loop exit
PB: predicated region body
PF: predicated region fallthrough
CT: control target
= control target key end

     0   :  { %s1019_s12 = smov 0   ;;  %s1021_s13 = smov 0   ;;  %s1162_s0 = inlined_call_operand.vmem [shape: bf16[288,128], index: 0, kind: input, shape index: {}]   ;;  %s1163_s1 = inlined_call_operand.vmem [shape: bf16[128,128], index: 1, kind: input, shape index: {}]   ;;  %s1164_s2 = inlined_call_operand.vmem [shape: f32[1,128], index: 2, kind: input, shape index: {}]   ;;  %s1165_s3 = inlined_call_operand.vmem [shape: bf16[288,128], index: 3, kind: output, shape index: {}]  }
   0x1   :  { %s1023_s14 = smov 0  }
   0x2 LB: > { %s32_s15 = sadd.s32 1, %s991_s13  ;;  %p733_p0 = scmp.ge.s32.totalorder %s995_s14, 1  ;;  %s995_s14 = sphi %s1023_s14, %s13_s14   ;;  %s991_s13 = sphi %s1021_s13, %s1167_s13   ;;  %s987_s12 = sphi %s1019_s12, %s1166_s12  }
   0x3   : > { %p34_p1 = scmp.ge.s32.totalorder %s32_s15, 2  ;;  %p188_p2 = scmp.lt.s32.totalorder %s995_s14, 3 }
   0x5   : > { %s1169_s15 = smov (%p34_p1, %s32_s15), 0  ;;  %p189_p3 = pnand %p733_p0, %p188_p2 }
   0x6   : > { %v956_v0 = vld [vmem:[%s1163_s1] sm:$0xff] (!%p189_p3)   ;;  %v997_v1 = vmov (!%p189_p3), 0.0   ;;  %v957_v2 = vld [vmem:[%s1163_s1 + $0x8] sm:$0xff] (!%p189_p3)   ;;  %s229_s20 = smul.u32 (!%p189_p3), 18, %s987_s12  ;;  %vm998_vm0 = vmmov (!%p189_p3), 0   ;;  %v958_v3 = vld [vmem:[%s1163_s1 + $0x10] sm:$0xff] (!%p189_p3)  }
   0x7   : > { %192 = sbr.rel (%p189_p3) target bundleno = 292 (0x124), region = 32  ;;  %862 = vmatprep.subr.bf16.mxu0 (!%p189_p3), %v997_v1  ;;  %914 = vmatprep.subr.bf16.mxu1 (!%p189_p3), %v997_v1  ;;  %v959_v4 = vld [vmem:[%s1163_s1 + $0x18] sm:$0xff] (!%p189_p3)   ;;  %v960_v5 = vld [vmem:[%s1163_s1 + $0x20] sm:$0xff] (!%p189_p3)   ;;  %v961_v6 = vld [vmem:[%s1163_s1 + $0x28] sm:$0xff] (!%p189_p3)  }
   0x8   : > { %863 = vmatpush3.bf16.msra.mxu0 (!%p189_p3), %v956_v0  ;;  %922 = vmatpush3.bf16.msra.mxu1 (!%p189_p3), %v956_v0  ;;  %p230_p4 = scmp.lt.s32.totalorder (!%p189_p3), %s229_s20, 35  ;;  %v962_v7 = vld [vmem:[%s1163_s1 + $0x30] sm:$0xff] (!%p189_p3)   ;;  %v963_v8 = vld [vmem:[%s1163_s1 + $0x38] sm:$0xff] (!%p189_p3)   ;;  %v1117_v18 = vld [vmem:[%s1164_s2] ss:$0 sm:$0xff] (!%p189_p3) }
   0x9   : > { %864 = vmatprep.subr.bf16.mxu0 (!%p189_p3), %v997_v1  ;;  %915 = vmatprep.subr.bf16.mxu1 (!%p189_p3), %v997_v1 }
   0xa   : > { %878 = vmatprep.mubr.msk.bf16.mxu0 (!%p189_p3), %vm998_vm0, %v997_v1  ;;  %898 = vmatprep.mubr.msk.bf16.mxu1 (!%p189_p3), %vm998_vm0, %v997_v1 }
   0xc   : > { %865 = vmatpush3.bf16.msra.mxu0 (!%p189_p3), %v957_v2  ;;  %923 = vmatpush3.bf16.msra.mxu1 (!%p189_p3), %v957_v2 }
   0xd   : > { %866 = vmatprep.subr.bf16.mxu0 (!%p189_p3), %v997_v1  ;;  %916 = vmatprep.subr.bf16.mxu1 (!%p189_p3), %v997_v1 }
   0xe   : > { %s1171_s20 = smov (!%p230_p4, %s229_s20), 35 }
   0xf   : > { %s734_s23 = sshll.u32 %s1171_s20, 2 }
  0x10   : > { %s1064_s26 = scalar_lea.vmem %s1162_s0, %s734_s23  ;;  %867 = vmatpush3.bf16.msra.mxu0 %v958_v3  ;;  %924 = vmatpush3.bf16.msra.mxu1 %v958_v3  ;;  %s1128_s17 = scalar_lea.vmem %s1165_s3, %s734_s23 }
  0x11   : > { %868 = vmatprep.subr.bf16.mxu0 %v997_v1  ;;  %917 = vmatprep.subr.bf16.mxu1 %v997_v1  ;;  %v964_v9 = vld [vmem:[%s1064_s26] sm:$0xff]   ;;  %v965_v10 = vld [vmem:[%s1064_s26 + $0x28] sm:$0xff]   ;;  %v967_v12 = vld [vmem:[%s1064_s26 + $0x30] sm:$0xff]  }
  0x12   : > { %v966_v11 = vld [vmem:[%s1064_s26 + $0x8] sm:$0xff]   ;;  %v968_v13 = vld [vmem:[%s1064_s26 + $0x10] sm:$0xff]   ;;  %v969_v14 = vld [vmem:[%s1064_s26 + $0x38] sm:$0xff]  }
  0x13   : > { %v970_v15 = vld [vmem:[%s1064_s26 + $0x18] sm:$0xff]   ;;  %v971_v16 = vld [vmem:[%s1064_s26 + $0x40] sm:$0xff]  }
  0x14   : > { %869 = vmatpush3.bf16.msra.mxu0 %v959_v4  ;;  %925 = vmatpush3.bf16.msra.mxu1 %v959_v4  ;;  %v972_v17 = vld [vmem:[%s1064_s26 + $0x20] sm:$0xff]  }
  0x15   : > { %870 = vmatprep.subr.bf16.mxu0 %v997_v1  ;;  %918 = vmatprep.subr.bf16.mxu1 %v997_v1 }
  0x18   : > { %871 = vmatpush3.bf16.msra.mxu0 %v960_v5  ;;  %926 = vmatpush3.bf16.msra.mxu1 %v960_v5 }
  0x19   : > { %872 = vmatprep.subr.bf16.mxu0 %v997_v1  ;;  %919 = vmatprep.subr.bf16.mxu1 %v997_v1 }
  0x1c   : > { %873 = vmatpush3.bf16.msra.mxu0 %v961_v6  ;;  %927 = vmatpush3.bf16.msra.mxu1 %v961_v6 }
  0x1d   : > { %874 = vmatprep.subr.bf16.mxu0 %v997_v1  ;;  %920 = vmatprep.subr.bf16.mxu1 %v997_v1 }
  0x20   : > { %875 = vmatpush3.bf16.msra.mxu0 %v962_v7  ;;  %928 = vmatpush3.bf16.msra.mxu1 %v962_v7 }
  0x21   : > { %876 = vmatprep.subr.bf16.mxu0 %v997_v1  ;;  %921 = vmatprep.subr.bf16.mxu1 %v997_v1 }
  0x24   : > { %877 = vmatpush3.bf16.msra.mxu0 %v963_v8  ;;  %929 = vmatpush3.bf16.msra.mxu1 %v963_v8 }
  0x27   : > { %879 = vmatmul.mubr.bf16.vlgmr.msra.gmra.mrb[0].mxu0 %v964_v9  ;;  %899 = vmatmul.mubr.bf16.vlgmr.msra.gmra.mrb[0].mxu1 %v965_v10 }
  0x28   : > { %882 = vmatprep.mubr.msk.bf16.mxu0 %vm998_vm0, %v997_v1  ;;  %902 = vmatprep.mubr.msk.bf16.mxu1 %vm998_vm0, %v997_v1 }
  0x2f   : > { %883 = vmatmul.mubr.bf16.gmra.mrb[4].mxu0 %v966_v11  ;;  %903 = vmatmul.mubr.bf16.gmra.mrb[4].mxu1 %v967_v12 }
  0x30   : > { %886 = vmatprep.mubr.msk.bf16.mxu0 %vm998_vm0, %v997_v1  ;;  %906 = vmatprep.mubr.msk.bf16.mxu1 %vm998_vm0, %v997_v1 }
  0x37   : > { %887 = vmatmul.mubr.bf16.gmra.mrb[8].mxu0 %v968_v13  ;;  %907 = vmatmul.mubr.bf16.gmra.mrb[8].mxu1 %v969_v14 }
  0x38   : > { %890 = vmatprep.mubr.msk.bf16.mxu0 %vm998_vm0, %v997_v1  ;;  %910 = vmatprep.mubr.msk.bf16.mxu1 %vm998_vm0, %v997_v1 }
  0x3f   : > { %891 = vmatmul.mubr.bf16.gmra.mrb[12].mxu0 %v970_v15  ;;  %911 = vmatmul.mubr.bf16.gmra.mrb[12].mxu1 %v971_v16 }
  0x40   : > { %894 = vmatprep.mubr.msk.bf16.mxu0 %vm998_vm0, %v997_v1 }
  0x47   : > { %895 = vmatmul.mubr.bf16.gmra.mrb[16].mxu0 %v972_v17 }
  0xfa   : > { %v437_v19 = vpop.f32.mrb[0].mxu0  ;;  %v477_v20 = vpop.f32.mrb[0].mxu1 }
  0xfb   : > { %v438_v21 = vadd.f32 %v1117_v18, %v437_v19  ;;  %v880_v22 = vpop.f32.mrb[1].mxu0  ;;  %v478_v23 = vadd.f32 %v1117_v18, %v477_v20  ;;  %v900_v24 = vpop.f32.mrb[1].mxu1 }
  0xfc   : > { %v440_v25 = vpop.f32.mrb[2].mxu0  ;;  %v480_v26 = vpop.f32.mrb[2].mxu1 }
  0xfd   : > { %v441_v27 = vadd.f32 %v1117_v18, %v440_v25  ;;  %v881_v28 = vpop.f32.mrb[3].mxu0  ;;  %v518_v29 = vmax.f32 %v478_v23, 0.0  ;;  %v481_v30 = vadd.f32 %v1117_v18, %v480_v26  ;;  %v901_v31 = vpop.f32.mrb[3].mxu1  ;;  %v508_v32 = vmax.f32 %v438_v21, 0.0 }
  0xff   : > { %v509_v33 = vmax.f32 %v441_v27, 0.0  ;;  %v519_v34 = vmax.f32 %v481_v30, 0.0 }
 0x101   : > { %v795_v35 = vpack.c.bf16 %v509_v33, %v508_v32  ;;  %v820_v36 = vpack.c.bf16 %v519_v34, %v518_v29 }
 0x102   : > { %v445_v37 = vpop.f32.mrb[4].mxu0  ;;  %v485_v38 = vpop.f32.mrb[4].mxu1 }
 0x103   : > { %796 = vst [vmem:[%s1128_s17] sm:$0xff] %v795_v35   ;;  %841 = vst [vmem:[%s1128_s17 + $0x28] sm:$0xff] %v820_v36   ;;  %v446_v39 = vadd.f32 %v1117_v18, %v445_v37  ;;  %v884_v40 = vpop.f32.mrb[5].mxu0  ;;  %v486_v41 = vadd.f32 %v1117_v18, %v485_v38  ;;  %v904_v42 = vpop.f32.mrb[5].mxu1 }
 0x104   : > { %v448_v43 = vpop.f32.mrb[6].mxu0  ;;  %v488_v44 = vpop.f32.mrb[6].mxu1 }
 0x105   : > { %v449_v45 = vadd.f32 %v1117_v18, %v448_v43  ;;  %v885_v46 = vpop.f32.mrb[7].mxu0  ;;  %v520_v47 = vmax.f32 %v486_v41, 0.0  ;;  %v489_v48 = vadd.f32 %v1117_v18, %v488_v44  ;;  %v905_v49 = vpop.f32.mrb[7].mxu1  ;;  %v510_v50 = vmax.f32 %v446_v39, 0.0 }
 0x107   : > { %v511_v51 = vmax.f32 %v449_v45, 0.0  ;;  %v521_v52 = vmax.f32 %v489_v48, 0.0 }
 0x109   : > { %v800_v53 = vpack.c.bf16 %v511_v51, %v510_v50  ;;  %v825_v54 = vpack.c.bf16 %v521_v52, %v520_v47 }
 0x10a   : > { %v453_v55 = vpop.f32.mrb[8].mxu0  ;;  %v493_v56 = vpop.f32.mrb[8].mxu1 }
 0x10b   : > { %837 = vst [vmem:[%s1128_s17 + $0x8] sm:$0xff] %v800_v53   ;;  %842 = vst [vmem:[%s1128_s17 + $0x30] sm:$0xff] %v825_v54   ;;  %v454_v57 = vadd.f32 %v1117_v18, %v453_v55  ;;  %v888_v58 = vpop.f32.mrb[9].mxu0  ;;  %v494_v59 = vadd.f32 %v1117_v18, %v493_v56  ;;  %v908_v60 = vpop.f32.mrb[9].mxu1 }
 0x10c   : > { %v456_v61 = vpop.f32.mrb[10].mxu0  ;;  %v496_v62 = vpop.f32.mrb[10].mxu1 }
 0x10d   : > { %v457_v63 = vadd.f32 %v1117_v18, %v456_v61  ;;  %v889_v0 = vpop.f32.mrb[11].mxu0  ;;  %v522_v1 = vmax.f32 %v494_v59, 0.0  ;;  %v497_v2 = vadd.f32 %v1117_v18, %v496_v62  ;;  %v909_v3 = vpop.f32.mrb[11].mxu1  ;;  %v512_v4 = vmax.f32 %v454_v57, 0.0 }
 0x10f   : > { %v513_v5 = vmax.f32 %v457_v63, 0.0  ;;  %v523_v6 = vmax.f32 %v497_v2, 0.0 }
 0x111   : > { %v805_v7 = vpack.c.bf16 %v513_v5, %v512_v4  ;;  %v830_v8 = vpack.c.bf16 %v523_v6, %v522_v1 }
 0x112   : > { %v461_v9 = vpop.f32.mrb[12].mxu0  ;;  %v501_v10 = vpop.f32.mrb[12].mxu1 }
 0x113   : > { %838 = vst [vmem:[%s1128_s17 + $0x10] sm:$0xff] %v805_v7   ;;  %843 = vst [vmem:[%s1128_s17 + $0x38] sm:$0xff] %v830_v8   ;;  %v462_v11 = vadd.f32 %v1117_v18, %v461_v9  ;;  %v892_v12 = vpop.f32.mrb[13].mxu0  ;;  %v502_v13 = vadd.f32 %v1117_v18, %v501_v10  ;;  %v912_v14 = vpop.f32.mrb[13].mxu1 }
 0x114   : > { %v464_v15 = vpop.f32.mrb[14].mxu0  ;;  %v504_v16 = vpop.f32.mrb[14].mxu1 }
 0x115   : > { %v465_v17 = vadd.f32 %v1117_v18, %v464_v15  ;;  %v893_v19 = vpop.f32.mrb[15].mxu0  ;;  %v524_v20 = vmax.f32 %v502_v13, 0.0  ;;  %v505_v21 = vadd.f32 %v1117_v18, %v504_v16  ;;  %v913_v22 = vpop.f32.mrb[15].mxu1  ;;  %v514_v23 = vmax.f32 %v462_v11, 0.0 }
 0x117   : > { %v515_v24 = vmax.f32 %v465_v17, 0.0  ;;  %v525_v25 = vmax.f32 %v505_v21, 0.0 }
 0x119   : > { %v810_v26 = vpack.c.bf16 %v515_v24, %v514_v23  ;;  %v835_v27 = vpack.c.bf16 %v525_v25, %v524_v20 }
 0x11a   : > { %v469_v28 = vpop.f32.mrb[16].mxu0 }
 0x11b   : > { %839 = vst [vmem:[%s1128_s17 + $0x18] sm:$0xff] %v810_v26   ;;  %844 = vst [vmem:[%s1128_s17 + $0x40] sm:$0xff] %v835_v27   ;;  %v470_v29 = vadd.f32 %v1117_v18, %v469_v28  ;;  %v896_v30 = vpop.f32.mrb[17].mxu0 }
 0x11c   : > { %v472_v31 = vpop.f32.mrb[18].mxu0 }
 0x11d   : > { %v473_v32 = vadd.f32 %v1117_v18, %v472_v31  ;;  %v897_v33 = vpop.f32.mrb[19].mxu0  ;;  %v516_v34 = vmax.f32 %v470_v29, 0.0 }
 0x11f   : > { %v517_v35 = vmax.f32 %v473_v32, 0.0 }
 0x121   : > { %v815_v36 = vpack.c.bf16 %v517_v35, %v516_v34 }
 0x123   : > { %840 = vst [vmem:[%s1128_s17 + $0x20] sm:$0xff] %v815_v36  }
 0x124 PF: > { %s13_s14 = sadd.s32 1, %s995_s14   ;;  %s1166_s12 = smov %s991_s13 }
 0x125   : > { %p10_p5 = scmp.ge.s32.totalorder %s13_s14, 4   ;;  %s1167_s13 = smov %s1169_s15 }
 0x127   :  { %12 = sbr.rel (!%p10_p5) target bundleno = 2 (0x2), region = 68 }

// kernel: _lambda_.5
= control target key start
LH: loop header
LB: loop body
LE: loop exit
PB: predicated region body
PF: predicated region fallthrough
CT: control target
= control target key end

     0   :  { %s3959_s12 = smov 0   ;;  %s3961_s13 = smov 0   ;;  %s4649_s0 = inlined_call_operand.vmem [shape: bf16[288,1664], index: 0, kind: input, shape index: {}]   ;;  %s4650_s1 = inlined_call_operand.vmem [shape: bf16[1664,128], index: 1, kind: input, shape index: {}]   ;;  %s4651_s2 = inlined_call_operand.vmem [shape: f32[1,128], index: 2, kind: input, shape index: {}]   ;;  %s4652_s3 = inlined_call_operand.vmem [shape: bf16[288,128], index: 3, kind: output, shape index: {}]  }
   0x1   :  { %s3963_s14 = smov 0  }
   0x2 LB: > { %s32_s15 = sadd.s32 1, %s3931_s13  ;;  %p2790_p0 = scmp.ge.s32.totalorder %s3935_s14, 1  ;;  %s3935_s14 = sphi %s3963_s14, %s13_s14   ;;  %s3931_s13 = sphi %s3961_s13, %s4654_s13   ;;  %s3927_s12 = sphi %s3959_s12, %s4653_s12  }
   0x3   : > { %p34_p1 = scmp.ge.s32.totalorder %s32_s15, 2  ;;  %p191_p2 = scmp.lt.s32.totalorder %s3935_s14, 3 }
   0x5   : > { %s4656_s15 = smov (%p34_p1, %s32_s15), 0  ;;  %p192_p3 = pnand %p2790_p0, %p191_p2 }
   0x6   : > { %v3638_v0 = vld [vmem:[%s4650_s1 + $0x40] sm:$0xff] (!%p192_p3)   ;;  %s234_s18 = smul.u32 (!%p192_p3), 18, %s3927_s12  ;;  %v3640_v2 = vld [vmem:[%s4650_s1 + $0x48] sm:$0xff] (!%p192_p3)   ;;  %v3642_v4 = vld [vmem:[%s4650_s1 + $0x50] sm:$0xff] (!%p192_p3)   ;;  %vm3938_vm0 = vmmov (!%p192_p3), 0  }
   0x7   : > { %195 = sbr.rel (%p192_p3) target bundleno = 513 (0x201), region = 32  ;;  %v3639_v1 = vld [vmem:[%s4650_s1] sm:$0xff] (!%p192_p3)   ;;  %3595 = vmatprep.subr.bf16.mxu1 (!%p192_p3), %v3638_v0  ;;  %3106 = vmatprep.subr.bf16.mxu0 (!%p192_p3), %v3638_v0  ;;  %v3641_v3 = vld [vmem:[%s4650_s1 + $0x8] sm:$0xff] (!%p192_p3)   ;;  %v3643_v5 = vld [vmem:[%s4650_s1 + $0x10] sm:$0xff] (!%p192_p3)  }
   0x8   : > { %p236_p4 = scmp.lt.s32.totalorder (!%p192_p3), %s234_s18, 35  ;;  %3603 = vmatpush3.bf16.msra.mxu1 (!%p192_p3), %v3639_v1  ;;  %3107 = vmatpush3.bf16.msra.mxu0 (!%p192_p3), %v3639_v1  ;;  %v3644_v6 = vld [vmem:[%s4650_s1 + $0x58] sm:$0xff] (!%p192_p3)   ;;  %v3646_v8 = vld [vmem:[%s4650_s1 + $0x60] sm:$0xff] (!%p192_p3)   ;;  %v3648_v10 = vld [vmem:[%s4650_s1 + $0x68] sm:$0xff] (!%p192_p3)  }
   0x9   : > { %3596 = vmatprep.subr.bf16.mxu1 (!%p192_p3), %v3640_v2  ;;  %3108 = vmatprep.subr.bf16.mxu0 (!%p192_p3), %v3640_v2  ;;  %v3645_v7 = vld [vmem:[%s4650_s1 + $0x18] sm:$0xff] (!%p192_p3)   ;;  %v3647_v9 = vld [vmem:[%s4650_s1 + $0x20] sm:$0xff] (!%p192_p3)   ;;  %v3649_v12 = vld [vmem:[%s4650_s1 + $0x28] sm:$0xff] (!%p192_p3)  }
   0xa   : > { %v3650_v13 = vld [vmem:[%s4650_s1 + $0x70] sm:$0xff] (!%p192_p3)   ;;  %v3652_v16 = vld [vmem:[%s4650_s1 + $0x78] sm:$0xff] (!%p192_p3)   ;;  %v3657_v18 = vld [vmem:[%s4650_s1 + $0xc0] sm:$0xff] (!%p192_p3)  }
   0xb   : > { %v3651_v14 = vld [vmem:[%s4650_s1 + $0x30] sm:$0xff] (!%p192_p3)   ;;  %v3653_v17 = vld [vmem:[%s4650_s1 + $0x38] sm:$0xff] (!%p192_p3)   ;;  %v3668_v20 = vld [vmem:[%s4650_s1 + $0x140] sm:$0xff] (!%p192_p3)  }
   0xc   : > { %3604 = vmatpush3.bf16.msra.mxu1 (!%p192_p3), %v3641_v3  ;;  %3109 = vmatpush3.bf16.msra.mxu0 (!%p192_p3), %v3641_v3  ;;  %v3658_v21 = vld [vmem:[%s4650_s1 + $0x80] sm:$0xff] (!%p192_p3)   ;;  %v3659_v22 = vld [vmem:[%s4650_s1 + $0xc8] sm:$0xff] (!%p192_p3)   ;;  %v3667_v29 = vld [vmem:[%s4650_s1 + $0xd0] sm:$0xff] (!%p192_p3)  }
   0xd   : > { %3597 = vmatprep.subr.bf16.mxu1 (!%p192_p3), %v3642_v4  ;;  %3110 = vmatprep.subr.bf16.mxu0 (!%p192_p3), %v3642_v4  ;;  %v3670_v25 = vld [vmem:[%s4650_s1 + $0x100] sm:$0xff] (!%p192_p3)   ;;  %v3671_v26 = vld [vmem:[%s4650_s1 + $0x148] sm:$0xff] (!%p192_p3)   ;;  %v3669_v32 = vld [vmem:[%s4650_s1 + $0x90] sm:$0xff] (!%p192_p3)  }
   0xe   : > { %s4658_s18 = smov (!%p236_p4, %s234_s18), 35  ;;  %v3660_v27 = vld [vmem:[%s4650_s1 + $0x88] sm:$0xff]   ;;  %v3681_v34 = vld [vmem:[%s4650_s1 + $0x150] sm:$0xff]   ;;  %v3674_v36 = vld [vmem:[%s4650_s1 + $0xd8] sm:$0xff]  }
   0xf   : > { %s3611_s4 = smul.u32 52, %s4658_s18  ;;  %v3675_v31 = vld [vmem:[%s4650_s1 + $0x108] sm:$0xff]   ;;  %v3682_v37 = vld [vmem:[%s4650_s1 + $0x110] sm:$0xff]   ;;  %v3677_v38 = vld [vmem:[%s4650_s1 + $0x98] sm:$0xff]  }
  0x10   : > { %3605 = vmatpush3.bf16.msra.mxu1 %v3643_v5  ;;  %3111 = vmatpush3.bf16.msra.mxu0 %v3643_v5  ;;  %v3685_v39 = vld [vmem:[%s4650_s1 + $0x158] sm:$0xff]   ;;  %v3683_v41 = vld [vmem:[%s4650_s1 + $0xe0] sm:$0xff]   ;;  %v3692_v48 = vld [vmem:[%s4650_s1 + $0xe8] sm:$0xff]  }
  0x11   : > { %3598 = vmatprep.subr.bf16.mxu1 %v3644_v6  ;;  %3112 = vmatprep.subr.bf16.mxu0 %v3644_v6  ;;  %s4010_s11 = scalar_lea.vmem %s4649_s0, %s3611_s4  ;;  %v3688_v43 = vld [vmem:[%s4650_s1 + $0x118] sm:$0xff]   ;;  %v3684_v44 = vld [vmem:[%s4650_s1 + $0xa0] sm:$0xff]   ;;  %v3698_v50 = vld [vmem:[%s4650_s1 + $0x168] sm:$0xff]  }
  0x12   : > { %v3656_v11 = vld [vmem:[%s4010_s11 + $0x1a4] ss:$52 sps:$4 sm:$0xff]   ;;  %v3654_v19 = vld [vmem:[%s4010_s11 + $0x1a0] ss:$52 sps:$4 sm:$0xff]   ;;  %v3663_v30 = vld [vmem:[%s4010_s11 + $0x208] ss:$52 sps:$4 sm:$0xff]  }
  0x13   : > { %1891 = vmatprep.mubr.bf16.mxu1 %v3656_v11  ;;  %v3666_v15 = vld [vmem:[%s4010_s11 + $0x4] ss:$52 sps:$4 sm:$0xff]   ;;  %v3664_v23 = vld [vmem:[%s4010_s11] ss:$52 sps:$4 sm:$0xff]   ;;  %v3680_v35 = vld [vmem:[%s4010_s11 + $0x68] ss:$52 sps:$4 sm:$0xff]  }
  0x14   : > { %3606 = vmatpush3.bf16.msra.mxu1 %v3645_v7  ;;  %3113 = vmatpush3.bf16.msra.mxu0 %v3645_v7  ;;  %v3661_v24 = vld [vmem:[%s4010_s11 + $0x20c] ss:$52 sps:$4 sm:$0xff]   ;;  %v3672_v33 = vld [vmem:[%s4010_s11 + $0x274] ss:$52 sps:$4 sm:$0xff]   ;;  %v3676_v42 = vld [vmem:[%s4010_s11 + $0x270] ss:$52 sps:$4 sm:$0xff]  }
  0x15   : > { %3599 = vmatprep.subr.bf16.mxu1 %v3646_v8  ;;  %3114 = vmatprep.subr.bf16.mxu0 %v3646_v8  ;;  %v3678_v28 = vld [vmem:[%s4010_s11 + $0x6c] ss:$52 sps:$4 sm:$0xff]   ;;  %v3690_v40 = vld [vmem:[%s4010_s11 + $0xd4] ss:$52 sps:$4 sm:$0xff]   ;;  %v3686_v45 = vld [vmem:[%s4010_s11 + $0x2dc] ss:$52 sps:$4 sm:$0xff]  }
  0x16   : > { %1859 = vmatprep.mubr.bf16.mxu0 %v3666_v15  ;;  %v3693_v46 = vld [vmem:[%s4010_s11 + $0xd0] ss:$52 sps:$4 sm:$0xff]   ;;  %v3694_v51 = vld [vmem:[%s4650_s1 + $0xa8] sm:$0xff]   ;;  %v3708_v60 = vld [vmem:[%s4650_s1 + $0xf8] sm:$0xff]  }
  0x17   : > { %v3695_v47 = vld [vmem:[%s4650_s1 + $0x160] sm:$0xff]   ;;  %v3689_v52 = vld [vmem:[%s4010_s11 + $0x2d8] ss:$52 sps:$4 sm:$0xff]   ;;  %v3697_v53 = vld [vmem:[%s4650_s1 + $0xf0] sm:$0xff]  }
  0x18   : > { %3607 = vmatpush3.bf16.msra.mxu1 %v3647_v9  ;;  %3115 = vmatpush3.bf16.msra.mxu0 %v3647_v9  ;;  %v3696_v49 = vld [vmem:[%s4650_s1 + $0x120] sm:$0xff]   ;;  %v3702_v54 = vld [vmem:[%s4650_s1 + $0x128] sm:$0xff]   ;;  %v3701_v56 = vld [vmem:[%s4650_s1 + $0xb0] sm:$0xff]  }
  0x19   : > { %3600 = vmatprep.subr.bf16.mxu1 %v3648_v10  ;;  %3116 = vmatprep.subr.bf16.mxu0 %v3648_v10  ;;  %v3699_v55 = vld [vmem:[%s4010_s11 + $0x344] ss:$52 sps:$4 sm:$0xff]   ;;  %v3704_v57 = vld [vmem:[%s4010_s11 + $0x13c] ss:$52 sps:$4 sm:$0xff]   ;;  %v3703_v0 = vld [vmem:[%s4010_s11 + $0x340] ss:$52 sps:$4 sm:$0xff]  }
  0x1a   : > { %v3706_v58 = vld [vmem:[%s4010_s11 + $0x138] ss:$52 sps:$4 sm:$0xff]   ;;  %v3707_v59 = vld [vmem:[%s4650_s1 + $0x170] sm:$0xff]   ;;  %v3716_v3 = vld [vmem:[%s4650_s1 + $0x1c0] sm:$0xff]  }
  0x1b   : > { %v3709_v61 = vld [vmem:[%s4650_s1 + $0x130] sm:$0xff]   ;;  %v3711_v62 = vld [vmem:[%s4650_s1 + $0x178] sm:$0xff]   ;;  %v3714_v1 = vld [vmem:[%s4010_s11 + $0xc] ss:$52 sps:$4 sm:$0xff]  }
  0x1c   : > { %3608 = vmatpush3.bf16.msra.mxu1 %v3649_v12  ;;  %3117 = vmatpush3.bf16.msra.mxu0 %v3649_v12  ;;  %v3710_v63 = vld [vmem:[%s4650_s1 + $0xb8] sm:$0xff]   ;;  %v3717_v4 = vld [vmem:[%s4010_s11 + $0x10] ss:$52 sps:$4 sm:$0xff]   ;;  %v3719_v5 = vld [vmem:[%s4010_s11 + $0x14] ss:$52 sps:$4 sm:$0xff]  }
  0x1d   : > { %3601 = vmatprep.subr.bf16.mxu1 %v3650_v13  ;;  %3118 = vmatprep.subr.bf16.mxu0 %v3650_v13  ;;  %v3715_v2 = vld [vmem:[%s4650_s1 + $0x138] sm:$0xff]   ;;  %v3721_v6 = vld [vmem:[%s4650_s1 + $0x240] sm:$0xff]   ;;  %v3723_v11 = vld [vmem:[%s4010_s11 + $0x74] ss:$52 sps:$4 sm:$0xff]  }
  0x1e   : > { %v3722_v7 = vld [vmem:[%s4650_s1 + $0x200] sm:$0xff]   ;;  %v3712_v8 = vld [vmem:[%s4010_s11 + $0x8] ss:$52 sps:$4 sm:$0xff]   ;;  %v3729_v13 = vld [vmem:[%s4010_s11 + $0x78] ss:$52 sps:$4 sm:$0xff]  }
  0x1f   : > { %v3726_v9 = vld [vmem:[%s4010_s11 + $0x7c] ss:$52 sps:$4 sm:$0xff]   ;;  %v3720_v10 = vld [vmem:[%s4650_s1 + $0x180] sm:$0xff]   ;;  %v3728_v12 = vld [vmem:[%s4650_s1 + $0x1c8] sm:$0xff]  }
  0x20   : > { %3609 = vmatpush3.bf16.msra.mxu1 %v3651_v14  ;;  %3119 = vmatpush3.bf16.msra.mxu0 %v3651_v14  ;;  %v3731_v14 = vld [vmem:[%s4650_s1 + $0x248] sm:$0xff]  }
  0x21   : > { %3602 = vmatprep.subr.bf16.mxu1 %v3652_v16  ;;  %3120 = vmatprep.subr.bf16.mxu0 %v3652_v16  ;;  %v3734_v15 = vld [vmem:[%s4650_s1 + $0x208] sm:$0xff]  }
  0x22   : > { %v3730_v16 = vld [vmem:[%s4650_s1 + $0x188] sm:$0xff]  }
  0x24   : > { %3610 = vmatpush3.bf16.msra.mxu1 %v3653_v17  ;;  %3121 = vmatpush3.bf16.msra.mxu0 %v3653_v17  ;;  %v3736_v17 = vld [vmem:[%s4010_s11 + $0xe4] ss:$52 sps:$4 sm:$0xff]  }
  0x25   : > { %3176 = vmatprep.subr.bf16.mxu1 %v3657_v18  ;;  %3246 = vmatprep.subr.bf16.mxu0 %v3668_v20  ;;  %v3725_v18 = vld [vmem:[%s4010_s11 + $0x70] ss:$52 sps:$4 sm:$0xff]  }
  0x26   : > { %v3732_v20 = vld [vmem:[%s4010_s11 + $0xdc] ss:$52 sps:$4 sm:$0xff]  }
  0x27   : > { %1892 = vmatmul.mubr.bf16.vlgmr.msra.gmra.mrb[0].mxu1 %v3654_v19  ;;  %1860 = vmatmul.mubr.bf16.vlgmr.msra.gmra.mrb[0].mxu0 %v3664_v23  ;;  %v3739_v19 = vld [vmem:[%s4650_s1 + $0x1d0] sm:$0xff]  }
  0x28   : > { %3177 = vmatpush3.bf16.msra.mxu1 %v3658_v21  ;;  %1899 = vmatprep.mubr.bf16.mxu1 %v3661_v24  ;;  %v3740_v21 = vld [vmem:[%s4650_s1 + $0x190] sm:$0xff]  }
  0x29   : > { %3178 = vmatprep.subr.bf16.mxu1 %v3659_v22  ;;  %3247 = vmatpush3.bf16.msra.mxu0 %v3670_v25  ;;  %v3743_v22 = vld [vmem:[%s4650_s1 + $0x250] sm:$0xff]   ;;  %v3746_v25 = vld [vmem:[%s4010_s11 + $0x14c] ss:$52 sps:$4 sm:$0xff]  }
  0x2a   : > { %3248 = vmatprep.subr.bf16.mxu0 %v3671_v26  ;;  %1867 = vmatprep.mubr.bf16.mxu0 %v3678_v28  ;;  %v3738_v23 = vld [vmem:[%s4010_s11 + $0xe0] ss:$52 sps:$4 sm:$0xff]   ;;  %v3749_v26 = vld [vmem:[%s4650_s1 + $0x1d8] sm:$0xff]  }
  0x2b   : > { %v3745_v24 = vld [vmem:[%s4650_s1 + $0x210] sm:$0xff]   ;;  %v3735_v28 = vld [vmem:[%s4010_s11 + $0xd8] ss:$52 sps:$4 sm:$0xff]  }
  0x2c   : > { %3179 = vmatpush3.bf16.msra.mxu1 %v3660_v27  ;;  %v3750_v27 = vld [vmem:[%s4650_s1 + $0x198] sm:$0xff]  }
  0x2d   : > { %3180 = vmatprep.subr.bf16.mxu1 %v3667_v29  ;;  %3249 = vmatpush3.bf16.msra.mxu0 %v3675_v31  ;;  %v3741_v29 = vld [vmem:[%s4010_s11 + $0x144] ss:$52 sps:$4 sm:$0xff]   ;;  %v3748_v31 = vld [vmem:[%s4010_s11 + $0x148] ss:$52 sps:$4 sm:$0xff]  }
  0x2e   : > { %3250 = vmatprep.subr.bf16.mxu0 %v3681_v34  ;;  %v3759_v34 = vld [vmem:[%s4650_s1 + $0x1e0] sm:$0xff]  }
  0x2f   : > { %1900 = vmatmul.mubr.bf16.gmra.mrb[4].mxu1 %v3663_v30  ;;  %1868 = vmatmul.mubr.bf16.gmra.mrb[4].mxu0 %v3680_v35  ;;  %v3754_v30 = vld [vmem:[%s4650_s1 + $0x258] sm:$0xff]   ;;  %v3760_v35 = vld [vmem:[%s4650_s1 + $0x1a0] sm:$0xff]  }
  0x30   : > { %3181 = vmatpush3.bf16.msra.mxu1 %v3669_v32  ;;  %1907 = vmatprep.mubr.bf16.mxu1 %v3672_v33  ;;  %v3757_v32 = vld [vmem:[%s4650_s1 + $0x218] sm:$0xff]   ;;  %v3755_v33 = vld [vmem:[%s4010_s11 + $0x1b4] ss:$52 sps:$4 sm:$0xff]  }
  0x31   : > { %3182 = vmatprep.subr.bf16.mxu1 %v3674_v36  ;;  %3251 = vmatpush3.bf16.msra.mxu0 %v3682_v37  ;;  %v3744_v36 = vld [vmem:[%s4010_s11 + $0x140] ss:$52 sps:$4 sm:$0xff]  }
  0x32   : > { %3252 = vmatprep.subr.bf16.mxu0 %v3685_v39  ;;  %1875 = vmatprep.mubr.bf16.mxu0 %v3690_v40  ;;  %v3751_v37 = vld [vmem:[%s4010_s11 + $0x1ac] ss:$52 sps:$4 sm:$0xff]   ;;  %v3764_v40 = vld [vmem:[%s4010_s11 + $0x21c] ss:$52 sps:$4 sm:$0xff]  }
  0x33   : > { %v3766_v39 = vld [vmem:[%s4650_s1 + $0x260] sm:$0xff]  }
  0x34   : > { %3183 = vmatpush3.bf16.msra.mxu1 %v3677_v38  ;;  %v3758_v38 = vld [vmem:[%s4010_s11 + $0x1b0] ss:$52 sps:$4 sm:$0xff]  }
  0x35   : > { %3184 = vmatprep.subr.bf16.mxu1 %v3683_v41  ;;  %3253 = vmatpush3.bf16.msra.mxu0 %v3688_v43  ;;  %v3768_v41 = vld [vmem:[%s4650_s1 + $0x220] sm:$0xff]   ;;  %v3770_v43 = vld [vmem:[%s4650_s1 + $0x1a8] sm:$0xff]  }
  0x36   : > { %3254 = vmatprep.subr.bf16.mxu0 %v3695_v47  ;;  %v3778_v47 = vld [vmem:[%s4650_s1 + $0x228] sm:$0xff]  }
  0x37   : > { %1908 = vmatmul.mubr.bf16.gmra.mrb[8].mxu1 %v3676_v42  ;;  %1876 = vmatmul.mubr.bf16.gmra.mrb[8].mxu0 %v3693_v46  ;;  %v3769_v42 = vld [vmem:[%s4650_s1 + $0x1e8] sm:$0xff]  }
  0x38   : > { %3185 = vmatpush3.bf16.msra.mxu1 %v3684_v44  ;;  %1915 = vmatprep.mubr.bf16.mxu1 %v3686_v45  ;;  %v3753_v44 = vld [vmem:[%s4010_s11 + $0x1a8] ss:$52 sps:$4 sm:$0xff]  }
  0x39   : > { %3186 = vmatprep.subr.bf16.mxu1 %v3692_v48  ;;  %3255 = vmatpush3.bf16.msra.mxu0 %v3696_v49  ;;  %v3761_v45 = vld [vmem:[%s4010_s11 + $0x214] ss:$52 sps:$4 sm:$0xff]   ;;  %v3767_v49 = vld [vmem:[%s4010_s11 + $0x218] ss:$52 sps:$4 sm:$0xff]  }
  0x3a   : > { %3256 = vmatprep.subr.bf16.mxu0 %v3698_v50  ;;  %1883 = vmatprep.mubr.bf16.mxu0 %v3704_v57  ;;  %v3777_v46 = vld [vmem:[%s4650_s1 + $0x268] sm:$0xff]   ;;  %v3779_v48 = vld [vmem:[%s4650_s1 + $0x1f0] sm:$0xff]   ;;  %v3774_v50 = vld [vmem:[%s4010_s11 + $0x284] ss:$52 sps:$4 sm:$0xff]  }
  0x3b   : > { %v3791_v57 = vld [vmem:[%s4650_s1 + $0x1f8] sm:$0xff]  }
  0x3c   : > { %3187 = vmatpush3.bf16.msra.mxu1 %v3694_v51  ;;  %v3782_v51 = vld [vmem:[%s4650_s1 + $0x1b0] sm:$0xff]  }
  0x3d   : > { %3188 = vmatprep.subr.bf16.mxu1 %v3697_v53  ;;  %3257 = vmatpush3.bf16.msra.mxu0 %v3702_v54  ;;  %v3787_v53 = vld [vmem:[%s4650_s1 + $0x270] sm:$0xff]  }
  0x3e   : > { %3258 = vmatprep.subr.bf16.mxu0 %v3707_v59  ;;  %v3788_v54 = vld [vmem:[%s4650_s1 + $0x230] sm:$0xff]   ;;  %v3784_v59 = vld [vmem:[%s4010_s11 + $0x2ec] ss:$52 sps:$4 sm:$0xff]  }
  0x3f   : > { %1916 = vmatmul.mubr.bf16.gmra.mrb[12].mxu1 %v3689_v52  ;;  %1884 = vmatmul.mubr.bf16.gmra.mrb[12].mxu0 %v3706_v58  ;;  %v3763_v52 = vld [vmem:[%s4010_s11 + $0x210] ss:$52 sps:$4 sm:$0xff]   ;;  %v3793_v58 = vld [vmem:[%s4650_s1 + $0x1b8] sm:$0xff]  }
  0x40   : > { %1923 = vmatprep.mubr.bf16.mxu1 %v3699_v55  ;;  %3189 = vmatpush3.bf16.msra.mxu1 %v3701_v56  ;;  %v3771_v55 = vld [vmem:[%s4010_s11 + $0x27c] ss:$52 sps:$4 sm:$0xff]   ;;  %v3776_v56 = vld [vmem:[%s4010_s11 + $0x280] ss:$52 sps:$4 sm:$0xff]  }
  0x41   : > { %3190 = vmatprep.subr.bf16.mxu1 %v3708_v60  ;;  %3259 = vmatpush3.bf16.msra.mxu0 %v3709_v61  ;;  %v3797_v60 = vld [vmem:[%s4650_s1 + $0x278] sm:$0xff]  }
  0x42   : > { %3260 = vmatprep.subr.bf16.mxu0 %v3711_v62  ;;  %2069 = vmatprep.mubr.bf16.mxu0 %v3719_v5  ;;  %v3798_v61 = vld [vmem:[%s4650_s1 + $0x238] sm:$0xff]   ;;  %v3789_v5 = vld [vmem:[%s4010_s11 + $0x34c] ss:$52 sps:$4 sm:$0xff]  }
  0x43   : > { %v3773_v62 = vld [vmem:[%s4010_s11 + $0x278] ss:$52 sps:$4 sm:$0xff]  }
  0x44   : > { %3191 = vmatpush3.bf16.msra.mxu1 %v3710_v63  ;;  %v3802_v63 = vld [vmem:[%s4650_s1 + $0x2c0] sm:$0xff]  }
  0x45   : > { %3261 = vmatpush3.bf16.msra.mxu0 %v3715_v2  ;;  %3316 = vmatprep.subr.bf16.mxu1 %v3716_v3  ;;  %v3786_v2 = vld [vmem:[%s4010_s11 + $0x2e8] ss:$52 sps:$4 sm:$0xff]  }
  0x46   : > { %3386 = vmatprep.subr.bf16.mxu0 %v3721_v6  ;;  %v3794_v3 = vld [vmem:[%s4010_s11 + $0x354] ss:$52 sps:$4 sm:$0xff]   ;;  %v3796_v6 = vld [vmem:[%s4010_s11 + $0x350] ss:$52 sps:$4 sm:$0xff]  }
  0x47   : > { %1924 = vmatmul.mubr.bf16.gmra.mrb[16].mxu1 %v3703_v0  ;;  %v3937_v0 = vmov 0.0  }
  0x48   : > { %1964 = vmatprep.mubr.bf16.mxu1 %v3714_v1  ;;  %2070 = vmatmul.mubr.bf16.vlgmr.msra.gmra.mrb[16].mxu0 %v3717_v4  ;;  %v3780_v1 = vld [vmem:[%s4010_s11 + $0x2e4] ss:$52 sps:$4 sm:$0xff]   ;;  %v3783_v4 = vld [vmem:[%s4010_s11 + $0x2e0] ss:$52 sps:$4 sm:$0xff]  }
  0x49   : > { %3387 = vmatpush3.bf16.msra.mxu0 %v3722_v7  ;;  %2077 = vmatprep.mubr.bf16.mxu0 %v3726_v9  ;;  %v3805_v7 = vld [vmem:[%s4010_s11 + $0x24] ss:$52 sps:$4 sm:$0xff]   ;;  %v3801_v9 = vld [vmem:[%s4010_s11 + $0x1c] ss:$52 sps:$4 sm:$0xff]  }
  0x4a   : > { %3388 = vmatprep.subr.bf16.mxu0 %v3731_v14  ;;  %v3818_v14 = vld [vmem:[%s4650_s1 + $0x308] sm:$0xff]  }
  0x4d   : > { %3389 = vmatpush3.bf16.msra.mxu0 %v3734_v15  ;;  %v3806_v15 = vld [vmem:[%s4650_s1 + $0x280] sm:$0xff]  }
  0x4e   : > { %3390 = vmatprep.subr.bf16.mxu0 %v3743_v22  ;;  %v3810_v22 = vld [vmem:[%s4010_s11 + $0x80] ss:$52 sps:$4 sm:$0xff]  }
  0x4f   : > { %1965 = vmatmul.mubr.bf16.vlgmr.msra.gmra.mrb[20].mxu1 %v3712_v8  ;;  %v3792_v8 = vld [vmem:[%s4010_s11 + $0x348] ss:$52 sps:$4 sm:$0xff]  }
  0x50   : > { %3317 = vmatpush3.bf16.msra.mxu1 %v3720_v10  ;;  %1972 = vmatprep.mubr.bf16.mxu1 %v3723_v11  ;;  %v3803_v10 = vld [vmem:[%s4010_s11 + $0x20] ss:$52 sps:$4 sm:$0xff]  }
  0x51   : > { %3318 = vmatprep.subr.bf16.mxu1 %v3728_v12  ;;  %2078 = vmatmul.mubr.bf16.gmra.mrb[20].mxu0 %v3729_v13  ;;  %v3807_v11 = vld [vmem:[%s4650_s1 + $0x300] sm:$0xff]   ;;  %v3799_v13 = vld [vmem:[%s4010_s11 + $0x18] ss:$52 sps:$4 sm:$0xff]  }
  0x52   : > { %2085 = vmatprep.mubr.bf16.mxu0 %v3736_v17  ;;  %3391 = vmatpush3.bf16.msra.mxu0 %v3745_v24  ;;  %v3811_v12 = vld [vmem:[%s4010_s11 + $0x8c] ss:$52 sps:$4 sm:$0xff]  }
  0x53   : > { %3392 = vmatprep.subr.bf16.mxu0 %v3754_v30  ;;  %v3813_v17 = vld [vmem:[%s4650_s1 + $0x2c8] sm:$0xff]   ;;  %v3849_v30 = vld [vmem:[%s4650_s1 + $0x320] sm:$0xff]  }
  0x54   : > { %3319 = vmatpush3.bf16.msra.mxu1 %v3730_v16  ;;  %v3808_v16 = vld [vmem:[%s4010_s11 + $0x84] ss:$52 sps:$4 sm:$0xff]   ;;  %v3816_v24 = vld [vmem:[%s4010_s11 + $0xec] ss:$52 sps:$4 sm:$0xff]  }
  0x55   : > { %3320 = vmatprep.subr.bf16.mxu1 %v3739_v19  ;;  %v3820_v19 = vld [vmem:[%s4010_s11 + $0xf4] ss:$52 sps:$4 sm:$0xff]  }
  0x56   : > { %3393 = vmatpush3.bf16.msra.mxu0 %v3757_v32  ;;  %v3819_v32 = vld [vmem:[%s4010_s11 + $0xe8] ss:$52 sps:$4 sm:$0xff]  }
  0x57   : > { %1973 = vmatmul.mubr.bf16.gmra.mrb[24].mxu1 %v3725_v18  ;;  %3394 = vmatprep.subr.bf16.mxu0 %v3766_v39  ;;  %v3814_v18 = vld [vmem:[%s4010_s11 + $0x88] ss:$52 sps:$4 sm:$0xff]  }
  0x58   : > { %1980 = vmatprep.mubr.bf16.mxu1 %v3732_v20  ;;  %3321 = vmatpush3.bf16.msra.mxu1 %v3740_v21  ;;  %v3828_v20 = vld [vmem:[%s4650_s1 + $0x310] sm:$0xff]   ;;  %v3815_v21 = vld [vmem:[%s4650_s1 + $0x288] sm:$0xff]  }
  0x59   : > { %2086 = vmatmul.mubr.bf16.gmra.mrb[24].mxu0 %v3738_v23  ;;  %3322 = vmatprep.subr.bf16.mxu1 %v3749_v26  ;;  %v3823_v23 = vld [vmem:[%s4650_s1 + $0x2d0] sm:$0xff]   ;;  %v3850_v39 = vld [vmem:[%s4650_s1 + $0x2e8] sm:$0xff]  }
  0x5a   : > { %2093 = vmatprep.mubr.bf16.mxu0 %v3746_v25  ;;  %3395 = vmatpush3.bf16.msra.mxu0 %v3768_v41  ;;  %v3839_v25 = vld [vmem:[%s4650_s1 + $0x318] sm:$0xff]   ;;  %v3822_v26 = vld [vmem:[%s4010_s11 + $0xf0] ss:$52 sps:$4 sm:$0xff]   ;;  %v3851_v41 = vld [vmem:[%s4650_s1 + $0x2a8] sm:$0xff]  }
  0x5b   : > { %3396 = vmatprep.subr.bf16.mxu0 %v3777_v46  ;;  %v3840_v46 = vld [vmem:[%s4010_s11 + $0x1c0] ss:$52 sps:$4 sm:$0xff]  }
  0x5c   : > { %3323 = vmatpush3.bf16.msra.mxu1 %v3750_v27  ;;  %v3824_v27 = vld [vmem:[%s4650_s1 + $0x290] sm:$0xff]  }
  0x5d   : > { %3324 = vmatprep.subr.bf16.mxu1 %v3759_v34  ;;  %v3825_v34 = vld [vmem:[%s4010_s11 + $0x154] ss:$52 sps:$4 sm:$0xff]  }
  0x5e   : > { %3397 = vmatpush3.bf16.msra.mxu0 %v3778_v47  ;;  %v3862_v47 = vld [vmem:[%s4650_s1 + $0x2b0] sm:$0xff]  }
  0x5f   : > { %1981 = vmatmul.mubr.bf16.gmra.mrb[28].mxu1 %v3735_v28  ;;  %3398 = vmatprep.subr.bf16.mxu0 %v3787_v53  ;;  %v3829_v28 = vld [vmem:[%s4010_s11 + $0x15c] ss:$52 sps:$4 sm:$0xff]  }
  0x60   : > { %1988 = vmatprep.mubr.bf16.mxu1 %v3741_v29  ;;  %3325 = vmatpush3.bf16.msra.mxu1 %v3760_v35  ;;  %v3832_v29 = vld [vmem:[%s4650_s1 + $0x2d8] sm:$0xff]   ;;  %v3858_v35 = vld [vmem:[%s4650_s1 + $0x328] sm:$0xff]  }
  0x61   : > { %2094 = vmatmul.mubr.bf16.gmra.mrb[28].mxu0 %v3748_v31  ;;  %3326 = vmatprep.subr.bf16.mxu1 %v3769_v42  ;;  %v3833_v31 = vld [vmem:[%s4650_s1 + $0x298] sm:$0xff]   ;;  %v3827_v42 = vld [vmem:[%s4010_s11 + $0x150] ss:$52 sps:$4 sm:$0xff]  }
  0x62   : > { %2101 = vmatprep.mubr.bf16.mxu0 %v3755_v33  ;;  %3399 = vmatpush3.bf16.msra.mxu0 %v3788_v54  ;;  %v3841_v33 = vld [vmem:[%s4650_s1 + $0x2e0] sm:$0xff]   ;;  %v3848_v53 = vld [vmem:[%s4010_s11 + $0x228] ss:$52 sps:$4 sm:$0xff]  }
  0x63   : > { %3400 = vmatprep.subr.bf16.mxu0 %v3797_v60  ;;  %v3855_v54 = vld [vmem:[%s4010_s11 + $0x294] ss:$52 sps:$4 sm:$0xff]  }
  0x64   : > { %3327 = vmatpush3.bf16.msra.mxu1 %v3770_v43  ;;  %v3859_v43 = vld [vmem:[%s4650_s1 + $0x2f0] sm:$0xff]  }
  0x65   : > { %3328 = vmatprep.subr.bf16.mxu1 %v3779_v48  ;;  %v3870_v48 = vld [vmem:[%s4650_s1 + $0x2f8] sm:$0xff]   ;;  %v3860_v60 = vld [vmem:[%s4010_s11 + $0x2f4] ss:$52 sps:$4 sm:$0xff]  }
  0x66   : > { %3401 = vmatpush3.bf16.msra.mxu0 %v3798_v61  ;;  %v3866_v61 = vld [vmem:[%s4010_s11 + $0x2f8] ss:$52 sps:$4 sm:$0xff]  }
  0x67   : > { %1989 = vmatmul.mubr.bf16.gmra.mrb[32].mxu1 %v3744_v36  ;;  %3543 = vmatprep.subr.bf16.mxu0 %v3937_v0  ;;  %v3831_v36 = vld [vmem:[%s4010_s11 + $0x158] ss:$52 sps:$4 sm:$0xff]  }
  0x68   : > { %1996 = vmatprep.mubr.bf16.mxu1 %v3751_v37  ;;  %3329 = vmatpush3.bf16.msra.mxu1 %v3782_v51  ;;  %v3842_v37 = vld [vmem:[%s4650_s1 + $0x2a0] sm:$0xff]   ;;  %v3836_v51 = vld [vmem:[%s4010_s11 + $0x1b8] ss:$52 sps:$4 sm:$0xff]  }
  0x69   : > { %2102 = vmatmul.mubr.bf16.gmra.mrb[32].mxu0 %v3758_v38  ;;  %3330 = vmatprep.subr.bf16.mxu1 %v3791_v57  ;;  %v3837_v38 = vld [vmem:[%s4010_s11 + $0x1c4] ss:$52 sps:$4 sm:$0xff]  }
  0x6a   : > { %2109 = vmatprep.mubr.bf16.mxu0 %v3764_v40  ;;  %v3867_v40 = vld [vmem:[%s4650_s1 + $0x330] sm:$0xff]  }
  0x6b   : > { %v3857_v57 = vld [vmem:[%s4010_s11 + $0x290] ss:$52 sps:$4 sm:$0xff]  }
  0x6c   : > { %3331 = vmatpush3.bf16.msra.mxu1 %v3793_v58  ;;  %v3864_v58 = vld [vmem:[%s4010_s11 + $0x2fc] ss:$52 sps:$4 sm:$0xff]  }
  0x6d   : > { %3456 = vmatprep.subr.bf16.mxu1 %v3802_v63  ;;  %v3863_v63 = vld [vmem:[%s4010_s11 + $0x2f0] ss:$52 sps:$4 sm:$0xff]  }
  0x6f   : > { %1997 = vmatmul.mubr.bf16.gmra.mrb[36].mxu1 %v3753_v44  ;;  %v3876_v44 = vld [vmem:[%s4650_s1 + $0x338] sm:$0xff]  }
  0x70   : > { %2004 = vmatprep.mubr.bf16.mxu1 %v3761_v45  ;;  %v3834_v45 = vld [vmem:[%s4010_s11 + $0x1bc] ss:$52 sps:$4 sm:$0xff]  }
  0x71   : > { %2110 = vmatmul.mubr.bf16.gmra.mrb[36].mxu0 %v3767_v49  ;;  %v3846_v49 = vld [vmem:[%s4010_s11 + $0x22c] ss:$52 sps:$4 sm:$0xff]  }
  0x72   : > { %2117 = vmatprep.mubr.bf16.mxu0 %v3774_v50  ;;  %v3872_v50 = vld [vmem:[%s4650_s1 + $0x2b8] sm:$0xff]  }
  0x77   : > { %2005 = vmatmul.mubr.bf16.gmra.mrb[40].mxu1 %v3763_v52  ;;  %v3843_v52 = vld [vmem:[%s4010_s11 + $0x224] ss:$52 sps:$4 sm:$0xff]  }
  0x78   : > { %2012 = vmatprep.mubr.bf16.mxu1 %v3771_v55  ;;  %v3845_v55 = vld [vmem:[%s4010_s11 + $0x220] ss:$52 sps:$4 sm:$0xff]  }
  0x79   : > { %2118 = vmatmul.mubr.bf16.gmra.mrb[40].mxu0 %v3776_v56  ;;  %v3852_v56 = vld [vmem:[%s4010_s11 + $0x28c] ss:$52 sps:$4 sm:$0xff]  }
  0x7a   : > { %2125 = vmatprep.mubr.bf16.mxu0 %v3784_v59  ;;  %v3854_v59 = vld [vmem:[%s4010_s11 + $0x288] ss:$52 sps:$4 sm:$0xff]  }
  0x7f   : > { %2013 = vmatmul.mubr.bf16.gmra.mrb[44].mxu1 %v3773_v62  ;;  %v3873_v62 = vld [vmem:[%s4010_s11 + $0x364] ss:$52 sps:$4 sm:$0xff]  }
  0x80   : > { %2020 = vmatprep.mubr.bf16.mxu1 %v3780_v1  ;;  %v3868_v1 = vld [vmem:[%s4010_s11 + $0x35c] ss:$52 sps:$4 sm:$0xff]  }
  0x81   : > { %2126 = vmatmul.mubr.bf16.gmra.mrb[44].mxu0 %v3786_v2  ;;  %v3875_v2 = vld [vmem:[%s4010_s11 + $0x360] ss:$52 sps:$4 sm:$0xff]  }
  0x82   : > { %2133 = vmatprep.mubr.bf16.mxu0 %v3794_v3  ;;  %v3871_v3 = vld [vmem:[%s4010_s11 + $0x358] ss:$52 sps:$4 sm:$0xff]  }
  0x87   : > { %2021 = vmatmul.mubr.bf16.gmra.mrb[48].mxu1 %v3783_v4  ;;  %v3879_v4 = vld [vmem:[%s4010_s11 + $0x2c] ss:$52 sps:$4 sm:$0xff]  }
  0x88   : > { %2028 = vmatprep.mubr.bf16.mxu1 %v3789_v5  ;;  %v3880_v5 = vld [vmem:[%s4010_s11 + $0x30] ss:$52 sps:$4 sm:$0xff]  }
  0x89   : > { %2134 = vmatmul.mubr.bf16.gmra.mrb[48].mxu0 %v3796_v6  ;;  %v3877_v6 = vld [vmem:[%s4010_s11 + $0x28] ss:$52 sps:$4 sm:$0xff]  }
  0x8a   : > { %2279 = vmatprep.mubr.bf16.mxu0 %v3805_v7  ;;  %v3881_v7 = vld [vmem:[%s4010_s11 + $0x94] ss:$52 sps:$4 sm:$0xff]  }
  0x8f   : > { %2029 = vmatmul.mubr.bf16.gmra.mrb[52].mxu1 %v3792_v8  ;;  %v3884_v8 = vld [vmem:[%s4010_s11 + $0x98] ss:$52 sps:$4 sm:$0xff]  }
  0x90   : > { %2174 = vmatprep.mubr.bf16.mxu1 %v3801_v9  ;;  %v3883_v9 = vld [vmem:[%s4010_s11 + $0x90] ss:$52 sps:$4 sm:$0xff]  }
  0x91   : > { %2280 = vmatmul.mubr.bf16.vlgmr.msra.gmra.mrb[52].mxu0 %v3803_v10  ;;  %v3885_v10 = vld [vmem:[%s4010_s11 + $0xfc] ss:$52 sps:$4 sm:$0xff]  }
  0x92   : > { %3544 = vmatpush3.bf16.msra.mxu0 %v3807_v11  ;;  %2287 = vmatprep.mubr.bf16.mxu0 %v3811_v12  ;;  %v3888_v11 = vld [vmem:[%s4010_s11 + $0x100] ss:$52 sps:$4 sm:$0xff]   ;;  %v3887_v12 = vld [vmem:[%s4010_s11 + $0xf8] ss:$52 sps:$4 sm:$0xff]  }
  0x93   : > { %3545 = vmatprep.subr.bf16.mxu0 %v3937_v0 }
  0x96   : > { %3546 = vmatpush3.bf16.msra.mxu0 %v3818_v14  ;;  %v3892_v14 = vld [vmem:[%s4010_s11 + $0x168] ss:$52 sps:$4 sm:$0xff]  }
  0x97   : > { %2175 = vmatmul.mubr.bf16.vlgmr.msra.gmra.mrb[56].mxu1 %v3799_v13  ;;  %3547 = vmatprep.subr.bf16.mxu0 %v3937_v0  ;;  %v3889_v13 = vld [vmem:[%s4010_s11 + $0x164] ss:$52 sps:$4 sm:$0xff]  }
  0x98   : > { %3457 = vmatpush3.bf16.msra.mxu1 %v3806_v15  ;;  %2182 = vmatprep.mubr.bf16.mxu1 %v3808_v16  ;;  %v3891_v15 = vld [vmem:[%s4010_s11 + $0x160] ss:$52 sps:$4 sm:$0xff]  }
  0x99   : > { %3458 = vmatprep.subr.bf16.mxu1 %v3813_v17  ;;  %2288 = vmatmul.mubr.bf16.gmra.mrb[56].mxu0 %v3814_v18  ;;  %v3893_v16 = vld [vmem:[%s4010_s11 + $0x1cc] ss:$52 sps:$4 sm:$0xff]   ;;  %v3896_v17 = vld [vmem:[%s4010_s11 + $0x1d0] ss:$52 sps:$4 sm:$0xff]  }
  0x9a   : > { %2295 = vmatprep.mubr.bf16.mxu0 %v3820_v19  ;;  %3548 = vmatpush3.bf16.msra.mxu0 %v3828_v20 }
  0x9b   : > { %3549 = vmatprep.subr.bf16.mxu0 %v3937_v0 }
  0x9c   : > { %3459 = vmatpush3.bf16.msra.mxu1 %v3815_v21  ;;  %v3895_v21 = vld [vmem:[%s4010_s11 + $0x1c8] ss:$52 sps:$4 sm:$0xff]  }
  0x9d   : > { %3460 = vmatprep.subr.bf16.mxu1 %v3823_v23 }
  0x9e   : > { %3550 = vmatpush3.bf16.msra.mxu0 %v3839_v25 }
  0x9f   : > { %2183 = vmatmul.mubr.bf16.gmra.mrb[60].mxu1 %v3810_v22  ;;  %3551 = vmatprep.subr.bf16.mxu0 %v3937_v0 }
  0xa0   : > { %2190 = vmatprep.mubr.bf16.mxu1 %v3816_v24  ;;  %3461 = vmatpush3.bf16.msra.mxu1 %v3824_v27 }
  0xa1   : > { %2296 = vmatmul.mubr.bf16.gmra.mrb[60].mxu0 %v3822_v26  ;;  %3462 = vmatprep.subr.bf16.mxu1 %v3832_v29  ;;  %v3897_v26 = vld [vmem:[%s4010_s11 + $0x234] ss:$52 sps:$4 sm:$0xff]  }
  0xa2   : > { %2303 = vmatprep.mubr.bf16.mxu0 %v3829_v28  ;;  %3552 = vmatpush3.bf16.msra.mxu0 %v3849_v30  ;;  %v3900_v30 = vld [vmem:[%s4010_s11 + $0x238] ss:$52 sps:$4 sm:$0xff]  }
  0xa3   : > { %3553 = vmatprep.subr.bf16.mxu0 %v3937_v0 }
  0xa4   : > { %3463 = vmatpush3.bf16.msra.mxu1 %v3833_v31 }
  0xa5   : > { %3464 = vmatprep.subr.bf16.mxu1 %v3841_v33 }
  0xa6   : > { %3554 = vmatpush3.bf16.msra.mxu0 %v3858_v35 }
  0xa7   : > { %2191 = vmatmul.mubr.bf16.gmra.mrb[64].mxu1 %v3819_v32  ;;  %3555 = vmatprep.subr.bf16.mxu0 %v3937_v0 }
  0xa8   : > { %2198 = vmatprep.mubr.bf16.mxu1 %v3825_v34  ;;  %3465 = vmatpush3.bf16.msra.mxu1 %v3842_v37 }
  0xa9   : > { %2304 = vmatmul.mubr.bf16.gmra.mrb[64].mxu0 %v3831_v36  ;;  %3466 = vmatprep.subr.bf16.mxu1 %v3850_v39  ;;  %v3899_v36 = vld [vmem:[%s4010_s11 + $0x230] ss:$52 sps:$4 sm:$0xff]  }
  0xaa   : > { %2311 = vmatprep.mubr.bf16.mxu0 %v3837_v38  ;;  %3556 = vmatpush3.bf16.msra.mxu0 %v3867_v40 }
  0xab   : > { %3557 = vmatprep.subr.bf16.mxu0 %v3937_v0 }
  0xac   : > { %3467 = vmatpush3.bf16.msra.mxu1 %v3851_v41  ;;  %v3901_v41 = vld [vmem:[%s4010_s11 + $0x29c] ss:$52 sps:$4 sm:$0xff]  }
  0xad   : > { %3468 = vmatprep.subr.bf16.mxu1 %v3859_v43 }
  0xae   : > { %3558 = vmatpush3.bf16.msra.mxu0 %v3876_v44 }
  0xaf   : > { %2199 = vmatmul.mubr.bf16.gmra.mrb[68].mxu1 %v3827_v42 }
  0xb0   : > { %2206 = vmatprep.mubr.bf16.mxu1 %v3834_v45  ;;  %3469 = vmatpush3.bf16.msra.mxu1 %v3862_v47  ;;  %v3904_v45 = vld [vmem:[%s4010_s11 + $0x2a0] ss:$52 sps:$4 sm:$0xff]  }
  0xb1   : > { %2312 = vmatmul.mubr.bf16.gmra.mrb[68].mxu0 %v3840_v46  ;;  %3470 = vmatprep.subr.bf16.mxu1 %v3870_v48 }
  0xb2   : > { %2319 = vmatprep.mubr.bf16.mxu0 %v3846_v49 }
  0xb4   : > { %3471 = vmatpush3.bf16.msra.mxu1 %v3872_v50 }
  0xb7   : > { %2207 = vmatmul.mubr.bf16.gmra.mrb[72].mxu1 %v3836_v51  ;;  %v3903_v51 = vld [vmem:[%s4010_s11 + $0x298] ss:$52 sps:$4 sm:$0xff]  }
  0xb8   : > { %2214 = vmatprep.mubr.bf16.mxu1 %v3843_v52 }
  0xb9   : > { %2320 = vmatmul.mubr.bf16.gmra.mrb[72].mxu0 %v3848_v53 }
  0xba   : > { %2327 = vmatprep.mubr.bf16.mxu0 %v3855_v54 }
  0xbf   : > { %2215 = vmatmul.mubr.bf16.gmra.mrb[76].mxu1 %v3845_v55 }
  0xc0   : > { %2222 = vmatprep.mubr.bf16.mxu1 %v3852_v56  ;;  %v3905_v56 = vld [vmem:[%s4010_s11 + $0x304] ss:$52 sps:$4 sm:$0xff]  }
  0xc1   : > { %2328 = vmatmul.mubr.bf16.gmra.mrb[76].mxu0 %v3857_v57 }
  0xc2   : > { %2335 = vmatprep.mubr.bf16.mxu0 %v3864_v58 }
  0xc7   : > { %2223 = vmatmul.mubr.bf16.gmra.mrb[80].mxu1 %v3854_v59 }
  0xc8   : > { %2230 = vmatprep.mubr.bf16.mxu1 %v3860_v60  ;;  %v3908_v60 = vld [vmem:[%s4010_s11 + $0x308] ss:$52 sps:$4 sm:$0xff]  }
  0xc9   : > { %2336 = vmatmul.mubr.bf16.gmra.mrb[80].mxu0 %v3866_v61 }
  0xca   : > { %2343 = vmatprep.mubr.bf16.mxu0 %v3873_v62 }
  0xcf   : > { %2231 = vmatmul.mubr.bf16.gmra.mrb[84].mxu1 %v3863_v63 }
  0xd0   : > { %2238 = vmatprep.mubr.bf16.mxu1 %v3868_v1 }
  0xd1   : > { %2344 = vmatmul.mubr.bf16.gmra.mrb[84].mxu0 %v3875_v2 }
  0xd2   : > { %3559 = vmatprep.mubr.msk.bf16.mxu0 %vm3938_vm0, %v3937_v0 }
  0xd7   : > { %2239 = vmatmul.mubr.bf16.gmra.mrb[88].mxu1 %v3871_v3  ;;  %v3907_v3 = vld [vmem:[%s4010_s11 + $0x300] ss:$52 sps:$4 sm:$0xff]  }
  0xd8   : > { %2384 = vmatprep.mubr.bf16.mxu1 %v3879_v4 }
  0xd9   : > { %3560 = vmatmul.mubr.bf16.vlgmr.msra.gmra.mrb[88].mxu0 %v3880_v5 }
  0xda   : > { %3563 = vmatprep.mubr.msk.bf16.mxu0 %vm3938_vm0, %v3937_v0 }
  0xdf   : > { %2385 = vmatmul.mubr.bf16.vlgmr.msra.gmra.mrb[92].mxu1 %v3877_v6 }
  0xe0   : > { %2392 = vmatprep.mubr.bf16.mxu1 %v3881_v7 }
  0xe1   : > { %3564 = vmatmul.mubr.bf16.gmra.mrb[92].mxu0 %v3884_v8  ;;  %v3909_v8 = vld [vmem:[%s4010_s11 + $0x36c] ss:$52 sps:$4 sm:$0xff]  }
  0xe2   : > { %3567 = vmatprep.mubr.msk.bf16.mxu0 %vm3938_vm0, %v3937_v0 }
  0xe7   : > { %2393 = vmatmul.mubr.bf16.gmra.mrb[96].mxu1 %v3883_v9 }
  0xe8   : > { %2400 = vmatprep.mubr.bf16.mxu1 %v3885_v10 }
  0xe9   : > { %3568 = vmatmul.mubr.bf16.gmra.mrb[96].mxu0 %v3888_v11 }
  0xea   : > { %3571 = vmatprep.mubr.msk.bf16.mxu0 %vm3938_vm0, %v3937_v0 }
  0xef   : > { %2401 = vmatmul.mubr.bf16.gmra.mrb[100].mxu1 %v3887_v12  ;;  %v3912_v12 = vld [vmem:[%s4010_s11 + $0x370] ss:$52 sps:$4 sm:$0xff]  }
  0xf0   : > { %2408 = vmatprep.mubr.bf16.mxu1 %v3889_v13 }
  0xf1   : > { %3572 = vmatmul.mubr.bf16.gmra.mrb[100].mxu0 %v3892_v14 }
  0xf2   : > { %3575 = vmatprep.mubr.msk.bf16.mxu0 %vm3938_vm0, %v3937_v0 }
  0xf7   : > { %2409 = vmatmul.mubr.bf16.gmra.mrb[104].mxu1 %v3891_v15 }
  0xf8   : > { %2416 = vmatprep.mubr.bf16.mxu1 %v3893_v16  ;;  %v3911_v16 = vld [vmem:[%s4010_s11 + $0x368] ss:$52 sps:$4 sm:$0xff]   ;;  %s2792_s11 = sshll.u32 %s4658_s18, 2 }
  0xf9   : > { %3576 = vmatmul.mubr.bf16.gmra.mrb[104].mxu0 %v3896_v17  ;;  %s4613_s7 = scalar_lea.vmem %s4652_s3, %s2792_s11 }
  0xfa   : > { %v3146_v18 = vpop.f32.mrb[0].mxu1  ;;  %v3122_v19 = vpop.f32.mrb[0].mxu0  ;;  %3579 = vmatprep.mubr.msk.bf16.mxu0 %vm3938_vm0, %v3937_v0 }
  0xfb   : > { %v3147_v20 = vpop.f32.mrb[1].mxu1  ;;  %v3123_v22 = vpop.f32.mrb[1].mxu0 }
  0xfc   : > { %v4422_v23 = vadd.f32 %v3147_v20, %v3146_v18  ;;  %v3149_v24 = vpop.f32.mrb[2].mxu1  ;;  %v4424_v25 = vadd.f32 %v3123_v22, %v3122_v19  ;;  %v3125_v27 = vpop.f32.mrb[2].mxu0 }
  0xfd   : > { %v3150_v28 = vpop.f32.mrb[3].mxu1  ;;  %v3126_v29 = vpop.f32.mrb[3].mxu0 }
  0xfe   : > { %v4428_v31 = vadd.f32 %v3150_v28, %v3149_v24  ;;  %v4430_v32 = vadd.f32 %v3126_v29, %v3125_v27 }
  0xff   : > { %2417 = vmatmul.mubr.bf16.gmra.mrb[108].mxu1 %v3895_v21  ;;  %v4475_v21 = vld [vmem:[%s4651_s2] ss:$0 sm:$0xff] }
 0x100   : > { %2424 = vmatprep.mubr.bf16.mxu1 %v3897_v26 }
 0x101   : > { %3580 = vmatmul.mubr.bf16.gmra.mrb[108].mxu0 %v3900_v30 }
 0x102   : > { %v3152_v33 = vpop.f32.mrb[4].mxu1  ;;  %v3128_v34 = vpop.f32.mrb[4].mxu0  ;;  %3583 = vmatprep.mubr.msk.bf16.mxu0 %vm3938_vm0, %v3937_v0 }
 0x103   : > { %v3153_v35 = vpop.f32.mrb[5].mxu1  ;;  %v3129_v37 = vpop.f32.mrb[5].mxu0 }
 0x104   : > { %v4435_v38 = vadd.f32 %v3153_v35, %v3152_v33  ;;  %v3155_v39 = vpop.f32.mrb[6].mxu1  ;;  %v4437_v40 = vadd.f32 %v3129_v37, %v3128_v34  ;;  %v3131_v42 = vpop.f32.mrb[6].mxu0 }
 0x105   : > { %v3156_v43 = vpop.f32.mrb[7].mxu1  ;;  %v3132_v44 = vpop.f32.mrb[7].mxu0 }
 0x106   : > { %v4441_v46 = vadd.f32 %v3156_v43, %v3155_v39  ;;  %v4443_v47 = vadd.f32 %v3132_v44, %v3131_v42  ;;  %v1865_v44 = vadd.f32 %v4430_v32, %v4475_v21 }
 0x107   : > { %2425 = vmatmul.mubr.bf16.gmra.mrb[112].mxu1 %v3899_v36  ;;  %v1862_v36 = vadd.f32 %v4424_v25, %v4475_v21 }
 0x108   : > { %2432 = vmatprep.mubr.bf16.mxu1 %v3901_v41 }
 0x109   : > { %3584 = vmatmul.mubr.bf16.gmra.mrb[112].mxu0 %v3904_v45 }
 0x10a   : > { %v3158_v48 = vpop.f32.mrb[8].mxu1  ;;  %v3134_v49 = vpop.f32.mrb[8].mxu0  ;;  %3587 = vmatprep.mubr.msk.bf16.mxu0 %vm3938_vm0, %v3937_v0 }
 0x10b   : > { %v3159_v50 = vpop.f32.mrb[9].mxu1  ;;  %v3135_v52 = vpop.f32.mrb[9].mxu0 }
 0x10c   : > { %v4448_v53 = vadd.f32 %v3159_v50, %v3158_v48  ;;  %v3161_v54 = vpop.f32.mrb[10].mxu1  ;;  %v4450_v55 = vadd.f32 %v3135_v52, %v3134_v49  ;;  %v3137_v57 = vpop.f32.mrb[10].mxu0 }
 0x10d   : > { %v3162_v58 = vpop.f32.mrb[11].mxu1  ;;  %v3138_v59 = vpop.f32.mrb[11].mxu0 }
 0x10e   : > { %v4454_v61 = vadd.f32 %v3162_v58, %v3161_v54  ;;  %v4456_v62 = vadd.f32 %v3138_v59, %v3137_v57  ;;  %v1870_v59 = vadd.f32 %v4437_v40, %v4475_v21 }
 0x10f   : > { %2433 = vmatmul.mubr.bf16.gmra.mrb[116].mxu1 %v3903_v51 }
 0x110   : > { %2440 = vmatprep.mubr.bf16.mxu1 %v3905_v56 }
 0x111   : > { %3588 = vmatmul.mubr.bf16.gmra.mrb[116].mxu0 %v3908_v60 }
 0x112   : > { %v3164_v63 = vpop.f32.mrb[12].mxu1  ;;  %v3140_v1 = vpop.f32.mrb[12].mxu0  ;;  %3591 = vmatprep.mubr.msk.bf16.mxu0 %vm3938_vm0, %v3937_v0 }
 0x113   : > { %v3165_v2 = vpop.f32.mrb[13].mxu1  ;;  %v3141_v4 = vpop.f32.mrb[13].mxu0 }
 0x114   : > { %v4461_v5 = vadd.f32 %v3165_v2, %v3164_v63  ;;  %v3167_v6 = vpop.f32.mrb[14].mxu1  ;;  %v4463_v7 = vadd.f32 %v3141_v4, %v3140_v1  ;;  %v3143_v9 = vpop.f32.mrb[14].mxu0 }
 0x115   : > { %v3168_v10 = vpop.f32.mrb[15].mxu1  ;;  %v3144_v11 = vpop.f32.mrb[15].mxu0 }
 0x116   : > { %v4467_v13 = vadd.f32 %v3168_v10, %v3167_v6  ;;  %v4469_v14 = vadd.f32 %v3144_v11, %v3143_v9 }
 0x117   : > { %2441 = vmatmul.mubr.bf16.gmra.mrb[120].mxu1 %v3907_v3  ;;  %v1873_v3 = vadd.f32 %v4443_v47, %v4475_v21 }
 0x118   : > { %2448 = vmatprep.mubr.bf16.mxu1 %v3909_v8 }
 0x119   : > { %3592 = vmatmul.mubr.bf16.gmra.mrb[120].mxu0 %v3912_v12 }
 0x11a   : > { %v3170_v0 = vpop.f32.mrb[16].mxu1 }
 0x11b   : > { %v3171_v15 = vpop.f32.mrb[17].mxu1  ;;  %v3262_v17 = vpop.f32.mrb[16].mxu0 }
 0x11c   : > { %v3172_v18 = vadd.f32 %v3171_v15, %v3170_v0  ;;  %v3173_v19 = vpop.f32.mrb[18].mxu1  ;;  %v3263_v20 = vpop.f32.mrb[17].mxu0 }
 0x11d   : > { %v3174_v22 = vpop.f32.mrb[19].mxu1  ;;  %v3264_v24 = vadd.f32 %v3263_v20, %v3262_v17  ;;  %v3265_v26 = vpop.f32.mrb[18].mxu0  ;;  %v1878_v17 = vadd.f32 %v4450_v55, %v4475_v21 }
 0x11e   : > { %v4478_v27 = vadd.f32 %v3172_v18, %v4475_v21  ;;  %v3175_v28 = vadd.f32 %v3174_v22, %v3173_v19  ;;  %v3266_v29 = vpop.f32.mrb[19].mxu0 }
 0x11f   : > { %2449 = vmatmul.mubr.bf16.gmra.mrb[124].mxu1 %v3911_v16  ;;  %v3267_v30 = vadd.f32 %v3266_v29, %v3265_v26 }
 0x120   : > { %v4481_v33 = vadd.f32 %v3175_v28, %v4475_v21 }
 0x122   : > { %v3192_v34 = vpop.f32.mrb[20].mxu1 }
 0x123   : > { %v3193_v35 = vpop.f32.mrb[21].mxu1 }
 0x124   : > { %v3194_v37 = vadd.f32 %v3193_v35, %v3192_v34  ;;  %v3195_v39 = vpop.f32.mrb[22].mxu1  ;;  %v3268_v41 = vpop.f32.mrb[20].mxu0 }
 0x125   : > { %v3196_v42 = vpop.f32.mrb[23].mxu1  ;;  %v3269_v43 = vpop.f32.mrb[21].mxu0 }
 0x126   : > { %v1967_v45 = vadd.f32 %v3194_v37, %v1862_v36  ;;  %v3197_v48 = vadd.f32 %v3196_v42, %v3195_v39  ;;  %v3270_v49 = vadd.f32 %v3269_v43, %v3268_v41  ;;  %v3271_v50 = vpop.f32.mrb[22].mxu0  ;;  %v1886_v42 = vadd.f32 %v4463_v7, %v4475_v21 }
 0x127   : > { %v3272_v51 = vpop.f32.mrb[23].mxu0 }
 0x128   : > { %v1970_v52 = vadd.f32 %v3197_v48, %v1865_v44  ;;  %v4487_v54 = vadd.f32 %v3264_v24, %v1967_v45  ;;  %v3273_v56 = vadd.f32 %v3272_v51, %v3271_v50  ;;  %v1881_v24 = vadd.f32 %v4456_v62, %v4475_v21 }
 0x12a   : > { %v4489_v57 = vadd.f32 %v3267_v30, %v1970_v52  ;;  %v3198_v25 = vpop.f32.mrb[24].mxu1 }
 0x12b   : > { %v3199_v58 = vpop.f32.mrb[25].mxu1 }
 0x12c   : > { %v3200_v60 = vadd.f32 %v3199_v58, %v3198_v25  ;;  %v3201_v63 = vpop.f32.mrb[26].mxu1  ;;  %v3274_v1 = vpop.f32.mrb[24].mxu0 }
 0x12d   : > { %v3202_v32 = vpop.f32.mrb[27].mxu1  ;;  %v3275_v2 = vpop.f32.mrb[25].mxu0 }
 0x12e   : > { %v1975_v4 = vadd.f32 %v3200_v60, %v1870_v59  ;;  %v3203_v6 = vadd.f32 %v3202_v32, %v3201_v63  ;;  %v3276_v8 = vadd.f32 %v3275_v2, %v3274_v1  ;;  %v3277_v9 = vpop.f32.mrb[26].mxu0  ;;  %v1894_v32 = vadd.f32 %v4422_v23, %v4475_v21 }
 0x12f   : > { %v3278_v10 = vpop.f32.mrb[27].mxu0 }
 0x130   : > { %v1978_v11 = vadd.f32 %v3203_v6, %v1873_v3  ;;  %v4495_v12 = vadd.f32 %v3270_v49, %v1975_v4  ;;  %v3279_v0 = vadd.f32 %v3278_v10, %v3277_v9  ;;  %v1889_v49 = vadd.f32 %v4469_v14, %v4475_v21 }
 0x132   : > { %v4497_v15 = vadd.f32 %v3273_v56, %v1978_v11  ;;  %v3204_v40 = vpop.f32.mrb[28].mxu1 }
 0x133   : > { %v3205_v16 = vpop.f32.mrb[29].mxu1 }
 0x134   : > { %v3206_v18 = vadd.f32 %v3205_v16, %v3204_v40  ;;  %v3207_v19 = vpop.f32.mrb[30].mxu1  ;;  %v3280_v20 = vpop.f32.mrb[28].mxu0 }
 0x135   : > { %v3208_v47 = vpop.f32.mrb[31].mxu1  ;;  %v3281_v22 = vpop.f32.mrb[29].mxu0 }
 0x136   : > { %v1983_v26 = vadd.f32 %v3206_v18, %v1878_v17  ;;  %v3209_v28 = vadd.f32 %v3208_v47, %v3207_v19  ;;  %v3282_v29 = vadd.f32 %v3281_v22, %v3280_v20  ;;  %v3283_v30 = vpop.f32.mrb[30].mxu0  ;;  %v1902_v47 = vadd.f32 %v4435_v38, %v4475_v21 }
 0x137   : > { %v3284_v34 = vpop.f32.mrb[31].mxu0 }
 0x138   : > { %v1986_v35 = vadd.f32 %v3209_v28, %v1881_v24  ;;  %v4503_v36 = vadd.f32 %v3276_v8, %v1983_v26  ;;  %v3285_v37 = vadd.f32 %v3284_v34, %v3283_v30  ;;  %v1897_v8 = vadd.f32 %v4428_v31, %v4475_v21 }
 0x13a   : > { %v4505_v39 = vadd.f32 %v3279_v0, %v1986_v35  ;;  %v3210_v55 = vpop.f32.mrb[32].mxu1 }
 0x13b   : > { %v3211_v41 = vpop.f32.mrb[33].mxu1 }
 0x13c   : > { %v3212_v43 = vadd.f32 %v3211_v41, %v3210_v55  ;;  %v3213_v44 = vpop.f32.mrb[34].mxu1  ;;  %v3286_v45 = vpop.f32.mrb[32].mxu0 }
 0x13d   : > { %v3214_v62 = vpop.f32.mrb[35].mxu1  ;;  %v3287_v48 = vpop.f32.mrb[33].mxu0 }
 0x13e   : > { %v1991_v50 = vadd.f32 %v3212_v43, %v1886_v42  ;;  %v3215_v51 = vadd.f32 %v3214_v62, %v3213_v44  ;;  %v3288_v52 = vadd.f32 %v3287_v48, %v3286_v45  ;;  %v3289_v56 = vpop.f32.mrb[34].mxu0  ;;  %v1910_v62 = vadd.f32 %v4448_v53, %v4475_v21 }
 0x13f   : > { %v3290_v25 = vpop.f32.mrb[35].mxu0 }
 0x140   : > { %v1994_v58 = vadd.f32 %v3215_v51, %v1889_v49  ;;  %v4511_v59 = vadd.f32 %v3282_v29, %v1991_v50  ;;  %v3291_v60 = vadd.f32 %v3290_v25, %v3289_v56  ;;  %v1905_v29 = vadd.f32 %v4441_v46, %v4475_v21 }
 0x142   : > { %v4513_v63 = vadd.f32 %v3285_v37, %v1994_v58  ;;  %v3216_v7 = vpop.f32.mrb[36].mxu1 }
 0x143   : > { %v3217_v1 = vpop.f32.mrb[37].mxu1 }
 0x144   : > { %v3218_v2 = vadd.f32 %v3217_v1, %v3216_v7  ;;  %v3219_v3 = vpop.f32.mrb[38].mxu1  ;;  %v3292_v4 = vpop.f32.mrb[36].mxu0 }
 0x145   : > { %v3220_v14 = vpop.f32.mrb[39].mxu1  ;;  %v3293_v6 = vpop.f32.mrb[37].mxu0 }
 0x146   : > { %v1999_v9 = vadd.f32 %v3218_v2, %v1894_v32  ;;  %v3221_v10 = vadd.f32 %v3220_v14, %v3219_v3  ;;  %v3294_v11 = vadd.f32 %v3293_v6, %v3292_v4  ;;  %v3295_v0 = vpop.f32.mrb[38].mxu0  ;;  %v1918_v14 = vadd.f32 %v4461_v5, %v4475_v21 }
 0x147   : > { %v3296_v40 = vpop.f32.mrb[39].mxu0 }
 0x148   : > { %v2002_v16 = vadd.f32 %v3221_v10, %v1897_v8  ;;  %v4519_v17 = vadd.f32 %v3288_v52, %v1999_v9  ;;  %v3297_v18 = vadd.f32 %v3296_v40, %v3295_v0  ;;  %v1913_v52 = vadd.f32 %v4454_v61, %v4475_v21 }
 0x14a   : > { %v4521_v19 = vadd.f32 %v3291_v60, %v2002_v16  ;;  %v3222_v23 = vpop.f32.mrb[40].mxu1 }
 0x14b   : > { %v3223_v20 = vpop.f32.mrb[41].mxu1 }
 0x14c   : > { %v3224_v22 = vadd.f32 %v3223_v20, %v3222_v23  ;;  %v3225_v24 = vpop.f32.mrb[42].mxu1  ;;  %v3298_v26 = vpop.f32.mrb[40].mxu0 }
 0x14d   : > { %v3226_v31 = vpop.f32.mrb[43].mxu1  ;;  %v3299_v28 = vpop.f32.mrb[41].mxu0 }
 0x14e   : > { %v2007_v30 = vadd.f32 %v3224_v22, %v1902_v47  ;;  %v3227_v34 = vadd.f32 %v3226_v31, %v3225_v24  ;;  %v3300_v35 = vadd.f32 %v3299_v28, %v3298_v26  ;;  %v3301_v37 = vpop.f32.mrb[42].mxu0 }
 0x14f   : > { %v3302_v55 = vpop.f32.mrb[43].mxu0 }
 0x150   : > { %v2010_v41 = vadd.f32 %v3227_v34, %v1905_v29  ;;  %v4527_v42 = vadd.f32 %v3294_v11, %v2007_v30  ;;  %v3303_v43 = vadd.f32 %v3302_v55, %v3301_v37  ;;  %v1921_v11 = vadd.f32 %v4467_v13, %v4475_v21 }
 0x152   : > { %v4529_v44 = vadd.f32 %v3297_v18, %v2010_v41  ;;  %v3228_v38 = vpop.f32.mrb[44].mxu1 }
 0x153   : > { %v3229_v45 = vpop.f32.mrb[45].mxu1 }
 0x154   : > { %v3230_v48 = vadd.f32 %v3229_v45, %v3228_v38  ;;  %v3231_v49 = vpop.f32.mrb[46].mxu1  ;;  %v3304_v50 = vpop.f32.mrb[44].mxu0 }
 0x155   : > { %v3232_v46 = vpop.f32.mrb[47].mxu1  ;;  %v3305_v51 = vpop.f32.mrb[45].mxu0 }
 0x156   : > { %v2015_v56 = vadd.f32 %v3230_v48, %v1910_v62  ;;  %v3233_v25 = vadd.f32 %v3232_v46, %v3231_v49  ;;  %v3306_v58 = vadd.f32 %v3305_v51, %v3304_v50  ;;  %v3307_v60 = vpop.f32.mrb[46].mxu0 }
 0x157   : > { %v3308_v7 = vpop.f32.mrb[47].mxu0 }
 0x158   : > { %v2018_v1 = vadd.f32 %v3233_v25, %v1913_v52  ;;  %v4535_v32 = vadd.f32 %v3300_v35, %v2015_v56  ;;  %v3309_v2 = vadd.f32 %v3308_v7, %v3307_v60 }
 0x15a   : > { %v4537_v3 = vadd.f32 %v3303_v43, %v2018_v1  ;;  %v3234_v53 = vpop.f32.mrb[48].mxu1 }
 0x15b   : > { %v3235_v4 = vpop.f32.mrb[49].mxu1 }
 0x15c   : > { %v3236_v6 = vadd.f32 %v3235_v4, %v3234_v53  ;;  %v3237_v8 = vpop.f32.mrb[50].mxu1  ;;  %v3310_v9 = vpop.f32.mrb[48].mxu0 }
 0x15d   : > { %v3238_v61 = vpop.f32.mrb[51].mxu1  ;;  %v3311_v10 = vpop.f32.mrb[49].mxu0 }
 0x15e   : > { %v2023_v0 = vadd.f32 %v3236_v6, %v1918_v14  ;;  %v3239_v40 = vadd.f32 %v3238_v61, %v3237_v8  ;;  %v3312_v16 = vadd.f32 %v3311_v10, %v3310_v9  ;;  %v3313_v18 = vpop.f32.mrb[50].mxu0 }
 0x15f   : > { %v3314_v23 = vpop.f32.mrb[51].mxu0 }
 0x160   : > { %v2026_v20 = vadd.f32 %v3239_v40, %v1921_v11  ;;  %v4543_v47 = vadd.f32 %v3306_v58, %v2023_v0  ;;  %v3315_v22 = vadd.f32 %v3314_v23, %v3313_v18 }
 0x162   : > { %v4545_v24 = vadd.f32 %v3309_v2, %v2026_v20  ;;  %v3240_v5 = vpop.f32.mrb[52].mxu1 }
 0x163   : > { %v3241_v26 = vpop.f32.mrb[53].mxu1 }
 0x164   : > { %v3242_v31 = vadd.f32 %v3241_v26, %v3240_v5  ;;  %v3243_v28 = vpop.f32.mrb[54].mxu1  ;;  %v3402_v29 = vpop.f32.mrb[52].mxu0 }
 0x165   : > { %v3244_v30 = vpop.f32.mrb[55].mxu1  ;;  %v3403_v34 = vpop.f32.mrb[53].mxu0 }
 0x166   : > { %v2031_v13 = vadd.f32 %v3242_v31, %v4478_v27  ;;  %v3245_v21 = vadd.f32 %v3244_v30, %v3243_v28  ;;  %v3404_v35 = vadd.f32 %v3403_v34, %v3402_v29  ;;  %v3405_v37 = vpop.f32.mrb[54].mxu0 }
 0x167   : > { %v3406_v55 = vpop.f32.mrb[55].mxu0 }
 0x168   : > { %v2034_v41 = vadd.f32 %v3245_v21, %v4481_v33  ;;  %v4549_v43 = vadd.f32 %v3312_v16, %v2031_v13  ;;  %v3407_v38 = vadd.f32 %v3406_v55, %v3405_v37 }
 0x16a   : > { %v4551_v45 = vadd.f32 %v3315_v22, %v2034_v41  ;;  %v3332_v62 = vpop.f32.mrb[56].mxu1 }
 0x16b   : > { %v3333_v48 = vpop.f32.mrb[57].mxu1 }
 0x16c   : > { %v3334_v49 = vadd.f32 %v3333_v48, %v3332_v62  ;;  %v3335_v50 = vpop.f32.mrb[58].mxu1  ;;  %v3408_v46 = vpop.f32.mrb[56].mxu0 }
 0x16d   : > { %v3336_v51 = vpop.f32.mrb[59].mxu1  ;;  %v3409_v52 = vpop.f32.mrb[57].mxu0 }
 0x16e   : > { %v2177_v27 = vadd.f32 %v3334_v49, %v4487_v54  ;;  %v3337_v56 = vadd.f32 %v3336_v51, %v3335_v50  ;;  %v3410_v25 = vadd.f32 %v3409_v52, %v3408_v46  ;;  %v3411_v58 = vpop.f32.mrb[58].mxu0 }
 0x16f   : > { %v3412_v60 = vpop.f32.mrb[59].mxu0 }
 0x170   : > { %v2180_v33 = vadd.f32 %v3337_v56, %v4489_v57  ;;  %v4555_v7 = vadd.f32 %v3404_v35, %v2177_v27  ;;  %v3413_v1 = vadd.f32 %v3412_v60, %v3411_v58 }
 0x172   : > { %v4557_v2 = vadd.f32 %v3407_v38, %v2180_v33  ;;  %v3338_v53 = vpop.f32.mrb[60].mxu1 }
 0x173   : > { %v3339_v4 = vpop.f32.mrb[61].mxu1 }
 0x174   : > { %v3340_v14 = vadd.f32 %v3339_v4, %v3338_v53  ;;  %v3341_v6 = vpop.f32.mrb[62].mxu1  ;;  %v3414_v8 = vpop.f32.mrb[60].mxu0 }
 0x175   : > { %v3342_v9 = vpop.f32.mrb[63].mxu1  ;;  %v3415_v61 = vpop.f32.mrb[61].mxu0 }
 0x176   : > { %v2185_v54 = vadd.f32 %v3340_v14, %v4495_v12  ;;  %v3343_v10 = vadd.f32 %v3342_v9, %v3341_v6  ;;  %v3416_v11 = vadd.f32 %v3415_v61, %v3414_v8  ;;  %v3417_v0 = vpop.f32.mrb[62].mxu0 }
 0x177   : > { %v3418_v40 = vpop.f32.mrb[63].mxu0 }
 0x178   : > { %v2188_v57 = vadd.f32 %v3343_v10, %v4497_v15  ;;  %v4561_v16 = vadd.f32 %v3410_v25, %v2185_v54  ;;  %v3419_v18 = vadd.f32 %v3418_v40, %v3417_v0 }
 0x17a   : > { %v4563_v23 = vadd.f32 %v3413_v1, %v2188_v57  ;;  %v3344_v20 = vpop.f32.mrb[64].mxu1 }
 0x17b   : > { %v3345_v22 = vpop.f32.mrb[65].mxu1 }
 0x17c   : > { %v3346_v5 = vadd.f32 %v3345_v22, %v3344_v20  ;;  %v3347_v26 = vpop.f32.mrb[66].mxu1  ;;  %v3420_v31 = vpop.f32.mrb[64].mxu0 }
 0x17d   : > { %v3348_v28 = vpop.f32.mrb[67].mxu1  ;;  %v3421_v29 = vpop.f32.mrb[65].mxu0 }
 0x17e   : > { %v2193_v12 = vadd.f32 %v3346_v5, %v4503_v36  ;;  %v3349_v30 = vadd.f32 %v3348_v28, %v3347_v26  ;;  %v3422_v34 = vadd.f32 %v3421_v29, %v3420_v31  ;;  %v3423_v13 = vpop.f32.mrb[66].mxu0 }
 0x17f   : > { %v3424_v21 = vpop.f32.mrb[67].mxu0 }
 0x180   : > { %v2196_v15 = vadd.f32 %v3349_v30, %v4505_v39  ;;  %v4567_v35 = vadd.f32 %v3416_v11, %v2193_v12  ;;  %v3425_v37 = vadd.f32 %v3424_v21, %v3423_v13 }
 0x182   : > { %v4569_v55 = vadd.f32 %v3419_v18, %v2196_v15  ;;  %v3350_v41 = vpop.f32.mrb[68].mxu1 }
 0x183   : > { %v3351_v38 = vpop.f32.mrb[69].mxu1 }
 0x184   : > { %v3352_v62 = vadd.f32 %v3351_v38, %v3350_v41  ;;  %v3353_v48 = vpop.f32.mrb[70].mxu1  ;;  %v3426_v49 = vpop.f32.mrb[68].mxu0 }
 0x185   : > { %v3354_v50 = vpop.f32.mrb[71].mxu1  ;;  %v3427_v46 = vpop.f32.mrb[69].mxu0 }
 0x186   : > { %v2201_v36 = vadd.f32 %v3352_v62, %v4511_v59  ;;  %v3355_v51 = vadd.f32 %v3354_v50, %v3353_v48  ;;  %v3428_v52 = vadd.f32 %v3427_v46, %v3426_v49  ;;  %v3429_v27 = vpop.f32.mrb[70].mxu0 }
 0x187   : > { %v3430_v56 = vpop.f32.mrb[71].mxu0 }
 0x188   : > { %v2204_v39 = vadd.f32 %v3355_v51, %v4513_v63  ;;  %v4573_v25 = vadd.f32 %v3422_v34, %v2201_v36  ;;  %v3431_v58 = vadd.f32 %v3430_v56, %v3429_v27 }
 0x18a   : > { %v4575_v60 = vadd.f32 %v3425_v37, %v2204_v39  ;;  %v3356_v33 = vpop.f32.mrb[72].mxu1 }
 0x18b   : > { %v3357_v1 = vpop.f32.mrb[73].mxu1 }
 0x18c   : > { %v3358_v53 = vadd.f32 %v3357_v1, %v3356_v33  ;;  %v3359_v4 = vpop.f32.mrb[74].mxu1  ;;  %v3432_v14 = vpop.f32.mrb[72].mxu0 }
 0x18d   : > { %v3360_v6 = vpop.f32.mrb[75].mxu1  ;;  %v3433_v8 = vpop.f32.mrb[73].mxu0 }
 0x18e   : > { %v2209_v59 = vadd.f32 %v3358_v53, %v4519_v17  ;;  %v3361_v9 = vadd.f32 %v3360_v6, %v3359_v4  ;;  %v3434_v61 = vadd.f32 %v3433_v8, %v3432_v14  ;;  %v3435_v54 = vpop.f32.mrb[74].mxu0 }
 0x18f   : > { %v3436_v10 = vpop.f32.mrb[75].mxu0 }
 0x190   : > { %v2212_v63 = vadd.f32 %v3361_v9, %v4521_v19  ;;  %v4579_v11 = vadd.f32 %v3428_v52, %v2209_v59  ;;  %v3437_v0 = vadd.f32 %v3436_v10, %v3435_v54 }
 0x192   : > { %v4581_v40 = vadd.f32 %v3431_v58, %v2212_v63  ;;  %v3362_v57 = vpop.f32.mrb[76].mxu1 }
 0x193   : > { %v3363_v18 = vpop.f32.mrb[77].mxu1 }
 0x194   : > { %v3364_v20 = vadd.f32 %v3363_v18, %v3362_v57  ;;  %v3365_v22 = vpop.f32.mrb[78].mxu1  ;;  %v3438_v5 = vpop.f32.mrb[76].mxu0 }
 0x195   : > { %v3366_v26 = vpop.f32.mrb[79].mxu1  ;;  %v3439_v31 = vpop.f32.mrb[77].mxu0 }
 0x196   : > { %v2217_v17 = vadd.f32 %v3364_v20, %v4527_v42  ;;  %v3367_v28 = vadd.f32 %v3366_v26, %v3365_v22  ;;  %v3440_v29 = vadd.f32 %v3439_v31, %v3438_v5  ;;  %v3441_v12 = vpop.f32.mrb[78].mxu0 }
 0x197   : > { %v3442_v30 = vpop.f32.mrb[79].mxu0 }
 0x198   : > { %v2220_v19 = vadd.f32 %v3367_v28, %v4529_v44  ;;  %v4585_v34 = vadd.f32 %v3434_v61, %v2217_v17  ;;  %v3443_v13 = vadd.f32 %v3442_v30, %v3441_v12 }
 0x19a   : > { %v4587_v21 = vadd.f32 %v3437_v0, %v2220_v19  ;;  %v3368_v15 = vpop.f32.mrb[80].mxu1 }
 0x19b   : > { %v3369_v37 = vpop.f32.mrb[81].mxu1 }
 0x19c   : > { %v3370_v41 = vadd.f32 %v3369_v37, %v3368_v15  ;;  %v3371_v38 = vpop.f32.mrb[82].mxu1  ;;  %v3444_v62 = vpop.f32.mrb[80].mxu0 }
 0x19d   : > { %v3372_v48 = vpop.f32.mrb[83].mxu1  ;;  %v3445_v49 = vpop.f32.mrb[81].mxu0 }
 0x19e   : > { %v2225_v42 = vadd.f32 %v3370_v41, %v4535_v32  ;;  %v3373_v50 = vadd.f32 %v3372_v48, %v3371_v38  ;;  %v3446_v46 = vadd.f32 %v3445_v49, %v3444_v62  ;;  %v3447_v36 = vpop.f32.mrb[82].mxu0 }
 0x19f   : > { %v3448_v51 = vpop.f32.mrb[83].mxu0 }
 0x1a0   : > { %v2228_v44 = vadd.f32 %v3373_v50, %v4537_v3  ;;  %v4591_v52 = vadd.f32 %v3440_v29, %v2225_v42  ;;  %v3449_v27 = vadd.f32 %v3448_v51, %v3447_v36 }
 0x1a2   : > { %v4593_v56 = vadd.f32 %v3443_v13, %v2228_v44  ;;  %v3374_v39 = vpop.f32.mrb[84].mxu1 }
 0x1a3   : > { %v3375_v58 = vpop.f32.mrb[85].mxu1 }
 0x1a4   : > { %v3376_v33 = vadd.f32 %v3375_v58, %v3374_v39  ;;  %v3377_v1 = vpop.f32.mrb[86].mxu1  ;;  %v3450_v53 = vpop.f32.mrb[84].mxu0 }
 0x1a5   : > { %v3378_v4 = vpop.f32.mrb[87].mxu1  ;;  %v3451_v14 = vpop.f32.mrb[85].mxu0 }
 0x1a6   : > { %v2233_v32 = vadd.f32 %v3376_v33, %v4543_v47  ;;  %v3379_v6 = vadd.f32 %v3378_v4, %v3377_v1  ;;  %v3452_v8 = vadd.f32 %v3451_v14, %v3450_v53  ;;  %v3453_v59 = vpop.f32.mrb[86].mxu0 }
 0x1a7   : > { %v3454_v9 = vpop.f32.mrb[87].mxu0 }
 0x1a8   : > { %v2236_v3 = vadd.f32 %v3379_v6, %v4545_v24  ;;  %v4597_v61 = vadd.f32 %v3446_v46, %v2233_v32  ;;  %v3455_v54 = vadd.f32 %v3454_v9, %v3453_v59 }
 0x1aa   : > { %v4599_v10 = vadd.f32 %v3449_v27, %v2236_v3  ;;  %v3380_v63 = vpop.f32.mrb[88].mxu1 }
 0x1ab   : > { %v3381_v0 = vpop.f32.mrb[89].mxu1 }
 0x1ac   : > { %v3382_v57 = vadd.f32 %v3381_v0, %v3380_v63  ;;  %v3383_v18 = vpop.f32.mrb[90].mxu1  ;;  %v2491_v20 = vpop.f32.mrb[88].mxu0 }
 0x1ad   : > { %v3384_v22 = vpop.f32.mrb[91].mxu1  ;;  %v3561_v5 = vpop.f32.mrb[89].mxu0 }
 0x1ae   : > { %v2241_v47 = vadd.f32 %v3382_v57, %v4549_v43  ;;  %v3385_v26 = vadd.f32 %v3384_v22, %v3383_v18  ;;  %v2494_v31 = vpop.f32.mrb[90].mxu0 }
 0x1af   : > { %v3562_v17 = vpop.f32.mrb[91].mxu0 }
 0x1b0   : > { %v2244_v28 = vadd.f32 %v3385_v26, %v4551_v45  ;;  %v4603_v24 = vadd.f32 %v3452_v8, %v2241_v47 }
 0x1b2   : > { %v4605_v29 = vadd.f32 %v3455_v54, %v2244_v28  ;;  %v3472_v12 = vpop.f32.mrb[92].mxu1 }
 0x1b3   : > { %v3473_v30 = vpop.f32.mrb[93].mxu1 }
 0x1b4   : > { %v3474_v19 = vadd.f32 %v3473_v30, %v3472_v12  ;;  %v3475_v13 = vpop.f32.mrb[94].mxu1  ;;  %v2499_v15 = vpop.f32.mrb[92].mxu0 }
 0x1b5   : > { %v3476_v37 = vpop.f32.mrb[95].mxu1  ;;  %v3565_v41 = vpop.f32.mrb[93].mxu0 }
 0x1b6   : > { %v3477_v38 = vadd.f32 %v3476_v37, %v3475_v13  ;;  %v2387_v43 = vadd.f32 %v3474_v19, %v4555_v7  ;;  %v2502_v62 = vpop.f32.mrb[94].mxu0 }
 0x1b7   : > { %v3566_v48 = vpop.f32.mrb[95].mxu0 }
 0x1b8   : > { %v2492_v49 = vadd.f32 %v2491_v20, %v2387_v43  ;;  %v2390_v45 = vadd.f32 %v3477_v38, %v4557_v2 }
 0x1ba   : > { %v2495_v42 = vadd.f32 %v2494_v31, %v2390_v45  ;;  %v3478_v50 = vpop.f32.mrb[96].mxu1  ;;  %v2562_v36 = vmax.f32 %v2492_v49, 0.0 }
 0x1bb   : > { %v3479_v46 = vpop.f32.mrb[97].mxu1 }
 0x1bc   : > { %v2563_v51 = vmax.f32 %v2495_v42, 0.0  ;;  %v3480_v44 = vadd.f32 %v3479_v46, %v3478_v50  ;;  %v3481_v27 = vpop.f32.mrb[98].mxu1  ;;  %v2507_v39 = vpop.f32.mrb[96].mxu0 }
 0x1bd   : > { %v3482_v7 = vpop.f32.mrb[99].mxu1  ;;  %v3569_v58 = vpop.f32.mrb[97].mxu0 }
 0x1be   : > { %v3056_v33 = vpack.c.bf16 %v2563_v51, %v2562_v36  ;;  %v3483_v1 = vadd.f32 %v3482_v7, %v3481_v27  ;;  %v2395_v2 = vadd.f32 %v3480_v44, %v4561_v16  ;;  %v2510_v53 = vpop.f32.mrb[98].mxu0 }
 0x1bf   : > { %v3570_v4 = vpop.f32.mrb[99].mxu0 }
 0x1c0   : > { %3057 = vst [vmem:[%s4613_s7] sm:$0xff] %v3056_v33   ;;  %v2500_v14 = vadd.f32 %v2499_v15, %v2395_v2  ;;  %v2398_v32 = vadd.f32 %v3483_v1, %v4563_v23 }
 0x1c2   : > { %v2503_v6 = vadd.f32 %v2502_v62, %v2398_v32  ;;  %v3484_v8 = vpop.f32.mrb[100].mxu1  ;;  %v2564_v9 = vmax.f32 %v2500_v14, 0.0 }
 0x1c3   : > { %v3485_v59 = vpop.f32.mrb[101].mxu1 }
 0x1c4   : > { %v2565_v3 = vmax.f32 %v2503_v6, 0.0  ;;  %v3486_v54 = vadd.f32 %v3485_v59, %v3484_v8  ;;  %v3487_v63 = vpop.f32.mrb[102].mxu1  ;;  %v2515_v0 = vpop.f32.mrb[100].mxu0 }
 0x1c5   : > { %v3488_v57 = vpop.f32.mrb[103].mxu1  ;;  %v3573_v18 = vpop.f32.mrb[101].mxu0 }
 0x1c6   : > { %v3061_v20 = vpack.c.bf16 %v2565_v3, %v2564_v9  ;;  %v3489_v22 = vadd.f32 %v3488_v57, %v3487_v63  ;;  %v2403_v16 = vadd.f32 %v3486_v54, %v4567_v35  ;;  %v2518_v5 = vpop.f32.mrb[102].mxu0 }
 0x1c7   : > { %v3574_v47 = vpop.f32.mrb[103].mxu0 }
 0x1c8   : > { %3098 = vst [vmem:[%s4613_s7 + $0x8] sm:$0xff] %v3061_v20   ;;  %v2508_v26 = vadd.f32 %v2507_v39, %v2403_v16  ;;  %v2406_v23 = vadd.f32 %v3489_v22, %v4569_v55 }
 0x1ca   : > { %v2511_v31 = vadd.f32 %v2510_v53, %v2406_v23  ;;  %v3490_v17 = vpop.f32.mrb[104].mxu1  ;;  %v2566_v12 = vmax.f32 %v2508_v26, 0.0 }
 0x1cb   : > { %v3491_v28 = vpop.f32.mrb[105].mxu1 }
 0x1cc   : > { %v2567_v30 = vmax.f32 %v2511_v31, 0.0  ;;  %v3492_v19 = vadd.f32 %v3491_v28, %v3490_v17  ;;  %v3493_v13 = vpop.f32.mrb[106].mxu1  ;;  %v2523_v15 = vpop.f32.mrb[104].mxu0 }
 0x1cd   : > { %v3494_v37 = vpop.f32.mrb[107].mxu1  ;;  %v3577_v41 = vpop.f32.mrb[105].mxu0 }
 0x1ce   : > { %v3066_v38 = vpack.c.bf16 %v2567_v30, %v2566_v12  ;;  %v3495_v43 = vadd.f32 %v3494_v37, %v3493_v13  ;;  %v2411_v35 = vadd.f32 %v3492_v19, %v4573_v25  ;;  %v2526_v62 = vpop.f32.mrb[106].mxu0 }
 0x1cf   : > { %v3578_v48 = vpop.f32.mrb[107].mxu0 }
 0x1d0   : > { %3099 = vst [vmem:[%s4613_s7 + $0x10] sm:$0xff] %v3066_v38   ;;  %v2516_v49 = vadd.f32 %v2515_v0, %v2411_v35  ;;  %v2414_v55 = vadd.f32 %v3495_v43, %v4575_v60 }
 0x1d2   : > { %v2519_v45 = vadd.f32 %v2518_v5, %v2414_v55  ;;  %v3496_v42 = vpop.f32.mrb[108].mxu1  ;;  %v2568_v46 = vmax.f32 %v2516_v49, 0.0 }
 0x1d3   : > { %v3497_v50 = vpop.f32.mrb[109].mxu1 }
 0x1d4   : > { %v2569_v36 = vmax.f32 %v2519_v45, 0.0  ;;  %v3498_v51 = vadd.f32 %v3497_v50, %v3496_v42  ;;  %v3499_v44 = vpop.f32.mrb[110].mxu1  ;;  %v2531_v27 = vpop.f32.mrb[108].mxu0 }
 0x1d5   : > { %v3500_v39 = vpop.f32.mrb[111].mxu1  ;;  %v3581_v7 = vpop.f32.mrb[109].mxu0 }
 0x1d6   : > { %v3071_v58 = vpack.c.bf16 %v2569_v36, %v2568_v46  ;;  %v3501_v33 = vadd.f32 %v3500_v39, %v3499_v44  ;;  %v2419_v25 = vadd.f32 %v3498_v51, %v4579_v11  ;;  %v2534_v1 = vpop.f32.mrb[110].mxu0 }
 0x1d7   : > { %v3582_v2 = vpop.f32.mrb[111].mxu0 }
 0x1d8   : > { %3100 = vst [vmem:[%s4613_s7 + $0x18] sm:$0xff] %v3071_v58   ;;  %v2524_v53 = vadd.f32 %v2523_v15, %v2419_v25  ;;  %v2422_v60 = vadd.f32 %v3501_v33, %v4581_v40 }
 0x1da   : > { %v2527_v4 = vadd.f32 %v2526_v62, %v2422_v60  ;;  %v3502_v14 = vpop.f32.mrb[112].mxu1  ;;  %v2570_v6 = vmax.f32 %v2524_v53, 0.0 }
 0x1db   : > { %v3503_v32 = vpop.f32.mrb[113].mxu1 }
 0x1dc   : > { %v2571_v8 = vmax.f32 %v2527_v4, 0.0  ;;  %v3504_v59 = vadd.f32 %v3503_v32, %v3502_v14  ;;  %v3505_v9 = vpop.f32.mrb[114].mxu1  ;;  %v2539_v3 = vpop.f32.mrb[112].mxu0 }
 0x1dd   : > { %v3506_v54 = vpop.f32.mrb[115].mxu1  ;;  %v3585_v63 = vpop.f32.mrb[113].mxu0 }
 0x1de   : > { %v3076_v0 = vpack.c.bf16 %v2571_v8, %v2570_v6  ;;  %v3507_v57 = vadd.f32 %v3506_v54, %v3505_v9  ;;  %v2427_v11 = vadd.f32 %v3504_v59, %v4585_v34  ;;  %v2542_v18 = vpop.f32.mrb[114].mxu0 }
 0x1df   : > { %v3586_v20 = vpop.f32.mrb[115].mxu0 }
 0x1e0   : > { %3101 = vst [vmem:[%s4613_s7 + $0x20] sm:$0xff] %v3076_v0   ;;  %v2532_v22 = vadd.f32 %v2531_v27, %v2427_v11  ;;  %v2430_v40 = vadd.f32 %v3507_v57, %v4587_v21 }
 0x1e2   : > { %v2535_v16 = vadd.f32 %v2534_v1, %v2430_v40  ;;  %v3508_v5 = vpop.f32.mrb[116].mxu1  ;;  %v2572_v26 = vmax.f32 %v2532_v22, 0.0 }
 0x1e3   : > { %v3509_v47 = vpop.f32.mrb[117].mxu1 }
 0x1e4   : > { %v2573_v23 = vmax.f32 %v2535_v16, 0.0  ;;  %v3510_v31 = vadd.f32 %v3509_v47, %v3508_v5  ;;  %v3511_v17 = vpop.f32.mrb[118].mxu1  ;;  %v2547_v28 = vpop.f32.mrb[116].mxu0 }
 0x1e5   : > { %v3512_v12 = vpop.f32.mrb[119].mxu1  ;;  %v3589_v30 = vpop.f32.mrb[117].mxu0 }
 0x1e6   : > { %v3081_v19 = vpack.c.bf16 %v2573_v23, %v2572_v26  ;;  %v3513_v13 = vadd.f32 %v3512_v12, %v3511_v17  ;;  %v2435_v34 = vadd.f32 %v3510_v31, %v4591_v52  ;;  %v2550_v15 = vpop.f32.mrb[118].mxu0 }
 0x1e7   : > { %v3590_v37 = vpop.f32.mrb[119].mxu0 }
 0x1e8   : > { %3102 = vst [vmem:[%s4613_s7 + $0x28] sm:$0xff] %v3081_v19   ;;  %v2540_v41 = vadd.f32 %v2539_v3, %v2435_v34  ;;  %v2438_v21 = vadd.f32 %v3513_v13, %v4593_v56 }
 0x1ea   : > { %v2543_v38 = vadd.f32 %v2542_v18, %v2438_v21  ;;  %v3514_v43 = vpop.f32.mrb[120].mxu1  ;;  %v2574_v62 = vmax.f32 %v2540_v41, 0.0 }
 0x1eb   : > { %v3515_v35 = vpop.f32.mrb[121].mxu1 }
 0x1ec   : > { %v2575_v48 = vmax.f32 %v2543_v38, 0.0  ;;  %v3516_v49 = vadd.f32 %v3515_v35, %v3514_v43  ;;  %v3517_v55 = vpop.f32.mrb[122].mxu1  ;;  %v2555_v45 = vpop.f32.mrb[120].mxu0 }
 0x1ed   : > { %v3518_v42 = vpop.f32.mrb[123].mxu1  ;;  %v3593_v50 = vpop.f32.mrb[121].mxu0 }
 0x1ee   : > { %v3086_v46 = vpack.c.bf16 %v2575_v48, %v2574_v62  ;;  %v3519_v36 = vadd.f32 %v3518_v42, %v3517_v55  ;;  %v2443_v52 = vadd.f32 %v3516_v49, %v4597_v61  ;;  %v2558_v51 = vpop.f32.mrb[122].mxu0 }
 0x1ef   : > { %v3594_v44 = vpop.f32.mrb[123].mxu0 }
 0x1f0   : > { %3103 = vst [vmem:[%s4613_s7 + $0x30] sm:$0xff] %v3086_v46   ;;  %v2548_v56 = vadd.f32 %v2547_v28, %v2443_v52  ;;  %v2446_v27 = vadd.f32 %v3519_v36, %v4599_v10 }
 0x1f2   : > { %v2551_v39 = vadd.f32 %v2550_v15, %v2446_v27  ;;  %v3520_v7 = vpop.f32.mrb[124].mxu1  ;;  %v2576_v33 = vmax.f32 %v2548_v56, 0.0 }
 0x1f3   : > { %v3521_v58 = vpop.f32.mrb[125].mxu1 }
 0x1f4   : > { %v2577_v25 = vmax.f32 %v2551_v39, 0.0  ;;  %v3522_v1 = vadd.f32 %v3521_v58, %v3520_v7  ;;  %v3523_v2 = vpop.f32.mrb[126].mxu1 }
 0x1f5   : > { %v3524_v53 = vpop.f32.mrb[127].mxu1 }
 0x1f6   : > { %v3091_v60 = vpack.c.bf16 %v2577_v25, %v2576_v33  ;;  %v3525_v4 = vadd.f32 %v3524_v53, %v3523_v2  ;;  %v2451_v61 = vadd.f32 %v3522_v1, %v4603_v24 }
 0x1f8   : > { %3104 = vst [vmem:[%s4613_s7 + $0x38] sm:$0xff] %v3091_v60   ;;  %v2556_v14 = vadd.f32 %v2555_v45, %v2451_v61  ;;  %v2454_v32 = vadd.f32 %v3525_v4, %v4605_v29 }
 0x1fa   : > { %v2559_v6 = vadd.f32 %v2558_v51, %v2454_v32  ;;  %v2578_v8 = vmax.f32 %v2556_v14, 0.0 }
 0x1fc   : > { %v2579_v10 = vmax.f32 %v2559_v6, 0.0 }
 0x1fe   : > { %v3096_v59 = vpack.c.bf16 %v2579_v10, %v2578_v8 }
 0x200   : > { %3105 = vst [vmem:[%s4613_s7 + $0x40] sm:$0xff] %v3096_v59  }
 0x201 PF: > { %s13_s14 = sadd.s32 1, %s3935_s14   ;;  %s4653_s12 = smov %s3931_s13 }
 0x202   : > { %p10_p5 = scmp.ge.s32.totalorder %s13_s14, 4   ;;  %s4654_s13 = smov %s4656_s15 }
 0x204   :  { %12 = sbr.rel (!%p10_p5) target bundleno = 2 (0x2), region = 68 }

// kernel: _lambda_.6
= control target key start
LH: loop header
LB: loop body
LE: loop exit
PB: predicated region body
PF: predicated region fallthrough
CT: control target
= control target key end

     0   :  { %s3333_s12 = smov 0   ;;  %s3335_s13 = smov 0   ;;  %s4250_s0 = inlined_call_operand.vmem [shape: bf16[288,1152], index: 0, kind: input, shape index: {}]   ;;  %s4251_s1 = inlined_call_operand.vmem [shape: bf16[1152,256], index: 1, kind: input, shape index: {}]   ;;  %s4252_s2 = inlined_call_operand.vmem [shape: f32[1,256], index: 2, kind: input, shape index: {}]   ;;  %s4253_s3 = inlined_call_operand.vmem [shape: f32[288,256], index: 3, kind: output, shape index: {}]  }
   0x1   :  { %s3337_s14 = smov 0  }
   0x2 LB: > { %s32_s15 = sadd.s32 1, %s3306_s13  ;;  %p2485_p0 = scmp.ge.s32.totalorder %s3310_s14, 1  ;;  %s3310_s14 = sphi %s3337_s14, %s13_s14   ;;  %s3306_s13 = sphi %s3335_s13, %s4255_s13   ;;  %s3302_s12 = sphi %s3333_s12, %s4254_s12  }
   0x3   : > { %p34_p1 = scmp.ge.s32.totalorder %s32_s15, 2  ;;  %p196_p2 = scmp.lt.s32.totalorder %s3310_s14, 3 }
   0x5   : > { %s4257_s15 = smov (%p34_p1, %s32_s15), 0  ;;  %p197_p3 = pnand %p2485_p0, %p196_p2 }
   0x6   : > { %v2955_v0 = vld [vmem:[%s4251_s1 + $0x4] ss:$8 sps:$4 sm:$0xff] (!%p197_p3)   ;;  %v2959_v2 = vld [vmem:[%s4251_s1] ss:$8 sps:$4 sm:$0xff] (!%p197_p3)   ;;  %v2961_v4 = vld [vmem:[%s4251_s1 + $0x14] ss:$8 sps:$4 sm:$0xff] (!%p197_p3)  }
   0x7   : > { %200 = sbr.rel (%p197_p3) target bundleno = 469 (0x1d5), region = 32  ;;  %v2957_v1 = vld [vmem:[%s4251_s1 + $0x204] ss:$8 sps:$4 sm:$0xff] (!%p197_p3)   ;;  %1666 = vmatprep.subr.bf16.mxu1 (!%p197_p3), %v2955_v0  ;;  %v2960_v3 = vld [vmem:[%s4251_s1 + $0x200] ss:$8 sps:$4 sm:$0xff] (!%p197_p3)  }
   0x8   : > { %1912 = vmatprep.subr.bf16.mxu0 (!%p197_p3), %v2957_v1  ;;  %1667 = vmatpush1.bf16.msra.mxu1 (!%p197_p3), %v2959_v2  ;;  %v2963_v5 = vld [vmem:[%s4251_s1 + $0x214] ss:$8 sps:$4 sm:$0xff] (!%p197_p3)   ;;  %v2965_v6 = vld [vmem:[%s4251_s1 + $0x10] ss:$8 sps:$4 sm:$0xff] (!%p197_p3)   ;;  %v2967_v8 = vld [vmem:[%s4251_s1 + $0x24] ss:$8 sps:$4 sm:$0xff] (!%p197_p3)  }
   0x9   : > { %1913 = vmatpush1.bf16.msra.mxu0 (!%p197_p3), %v2960_v3  ;;  %1668 = vmatprep.subr.bf16.mxu1 (!%p197_p3), %v2961_v4  ;;  %v2966_v7 = vld [vmem:[%s4251_s1 + $0x210] ss:$8 sps:$4 sm:$0xff] (!%p197_p3)   ;;  %v2969_v9 = vld [vmem:[%s4251_s1 + $0x224] ss:$8 sps:$4 sm:$0xff] (!%p197_p3)   ;;  %v2971_v10 = vld [vmem:[%s4251_s1 + $0x20] ss:$8 sps:$4 sm:$0xff] (!%p197_p3)  }
   0xa   : > { %1914 = vmatprep.subr.bf16.mxu0 (!%p197_p3), %v2963_v5  ;;  %v2972_v11 = vld [vmem:[%s4251_s1 + $0x220] ss:$8 sps:$4 sm:$0xff] (!%p197_p3)   ;;  %v2973_v12 = vld [vmem:[%s4251_s1 + $0x34] ss:$8 sps:$4 sm:$0xff] (!%p197_p3)   ;;  %v2977_v14 = vld [vmem:[%s4251_s1 + $0x30] ss:$8 sps:$4 sm:$0xff] (!%p197_p3)  }
   0xb   : > { %v2975_v13 = vld [vmem:[%s4251_s1 + $0x234] ss:$8 sps:$4 sm:$0xff] (!%p197_p3)   ;;  %v2978_v15 = vld [vmem:[%s4251_s1 + $0x230] ss:$8 sps:$4 sm:$0xff] (!%p197_p3)   ;;  %v2979_v16 = vld [vmem:[%s4251_s1 + $0x44] ss:$8 sps:$4 sm:$0xff] (!%p197_p3)  }
   0xc   : > { %1669 = vmatpush1.bf16.msra.mxu1 (!%p197_p3), %v2965_v6  ;;  %v2981_v17 = vld [vmem:[%s4251_s1 + $0x244] ss:$8 sps:$4 sm:$0xff] (!%p197_p3)   ;;  %v2983_v18 = vld [vmem:[%s4251_s1 + $0x40] ss:$8 sps:$4 sm:$0xff] (!%p197_p3)   ;;  %v2985_v20 = vld [vmem:[%s4251_s1 + $0x54] ss:$8 sps:$4 sm:$0xff] (!%p197_p3)  }
   0xd   : > { %1915 = vmatpush1.bf16.msra.mxu0 (!%p197_p3), %v2966_v7  ;;  %1670 = vmatprep.subr.bf16.mxu1 (!%p197_p3), %v2967_v8  ;;  %v2984_v19 = vld [vmem:[%s4251_s1 + $0x240] ss:$8 sps:$4 sm:$0xff] (!%p197_p3)   ;;  %v2987_v21 = vld [vmem:[%s4251_s1 + $0x254] ss:$8 sps:$4 sm:$0xff] (!%p197_p3)   ;;  %v2989_v22 = vld [vmem:[%s4251_s1 + $0x50] ss:$8 sps:$4 sm:$0xff] (!%p197_p3)  }
   0xe   : > { %1916 = vmatprep.subr.bf16.mxu0 %v2969_v9  ;;  %v2990_v23 = vld [vmem:[%s4251_s1 + $0x250] ss:$8 sps:$4 sm:$0xff]   ;;  %v2991_v24 = vld [vmem:[%s4251_s1 + $0x64] ss:$8 sps:$4 sm:$0xff]   ;;  %v2995_v26 = vld [vmem:[%s4251_s1 + $0x60] ss:$8 sps:$4 sm:$0xff]  }
   0xf   : > { %v2993_v25 = vld [vmem:[%s4251_s1 + $0x264] ss:$8 sps:$4 sm:$0xff]   ;;  %v2996_v27 = vld [vmem:[%s4251_s1 + $0x260] ss:$8 sps:$4 sm:$0xff]   ;;  %v2997_v28 = vld [vmem:[%s4251_s1 + $0x74] ss:$8 sps:$4 sm:$0xff]  }
  0x10   : > { %1671 = vmatpush1.bf16.msra.mxu1 %v2971_v10  ;;  %s244_s28 = smul.u32 18, %s3302_s12  ;;  %v2999_v29 = vld [vmem:[%s4251_s1 + $0x274] ss:$8 sps:$4 sm:$0xff]   ;;  %v3001_v30 = vld [vmem:[%s4251_s1 + $0x70] ss:$8 sps:$4 sm:$0xff]  }
  0x11   : > { %1917 = vmatpush1.bf16.msra.mxu0 %v2972_v11  ;;  %1672 = vmatprep.subr.bf16.mxu1 %v2973_v12  ;;  %v3002_v31 = vld [vmem:[%s4251_s1 + $0x270] ss:$8 sps:$4 sm:$0xff]   ;;  %v3003_v32 = vld [vmem:[%s4251_s1 + $0x84] ss:$8 sps:$4 sm:$0xff]   ;;  %v3007_v34 = vld [vmem:[%s4251_s1 + $0x80] ss:$8 sps:$4 sm:$0xff]  }
  0x12   : > { %1918 = vmatprep.subr.bf16.mxu0 %v2975_v13  ;;  %p246_p4 = scmp.lt.s32.totalorder %s244_s28, 35  ;;  %v3005_v33 = vld [vmem:[%s4251_s1 + $0x284] ss:$8 sps:$4 sm:$0xff]   ;;  %v3008_v35 = vld [vmem:[%s4251_s1 + $0x280] ss:$8 sps:$4 sm:$0xff]  }
  0x13   : > { %v3009_v36 = vld [vmem:[%s4251_s1 + $0x94] ss:$8 sps:$4 sm:$0xff]   ;;  %v3013_v38 = vld [vmem:[%s4251_s1 + $0x90] ss:$8 sps:$4 sm:$0xff]   ;;  %v3015_v40 = vld [vmem:[%s4251_s1 + $0xa4] ss:$8 sps:$4 sm:$0xff]  }
  0x14   : > { %1673 = vmatpush1.bf16.msra.mxu1 %v2977_v14  ;;  %s4259_s28 = smov (!%p246_p4, %s244_s28), 35  ;;  %v3011_v37 = vld [vmem:[%s4251_s1 + $0x294] ss:$8 sps:$4 sm:$0xff]   ;;  %v3014_v39 = vld [vmem:[%s4251_s1 + $0x290] ss:$8 sps:$4 sm:$0xff]  }
  0x15   : > { %1919 = vmatpush1.bf16.msra.mxu0 %v2978_v15  ;;  %1674 = vmatprep.subr.bf16.mxu1 %v2979_v16  ;;  %s2929_s30 = smul.u32 36, %s4259_s28  ;;  %v3017_v41 = vld [vmem:[%s4251_s1 + $0x2a4] ss:$8 sps:$4 sm:$0xff]   ;;  %v3019_v42 = vld [vmem:[%s4251_s1 + $0xa0] ss:$8 sps:$4 sm:$0xff]   ;;  %s2716_s19 = sshll.u32 %s4259_s28, 4 }
  0x16   : > { %1920 = vmatprep.subr.bf16.mxu0 %v2981_v17  ;;  %v3020_v43 = vld [vmem:[%s4251_s1 + $0x2a0] ss:$8 sps:$4 sm:$0xff]   ;;  %v3021_v44 = vld [vmem:[%s4251_s1 + $0xb4] ss:$8 sps:$4 sm:$0xff]   ;;  %v3025_v46 = vld [vmem:[%s4251_s1 + $0xb0] ss:$8 sps:$4 sm:$0xff]   ;;  %s4084_s22 = scalar_lea.vmem %s4253_s3, %s2716_s19 }
  0x17   : > { %s3495_s17 = scalar_lea.vmem %s4250_s0, %s2929_s30  ;;  %v3023_v45 = vld [vmem:[%s4251_s1 + $0x2b4] ss:$8 sps:$4 sm:$0xff]   ;;  %v3026_v47 = vld [vmem:[%s4251_s1 + $0x2b0] ss:$8 sps:$4 sm:$0xff]   ;;  %v3027_v48 = vld [vmem:[%s4251_s1 + $0xc4] ss:$8 sps:$4 sm:$0xff]  }
  0x18   : > { %1675 = vmatpush1.bf16.msra.mxu1 %v2983_v18  ;;  %v3053_v49 = vld [vmem:[%s3495_s17 + $0x4] ss:$36 sps:$4 sm:$0xff]   ;;  %v3056_v51 = vld [vmem:[%s3495_s17 + $0x14] ss:$36 sps:$4 sm:$0xff]   ;;  %v3063_v8 = vld [vmem:[%s3495_s17 + $0x4c] ss:$36 sps:$4 sm:$0xff]  }
  0x19   : > { %1921 = vmatpush1.bf16.msra.mxu0 %v2984_v19  ;;  %1676 = vmatprep.subr.bf16.mxu1 %v2985_v20  ;;  %v3029_v50 = vld [vmem:[%s4251_s1 + $0x2c4] ss:$8 sps:$4 sm:$0xff]   ;;  %v3031_v52 = vld [vmem:[%s4251_s1 + $0xc0] ss:$8 sps:$4 sm:$0xff]   ;;  %v3033_v54 = vld [vmem:[%s4251_s1 + $0xd4] ss:$8 sps:$4 sm:$0xff]  }
  0x1a   : > { %1922 = vmatprep.subr.bf16.mxu0 %v2987_v21  ;;  %1698 = vmatprep.mubr.bf16.mxu1 %v3053_v49  ;;  %v3032_v53 = vld [vmem:[%s4251_s1 + $0x2c0] ss:$8 sps:$4 sm:$0xff]   ;;  %v3035_v55 = vld [vmem:[%s4251_s1 + $0x2d4] ss:$8 sps:$4 sm:$0xff]   ;;  %v3037_v56 = vld [vmem:[%s4251_s1 + $0xd0] ss:$8 sps:$4 sm:$0xff]  }
  0x1b   : > { %1944 = vmatprep.mubr.bf16.mxu0 %v3056_v51  ;;  %v3038_v57 = vld [vmem:[%s4251_s1 + $0x2d0] ss:$8 sps:$4 sm:$0xff]   ;;  %v3039_v58 = vld [vmem:[%s4251_s1 + $0xe4] ss:$8 sps:$4 sm:$0xff]   ;;  %v3043_v60 = vld [vmem:[%s4251_s1 + $0xe0] ss:$8 sps:$4 sm:$0xff]  }
  0x1c   : > { %1677 = vmatpush1.bf16.msra.mxu1 %v2989_v22  ;;  %v3041_v59 = vld [vmem:[%s4251_s1 + $0x2e4] ss:$8 sps:$4 sm:$0xff]   ;;  %v3044_v61 = vld [vmem:[%s4251_s1 + $0x2e0] ss:$8 sps:$4 sm:$0xff]   ;;  %v3045_v62 = vld [vmem:[%s4251_s1 + $0xf4] ss:$8 sps:$4 sm:$0xff]  }
  0x1d   : > { %1923 = vmatpush1.bf16.msra.mxu0 %v2990_v23  ;;  %1678 = vmatprep.subr.bf16.mxu1 %v2991_v24  ;;  %v3047_v63 = vld [vmem:[%s4251_s1 + $0x2f4] ss:$8 sps:$4 sm:$0xff]   ;;  %v3049_v0 = vld [vmem:[%s4251_s1 + $0xf0] ss:$8 sps:$4 sm:$0xff]   ;;  %v3059_v2 = vld [vmem:[%s4251_s1 + $0x104] ss:$8 sps:$4 sm:$0xff]  }
  0x1e   : > { %1924 = vmatprep.subr.bf16.mxu0 %v2993_v25  ;;  %v3050_v1 = vld [vmem:[%s4251_s1 + $0x2f0] ss:$8 sps:$4 sm:$0xff]   ;;  %v3562_v3 = vld [vmem:[%s4251_s1 + $0x304] ss:$8 sps:$4 sm:$0xff]   ;;  %v3057_v6 = vld [vmem:[%s4251_s1 + $0x100] ss:$8 sps:$4 sm:$0xff]  }
  0x1f   : > { %v3051_v4 = vld [vmem:[%s3495_s17] ss:$36 sps:$4 sm:$0xff]   ;;  %v3054_v5 = vld [vmem:[%s3495_s17 + $0x10] ss:$36 sps:$4 sm:$0xff]   ;;  %v3067_v13 = vld [vmem:[%s3495_s17 + $0x48] ss:$36 sps:$4 sm:$0xff]  }
  0x20   : > { %1679 = vmatpush1.bf16.msra.mxu1 %v2995_v26  ;;  %v3062_v7 = vld [vmem:[%s4251_s1 + $0x114] ss:$8 sps:$4 sm:$0xff]   ;;  %v3578_v10 = vld [vmem:[%s4251_s1 + $0x300] ss:$8 sps:$4 sm:$0xff]   ;;  %v3060_v12 = vld [vmem:[%s4251_s1 + $0x110] ss:$8 sps:$4 sm:$0xff]  }
  0x21   : > { %1925 = vmatpush1.bf16.msra.mxu0 %v2996_v27  ;;  %1680 = vmatprep.subr.bf16.mxu1 %v2997_v28  ;;  %v3065_v9 = vld [vmem:[%s3495_s17 + $0x5c] ss:$36 sps:$4 sm:$0xff]   ;;  %v3074_v14 = vld [vmem:[%s4251_s1 + $0x124] ss:$8 sps:$4 sm:$0xff]   ;;  %v3597_v16 = vld [vmem:[%s4251_s1 + $0x310] ss:$8 sps:$4 sm:$0xff]  }
  0x22   : > { %1926 = vmatprep.subr.bf16.mxu0 %v2999_v29  ;;  %v3583_v11 = vld [vmem:[%s4251_s1 + $0x314] ss:$8 sps:$4 sm:$0xff]   ;;  %v3072_v17 = vld [vmem:[%s4251_s1 + $0x120] ss:$8 sps:$4 sm:$0xff]   ;;  %v3612_v21 = vld [vmem:[%s4251_s1 + $0x324] ss:$8 sps:$4 sm:$0xff]  }
  0x23   : > { %v3068_v15 = vld [vmem:[%s3495_s17 + $0x58] ss:$36 sps:$4 sm:$0xff]   ;;  %v3083_v20 = vld [vmem:[%s3495_s17 + $0xa4] ss:$36 sps:$4 sm:$0xff]   ;;  %v3085_v26 = vld [vmem:[%s3495_s17 + $0x90] ss:$36 sps:$4 sm:$0xff]  }
  0x24   : > { %1681 = vmatpush1.bf16.msra.mxu1 %v3001_v30  ;;  %v3080_v18 = vld [vmem:[%s4251_s1 + $0x134] ss:$8 sps:$4 sm:$0xff]   ;;  %v3078_v22 = vld [vmem:[%s4251_s1 + $0x130] ss:$8 sps:$4 sm:$0xff]   ;;  %v3620_v23 = vld [vmem:[%s4251_s1 + $0x320] ss:$8 sps:$4 sm:$0xff]  }
  0x25   : > { %1927 = vmatpush1.bf16.msra.mxu0 %v3002_v31  ;;  %1682 = vmatprep.subr.bf16.mxu1 %v3003_v32  ;;  %v3081_v19 = vld [vmem:[%s3495_s17 + $0x94] ss:$36 sps:$4 sm:$0xff]   ;;  %v3092_v25 = vld [vmem:[%s4251_s1 + $0x144] ss:$8 sps:$4 sm:$0xff]   ;;  %v3090_v28 = vld [vmem:[%s4251_s1 + $0x140] ss:$8 sps:$4 sm:$0xff]  }
  0x26   : > { %1928 = vmatprep.subr.bf16.mxu0 %v3005_v33  ;;  %v3625_v24 = vld [vmem:[%s4251_s1 + $0x334] ss:$8 sps:$4 sm:$0xff]   ;;  %v3086_v27 = vld [vmem:[%s3495_s17 + $0xa0] ss:$36 sps:$4 sm:$0xff]   ;;  %v3640_v29 = vld [vmem:[%s4251_s1 + $0x330] ss:$8 sps:$4 sm:$0xff]  }
  0x27   : > { %v3096_v30 = vld [vmem:[%s3495_s17 + $0xdc] ss:$36 sps:$4 sm:$0xff]   ;;  %v3101_v32 = vld [vmem:[%s3495_s17 + $0xec] ss:$36 sps:$4 sm:$0xff]  }
  0x28   : > { %1683 = vmatpush1.bf16.msra.mxu1 %v3007_v34  ;;  %v3100_v31 = vld [vmem:[%s4251_s1 + $0x154] ss:$8 sps:$4 sm:$0xff]   ;;  %v3651_v33 = vld [vmem:[%s4251_s1 + $0x344] ss:$8 sps:$4 sm:$0xff]   ;;  %v3098_v34 = vld [vmem:[%s4251_s1 + $0x150] ss:$8 sps:$4 sm:$0xff]  }
  0x29   : > { %1929 = vmatpush1.bf16.msra.mxu0 %v3008_v35  ;;  %1684 = vmatprep.subr.bf16.mxu1 %v3009_v36  ;;  %v3659_v35 = vld [vmem:[%s4251_s1 + $0x340] ss:$8 sps:$4 sm:$0xff]   ;;  %v3110_v36 = vld [vmem:[%s4251_s1 + $0x164] ss:$8 sps:$4 sm:$0xff]   ;;  %v3708_v49 = vld [vmem:[%s4251_s1 + $0x374] ss:$8 sps:$4 sm:$0xff]  }
  0x2a   : > { %1930 = vmatprep.subr.bf16.mxu0 %v3011_v37  ;;  %v3668_v37 = vld [vmem:[%s4251_s1 + $0x354] ss:$8 sps:$4 sm:$0xff]  }
  0x2b   : > { %v3122_v51 = vld [vmem:[%s3495_s17 + $0x130] ss:$36 sps:$4 sm:$0xff]  }
  0x2c   : > { %1685 = vmatpush1.bf16.msra.mxu1 %v3013_v38  ;;  %v3103_v38 = vld [vmem:[%s3495_s17 + $0xd8] ss:$36 sps:$4 sm:$0xff]  }
  0x2d   : > { %1931 = vmatpush1.bf16.msra.mxu0 %v3014_v39  ;;  %1686 = vmatprep.subr.bf16.mxu1 %v3015_v40  ;;  %v3104_v39 = vld [vmem:[%s3495_s17 + $0xe8] ss:$36 sps:$4 sm:$0xff]  }
  0x2e   : > { %1932 = vmatprep.subr.bf16.mxu0 %v3017_v41  ;;  %v3108_v40 = vld [vmem:[%s4251_s1 + $0x160] ss:$8 sps:$4 sm:$0xff]   ;;  %v3680_v41 = vld [vmem:[%s4251_s1 + $0x350] ss:$8 sps:$4 sm:$0xff]  }
  0x30   : > { %1687 = vmatpush1.bf16.msra.mxu1 %v3019_v42  ;;  %v3114_v42 = vld [vmem:[%s3495_s17 + $0x124] ss:$36 sps:$4 sm:$0xff]  }
  0x31   : > { %1933 = vmatpush1.bf16.msra.mxu0 %v3020_v43  ;;  %1688 = vmatprep.subr.bf16.mxu1 %v3021_v44  ;;  %v3116_v43 = vld [vmem:[%s3495_s17 + $0x134] ss:$36 sps:$4 sm:$0xff]  }
  0x32   : > { %1934 = vmatprep.subr.bf16.mxu0 %v3023_v45  ;;  %v3121_v44 = vld [vmem:[%s4251_s1 + $0x174] ss:$8 sps:$4 sm:$0xff]   ;;  %v3691_v45 = vld [vmem:[%s4251_s1 + $0x364] ss:$8 sps:$4 sm:$0xff]  }
  0x34   : > { %1689 = vmatpush1.bf16.msra.mxu1 %v3025_v46  ;;  %v3119_v46 = vld [vmem:[%s4251_s1 + $0x170] ss:$8 sps:$4 sm:$0xff]  }
  0x35   : > { %1935 = vmatpush1.bf16.msra.mxu0 %v3026_v47  ;;  %1690 = vmatprep.subr.bf16.mxu1 %v3027_v48  ;;  %v3699_v47 = vld [vmem:[%s4251_s1 + $0x360] ss:$8 sps:$4 sm:$0xff]   ;;  %v3128_v48 = vld [vmem:[%s4251_s1 + $0x184] ss:$8 sps:$4 sm:$0xff]  }
  0x36   : > { %1936 = vmatprep.subr.bf16.mxu0 %v3029_v50  ;;  %v3118_v50 = vld [vmem:[%s3495_s17 + $0x120] ss:$36 sps:$4 sm:$0xff]  }
  0x38   : > { %1691 = vmatpush1.bf16.msra.mxu1 %v3031_v52  ;;  %v3126_v52 = vld [vmem:[%s4251_s1 + $0x180] ss:$8 sps:$4 sm:$0xff]  }
  0x39   : > { %1937 = vmatpush1.bf16.msra.mxu0 %v3032_v53  ;;  %1692 = vmatprep.subr.bf16.mxu1 %v3033_v54  ;;  %v3720_v53 = vld [vmem:[%s4251_s1 + $0x370] ss:$8 sps:$4 sm:$0xff]  }
  0x3a   : > { %1938 = vmatprep.subr.bf16.mxu0 %v3035_v55  ;;  %v3132_v54 = vld [vmem:[%s3495_s17 + $0x16c] ss:$36 sps:$4 sm:$0xff]   ;;  %v3134_v55 = vld [vmem:[%s3495_s17 + $0x17c] ss:$36 sps:$4 sm:$0xff]  }
  0x3c   : > { %1693 = vmatpush1.bf16.msra.mxu1 %v3037_v56  ;;  %v3728_v56 = vld [vmem:[%s4251_s1 + $0x384] ss:$8 sps:$4 sm:$0xff]  }
  0x3d   : > { %1939 = vmatpush1.bf16.msra.mxu0 %v3038_v57  ;;  %1694 = vmatprep.subr.bf16.mxu1 %v3039_v58  ;;  %v3143_v57 = vld [vmem:[%s4251_s1 + $0x194] ss:$8 sps:$4 sm:$0xff]   ;;  %v3736_v58 = vld [vmem:[%s4251_s1 + $0x380] ss:$8 sps:$4 sm:$0xff]  }
  0x3e   : > { %1940 = vmatprep.subr.bf16.mxu0 %v3041_v59  ;;  %v3141_v59 = vld [vmem:[%s4251_s1 + $0x190] ss:$8 sps:$4 sm:$0xff]  }
  0x40   : > { %1695 = vmatpush1.bf16.msra.mxu1 %v3043_v60  ;;  %v3745_v60 = vld [vmem:[%s4251_s1 + $0x394] ss:$8 sps:$4 sm:$0xff]  }
  0x41   : > { %1941 = vmatpush1.bf16.msra.mxu0 %v3044_v61  ;;  %1696 = vmatprep.subr.bf16.mxu1 %v3045_v62  ;;  %v3149_v61 = vld [vmem:[%s4251_s1 + $0x1a4] ss:$8 sps:$4 sm:$0xff]  }
  0x42   : > { %1942 = vmatprep.subr.bf16.mxu0 %v3047_v63  ;;  %v3136_v62 = vld [vmem:[%s3495_s17 + $0x168] ss:$36 sps:$4 sm:$0xff]   ;;  %v3137_v63 = vld [vmem:[%s3495_s17 + $0x178] ss:$36 sps:$4 sm:$0xff]  }
  0x44   : > { %1697 = vmatpush1.bf16.msra.mxu1 %v3049_v0  ;;  %v3756_v0 = vld [vmem:[%s4251_s1 + $0x390] ss:$8 sps:$4 sm:$0xff]  }
  0x45   : > { %1943 = vmatpush1.bf16.msra.mxu0 %v3050_v1  ;;  %1789 = vmatprep.subr.bf16.mxu1 %v3059_v2  ;;  %v3147_v1 = vld [vmem:[%s4251_s1 + $0x1a0] ss:$8 sps:$4 sm:$0xff]   ;;  %v3150_v2 = vld [vmem:[%s3495_s17 + $0x1b4] ss:$36 sps:$4 sm:$0xff]  }
  0x46   : > { %2035 = vmatprep.subr.bf16.mxu0 %v3562_v3 }
  0x47   : > { %1699 = vmatmul.mubr.bf16.vlgmr.msra.gmra.mrb[0].mxu1 %v3051_v4  ;;  %v3152_v4 = vld [vmem:[%s3495_s17 + $0x1c4] ss:$36 sps:$4 sm:$0xff]  }
  0x48   : > { %1945 = vmatmul.mubr.bf16.vlgmr.msra.gmra.mrb[0].mxu0 %v3054_v5  ;;  %1790 = vmatpush1.bf16.msra.mxu1 %v3057_v6  ;;  %v3768_v5 = vld [vmem:[%s4251_s1 + $0x3a4] ss:$8 sps:$4 sm:$0xff]   ;;  %v3161_v6 = vld [vmem:[%s4251_s1 + $0x1b4] ss:$8 sps:$4 sm:$0xff]  }
  0x49   : > { %1708 = vmatprep.mubr.bf16.mxu1 %v3063_v8  ;;  %1791 = vmatprep.subr.bf16.mxu1 %v3062_v7  ;;  %v3776_v7 = vld [vmem:[%s4251_s1 + $0x3a0] ss:$8 sps:$4 sm:$0xff]   ;;  %v3159_v8 = vld [vmem:[%s4251_s1 + $0x1b0] ss:$8 sps:$4 sm:$0xff]  }
  0x4a   : > { %1954 = vmatprep.mubr.bf16.mxu0 %v3065_v9  ;;  %2036 = vmatpush1.bf16.msra.mxu0 %v3578_v10  ;;  %v3785_v9 = vld [vmem:[%s4251_s1 + $0x3b4] ss:$8 sps:$4 sm:$0xff]  }
  0x4b   : > { %2037 = vmatprep.subr.bf16.mxu0 %v3583_v11 }
  0x4c   : > { %1792 = vmatpush1.bf16.msra.mxu1 %v3060_v12  ;;  %v3167_v12 = vld [vmem:[%s4251_s1 + $0x1c4] ss:$8 sps:$4 sm:$0xff]  }
  0x4d   : > { %1793 = vmatprep.subr.bf16.mxu1 %v3074_v14  ;;  %v3155_v14 = vld [vmem:[%s3495_s17 + $0x1c0] ss:$36 sps:$4 sm:$0xff]  }
  0x4e   : > { %2038 = vmatpush1.bf16.msra.mxu0 %v3597_v16 }
  0x4f   : > { %1709 = vmatmul.mubr.bf16.gmra.mrb[4].mxu1 %v3067_v13  ;;  %2039 = vmatprep.subr.bf16.mxu0 %v3612_v21  ;;  %v3154_v13 = vld [vmem:[%s3495_s17 + $0x1b0] ss:$36 sps:$4 sm:$0xff]  }
  0x50   : > { %1955 = vmatmul.mubr.bf16.gmra.mrb[4].mxu0 %v3068_v15  ;;  %1794 = vmatpush1.bf16.msra.mxu1 %v3072_v17  ;;  %v3796_v15 = vld [vmem:[%s4251_s1 + $0x3b0] ss:$8 sps:$4 sm:$0xff]   ;;  %v3165_v17 = vld [vmem:[%s4251_s1 + $0x1c0] ss:$8 sps:$4 sm:$0xff]  }
  0x51   : > { %1718 = vmatprep.mubr.bf16.mxu1 %v3081_v19  ;;  %1795 = vmatprep.subr.bf16.mxu1 %v3080_v18  ;;  %v3168_v18 = vld [vmem:[%s3495_s17 + $0x1fc] ss:$36 sps:$4 sm:$0xff]   ;;  %v3170_v19 = vld [vmem:[%s3495_s17 + $0x20c] ss:$36 sps:$4 sm:$0xff]  }
  0x52   : > { %1964 = vmatprep.mubr.bf16.mxu0 %v3083_v20  ;;  %2040 = vmatpush1.bf16.msra.mxu0 %v3620_v23  ;;  %v3808_v20 = vld [vmem:[%s4251_s1 + $0x3c4] ss:$8 sps:$4 sm:$0xff]  }
  0x53   : > { %2041 = vmatprep.subr.bf16.mxu0 %v3625_v24 }
  0x54   : > { %1796 = vmatpush1.bf16.msra.mxu1 %v3078_v22  ;;  %v3179_v22 = vld [vmem:[%s4251_s1 + $0x1d4] ss:$8 sps:$4 sm:$0xff]  }
  0x55   : > { %1797 = vmatprep.subr.bf16.mxu1 %v3092_v25  ;;  %v3817_v25 = vld [vmem:[%s4251_s1 + $0x3c0] ss:$8 sps:$4 sm:$0xff]  }
  0x56   : > { %2042 = vmatpush1.bf16.msra.mxu0 %v3640_v29 }
  0x57   : > { %1719 = vmatmul.mubr.bf16.gmra.mrb[8].mxu1 %v3085_v26  ;;  %2043 = vmatprep.subr.bf16.mxu0 %v3651_v33  ;;  %v3177_v26 = vld [vmem:[%s4251_s1 + $0x1d0] ss:$8 sps:$4 sm:$0xff]  }
  0x58   : > { %1965 = vmatmul.mubr.bf16.gmra.mrb[8].mxu0 %v3086_v27  ;;  %1798 = vmatpush1.bf16.msra.mxu1 %v3090_v28  ;;  %v3172_v27 = vld [vmem:[%s3495_s17 + $0x1f8] ss:$36 sps:$4 sm:$0xff]  }
  0x59   : > { %1728 = vmatprep.mubr.bf16.mxu1 %v3096_v30  ;;  %1799 = vmatprep.subr.bf16.mxu1 %v3100_v31  ;;  %v3826_v28 = vld [vmem:[%s4251_s1 + $0x3d4] ss:$8 sps:$4 sm:$0xff]   ;;  %v3173_v30 = vld [vmem:[%s3495_s17 + $0x208] ss:$36 sps:$4 sm:$0xff]  }
  0x5a   : > { %1974 = vmatprep.mubr.bf16.mxu0 %v3101_v32  ;;  %2044 = vmatpush1.bf16.msra.mxu0 %v3659_v35  ;;  %v3187_v31 = vld [vmem:[%s4251_s1 + $0x1e4] ss:$8 sps:$4 sm:$0xff]   ;;  %v3836_v32 = vld [vmem:[%s4251_s1 + $0x3d0] ss:$8 sps:$4 sm:$0xff]  }
  0x5b   : > { %2045 = vmatprep.subr.bf16.mxu0 %v3668_v37 }
  0x5c   : > { %1800 = vmatpush1.bf16.msra.mxu1 %v3098_v34  ;;  %v3183_v34 = vld [vmem:[%s3495_s17 + $0x244] ss:$36 sps:$4 sm:$0xff]  }
  0x5d   : > { %1801 = vmatprep.subr.bf16.mxu1 %v3110_v36  ;;  %v3185_v36 = vld [vmem:[%s4251_s1 + $0x1e0] ss:$8 sps:$4 sm:$0xff]  }
  0x5e   : > { %2046 = vmatpush1.bf16.msra.mxu0 %v3680_v41 }
  0x5f   : > { %1729 = vmatmul.mubr.bf16.gmra.mrb[12].mxu1 %v3103_v38  ;;  %2047 = vmatprep.subr.bf16.mxu0 %v3691_v45  ;;  %v3188_v38 = vld [vmem:[%s3495_s17 + $0x254] ss:$36 sps:$4 sm:$0xff]  }
  0x60   : > { %1975 = vmatmul.mubr.bf16.gmra.mrb[12].mxu0 %v3104_v39  ;;  %1802 = vmatpush1.bf16.msra.mxu1 %v3108_v40  ;;  %v3848_v39 = vld [vmem:[%s4251_s1 + $0x3e4] ss:$8 sps:$4 sm:$0xff]   ;;  %v3197_v40 = vld [vmem:[%s4251_s1 + $0x1f4] ss:$8 sps:$4 sm:$0xff]  }
  0x61   : > { %1738 = vmatprep.mubr.bf16.mxu1 %v3114_v42  ;;  %1984 = vmatprep.mubr.bf16.mxu0 %v3116_v43  ;;  %v3856_v42 = vld [vmem:[%s4251_s1 + $0x3e0] ss:$8 sps:$4 sm:$0xff]   ;;  %v3195_v43 = vld [vmem:[%s4251_s1 + $0x1f0] ss:$8 sps:$4 sm:$0xff]  }
  0x62   : > { %1803 = vmatprep.subr.bf16.mxu1 %v3121_v44  ;;  %2048 = vmatpush1.bf16.msra.mxu0 %v3699_v47  ;;  %v3865_v44 = vld [vmem:[%s4251_s1 + $0x3f4] ss:$8 sps:$4 sm:$0xff]  }
  0x63   : > { %2049 = vmatprep.subr.bf16.mxu0 %v3708_v49 }
  0x64   : > { %1804 = vmatpush1.bf16.msra.mxu1 %v3119_v46  ;;  %v3190_v46 = vld [vmem:[%s3495_s17 + $0x240] ss:$36 sps:$4 sm:$0xff]  }
  0x65   : > { %1805 = vmatprep.subr.bf16.mxu1 %v3128_v48  ;;  %v3191_v48 = vld [vmem:[%s3495_s17 + $0x250] ss:$36 sps:$4 sm:$0xff]  }
  0x66   : > { %2050 = vmatpush1.bf16.msra.mxu0 %v3720_v53 }
  0x67   : > { %1739 = vmatmul.mubr.bf16.gmra.mrb[16].mxu1 %v3118_v50  ;;  %2051 = vmatprep.subr.bf16.mxu0 %v3728_v56  ;;  %v3873_v50 = vld [vmem:[%s4251_s1 + $0x3f0] ss:$8 sps:$4 sm:$0xff]  }
  0x68   : > { %1985 = vmatmul.mubr.bf16.gmra.mrb[16].mxu0 %v3122_v51  ;;  %1806 = vmatpush1.bf16.msra.mxu1 %v3126_v52  ;;  %v3203_v51 = vld [vmem:[%s3495_s17 + $0xc] ss:$36 sps:$4 sm:$0xff]   ;;  %v3206_v52 = vld [vmem:[%s3495_s17 + $0x1c] ss:$36 sps:$4 sm:$0xff]  }
  0x69   : > { %1748 = vmatprep.mubr.bf16.mxu1 %v3132_v54  ;;  %1994 = vmatprep.mubr.bf16.mxu0 %v3134_v55  ;;  %v3209_v54 = vld [vmem:[%s4251_s1 + $0x404] ss:$8 sps:$4 sm:$0xff]  }
  0x6a   : > { %1807 = vmatprep.subr.bf16.mxu1 %v3143_v57  ;;  %2052 = vmatpush1.bf16.msra.mxu0 %v3736_v58  ;;  %v3201_v55 = vld [vmem:[%s3495_s17 + $0x8] ss:$36 sps:$4 sm:$0xff]   ;;  %v3204_v57 = vld [vmem:[%s3495_s17 + $0x18] ss:$36 sps:$4 sm:$0xff]  }
  0x6b   : > { %2053 = vmatprep.subr.bf16.mxu0 %v3745_v60 }
  0x6c   : > { %1808 = vmatpush1.bf16.msra.mxu1 %v3141_v59  ;;  %v3207_v59 = vld [vmem:[%s4251_s1 + $0x400] ss:$8 sps:$4 sm:$0xff]  }
  0x6d   : > { %1809 = vmatprep.subr.bf16.mxu1 %v3149_v61  ;;  %v3212_v61 = vld [vmem:[%s4251_s1 + $0x414] ss:$8 sps:$4 sm:$0xff]  }
  0x6e   : > { %2054 = vmatpush1.bf16.msra.mxu0 %v3756_v0 }
  0x6f   : > { %1749 = vmatmul.mubr.bf16.gmra.mrb[20].mxu1 %v3136_v62  ;;  %2055 = vmatprep.subr.bf16.mxu0 %v3768_v5  ;;  %v3215_v62 = vld [vmem:[%s3495_s17 + $0x64] ss:$36 sps:$4 sm:$0xff]  }
  0x70   : > { %1995 = vmatmul.mubr.bf16.gmra.mrb[20].mxu0 %v3137_v63  ;;  %1810 = vmatpush1.bf16.msra.mxu1 %v3147_v1  ;;  %v3210_v63 = vld [vmem:[%s4251_s1 + $0x410] ss:$8 sps:$4 sm:$0xff]   ;;  %v3221_v1 = vld [vmem:[%s4251_s1 + $0x424] ss:$8 sps:$4 sm:$0xff]  }
  0x71   : > { %1758 = vmatprep.mubr.bf16.mxu1 %v3150_v2  ;;  %2004 = vmatprep.mubr.bf16.mxu0 %v3152_v4  ;;  %v3217_v2 = vld [vmem:[%s3495_s17 + $0x50] ss:$36 sps:$4 sm:$0xff]   ;;  %v3218_v4 = vld [vmem:[%s3495_s17 + $0x60] ss:$36 sps:$4 sm:$0xff]  }
  0x72   : > { %1811 = vmatprep.subr.bf16.mxu1 %v3161_v6  ;;  %2056 = vmatpush1.bf16.msra.mxu0 %v3776_v7  ;;  %v3225_v6 = vld [vmem:[%s3495_s17 + $0x9c] ss:$36 sps:$4 sm:$0xff]  }
  0x73   : > { %2057 = vmatprep.subr.bf16.mxu0 %v3785_v9 }
  0x74   : > { %1812 = vmatpush1.bf16.msra.mxu1 %v3159_v8  ;;  %v3227_v8 = vld [vmem:[%s3495_s17 + $0xac] ss:$36 sps:$4 sm:$0xff]  }
  0x75   : > { %1813 = vmatprep.subr.bf16.mxu1 %v3167_v12  ;;  %v3229_v12 = vld [vmem:[%s3495_s17 + $0x98] ss:$36 sps:$4 sm:$0xff]  }
  0x76   : > { %2058 = vmatpush1.bf16.msra.mxu0 %v3796_v15 }
  0x77   : > { %1759 = vmatmul.mubr.bf16.gmra.mrb[24].mxu1 %v3154_v13  ;;  %2059 = vmatprep.subr.bf16.mxu0 %v3808_v20  ;;  %v3230_v13 = vld [vmem:[%s3495_s17 + $0xa8] ss:$36 sps:$4 sm:$0xff]  }
  0x78   : > { %2005 = vmatmul.mubr.bf16.gmra.mrb[24].mxu0 %v3155_v14  ;;  %1768 = vmatprep.mubr.bf16.mxu1 %v3168_v18  ;;  %v3237_v14 = vld [vmem:[%s3495_s17 + $0xe4] ss:$36 sps:$4 sm:$0xff]  }
  0x79   : > { %1814 = vmatpush1.bf16.msra.mxu1 %v3165_v17  ;;  %2014 = vmatprep.mubr.bf16.mxu0 %v3170_v19  ;;  %v3239_v17 = vld [vmem:[%s3495_s17 + $0xf4] ss:$36 sps:$4 sm:$0xff]   ;;  %v3241_v18 = vld [vmem:[%s3495_s17 + $0xe0] ss:$36 sps:$4 sm:$0xff]  }
  0x7a   : > { %1815 = vmatprep.subr.bf16.mxu1 %v3179_v22  ;;  %2060 = vmatpush1.bf16.msra.mxu0 %v3817_v25  ;;  %v3242_v19 = vld [vmem:[%s3495_s17 + $0xf0] ss:$36 sps:$4 sm:$0xff]  }
  0x7b   : > { %2061 = vmatprep.subr.bf16.mxu0 %v3826_v28  ;;  %v3248_v22 = vld [vmem:[%s4251_s1 + $0x474] ss:$8 sps:$4 sm:$0xff]  }
  0x7d   : > { %1816 = vmatpush1.bf16.msra.mxu1 %v3177_v26  ;;  %v3312_v26 = vmov 0  }
  0x7e   : > { %1817 = vmatprep.subr.bf16.mxu1 %v3187_v31  ;;  %2062 = vmatpush1.bf16.msra.mxu0 %v3836_v32  ;;  %v3272_v31 = vld [vmem:[%s3495_s17 + $0x184] ss:$36 sps:$4 sm:$0xff]  }
  0x7f   : > { %1769 = vmatmul.mubr.bf16.gmra.mrb[28].mxu1 %v3172_v27  ;;  %2063 = vmatprep.subr.bf16.mxu0 %v3848_v39  ;;  %v3252_v27 = vld [vmem:[%s3495_s17 + $0x20] ss:$36 sps:$4 sm:$0xff]  }
  0x80   : > { %2015 = vmatmul.mubr.bf16.gmra.mrb[28].mxu0 %v3173_v30  ;;  %1778 = vmatprep.mubr.bf16.mxu1 %v3183_v34  ;;  %v3256_v30 = vld [vmem:[%s3495_s17 + $0x68] ss:$36 sps:$4 sm:$0xff]   ;;  %v3279_v34 = vld [vmem:[%s3495_s17 + $0x1d0] ss:$36 sps:$4 sm:$0xff]  }
  0x81   : > { %2024 = vmatprep.mubr.bf16.mxu0 %v3188_v38  ;;  %1818 = vmatpush1.bf16.msra.mxu1 %v3185_v36  ;;  %v3276_v36 = vld [vmem:[%s3495_s17 + $0x1cc] ss:$36 sps:$4 sm:$0xff]  }
  0x82   : > { %1819 = vmatprep.subr.bf16.mxu1 %v3197_v40  ;;  %2064 = vmatpush1.bf16.msra.mxu0 %v3856_v42  ;;  %v3278_v38 = vld [vmem:[%s3495_s17 + $0x1c8] ss:$36 sps:$4 sm:$0xff]   ;;  %v3280_v40 = vld [vmem:[%s3495_s17 + $0x214] ss:$36 sps:$4 sm:$0xff]  }
  0x83   : > { %2065 = vmatprep.subr.bf16.mxu0 %v3865_v44 }
  0x85   : > { %1820 = vmatpush1.bf16.msra.mxu1 %v3195_v43  ;;  %v3287_v43 = vld [vmem:[%s3495_s17 + $0x260] ss:$36 sps:$4 sm:$0xff]  }
  0x86   : > { %2717 = vmatprep.subr.bf16.mxu1 %v3562_v3  ;;  %2066 = vmatpush1.bf16.msra.mxu0 %v3873_v50  ;;  %v3213_v3 = vld [vmem:[%s3495_s17 + $0x54] ss:$36 sps:$4 sm:$0xff]  }
  0x87   : > { %1779 = vmatmul.mubr.bf16.gmra.mrb[32].mxu1 %v3190_v46  ;;  %2158 = vmatprep.subr.bf16.mxu0 %v3209_v54  ;;  %v3286_v46 = vld [vmem:[%s3495_s17 + $0x258] ss:$36 sps:$4 sm:$0xff]  }
  0x88   : > { %2025 = vmatmul.mubr.bf16.gmra.mrb[32].mxu0 %v3191_v48  ;;  %1821 = vmatprep.mubr.bf16.mxu1 %v3203_v51 }
  0x89   : > { %2067 = vmatprep.mubr.bf16.mxu0 %v3206_v52 }
  0x8f   : > { %1822 = vmatmul.mubr.bf16.vlgmr.msra.gmra.mrb[0].mxu1 %v3201_v55 }
  0x90   : > { %2068 = vmatmul.mubr.bf16.vlgmr.msra.gmra.mrb[0].mxu0 %v3204_v57  ;;  %2733 = vmatpush1.bf16.msra.mxu1 %v3578_v10  ;;  %v3219_v10 = vld [vmem:[%s4251_s1 + $0x420] ss:$8 sps:$4 sm:$0xff]  }
  0x91   : > { %2159 = vmatpush1.bf16.msra.mxu0 %v3207_v59  ;;  %2718 = vmatprep.subr.bf16.mxu1 %v3583_v11  ;;  %v3224_v11 = vld [vmem:[%s4251_s1 + $0x434] ss:$8 sps:$4 sm:$0xff]  }
  0x92   : > { %2160 = vmatprep.subr.bf16.mxu0 %v3212_v61  ;;  %1831 = vmatprep.mubr.bf16.mxu1 %v3213_v3 }
  0x93   : > { %2077 = vmatprep.mubr.bf16.mxu0 %v3215_v62 }
  0x94   : > { %2734 = vmatpush1.bf16.msra.mxu1 %v3597_v16  ;;  %v3222_v16 = vld [vmem:[%s4251_s1 + $0x430] ss:$8 sps:$4 sm:$0xff]  }
  0x95   : > { %2161 = vmatpush1.bf16.msra.mxu0 %v3210_v63  ;;  %2719 = vmatprep.subr.bf16.mxu1 %v3612_v21  ;;  %v3233_v21 = vld [vmem:[%s4251_s1 + $0x444] ss:$8 sps:$4 sm:$0xff]  }
  0x96   : > { %2162 = vmatprep.subr.bf16.mxu0 %v3221_v1 }
  0x97   : > { %1832 = vmatmul.mubr.bf16.gmra.mrb[4].mxu1 %v3217_v2 }
  0x98   : > { %2078 = vmatmul.mubr.bf16.gmra.mrb[4].mxu0 %v3218_v4  ;;  %2735 = vmatpush1.bf16.msra.mxu1 %v3620_v23  ;;  %v3231_v23 = vld [vmem:[%s4251_s1 + $0x440] ss:$8 sps:$4 sm:$0xff]  }
  0x99   : > { %2163 = vmatpush1.bf16.msra.mxu0 %v3219_v10  ;;  %2720 = vmatprep.subr.bf16.mxu1 %v3625_v24  ;;  %v3236_v24 = vld [vmem:[%s4251_s1 + $0x454] ss:$8 sps:$4 sm:$0xff]  }
  0x9a   : > { %2164 = vmatprep.subr.bf16.mxu0 %v3224_v11  ;;  %1841 = vmatprep.mubr.bf16.mxu1 %v3225_v6 }
  0x9b   : > { %2087 = vmatprep.mubr.bf16.mxu0 %v3227_v8 }
  0x9c   : > { %2736 = vmatpush1.bf16.msra.mxu1 %v3640_v29  ;;  %v3234_v29 = vld [vmem:[%s4251_s1 + $0x450] ss:$8 sps:$4 sm:$0xff]  }
  0x9d   : > { %2165 = vmatpush1.bf16.msra.mxu0 %v3222_v16  ;;  %2721 = vmatprep.subr.bf16.mxu1 %v3651_v33  ;;  %v3245_v33 = vld [vmem:[%s4251_s1 + $0x464] ss:$8 sps:$4 sm:$0xff]  }
  0x9e   : > { %2166 = vmatprep.subr.bf16.mxu0 %v3233_v21 }
  0x9f   : > { %1842 = vmatmul.mubr.bf16.gmra.mrb[8].mxu1 %v3229_v12 }
  0xa0   : > { %2088 = vmatmul.mubr.bf16.gmra.mrb[8].mxu0 %v3230_v13  ;;  %2737 = vmatpush1.bf16.msra.mxu1 %v3659_v35  ;;  %v3243_v35 = vld [vmem:[%s4251_s1 + $0x460] ss:$8 sps:$4 sm:$0xff]  }
  0xa1   : > { %2167 = vmatpush1.bf16.msra.mxu0 %v3231_v23  ;;  %1851 = vmatprep.mubr.bf16.mxu1 %v3237_v14 }
  0xa2   : > { %2168 = vmatprep.subr.bf16.mxu0 %v3236_v24  ;;  %2722 = vmatprep.subr.bf16.mxu1 %v3668_v37  ;;  %v3249_v37 = vld [vmem:[%s3495_s17 + $0x12c] ss:$36 sps:$4 sm:$0xff]  }
  0xa3   : > { %2097 = vmatprep.mubr.bf16.mxu0 %v3239_v17 }
  0xa4   : > { %2738 = vmatpush1.bf16.msra.mxu1 %v3680_v41  ;;  %v3246_v41 = vld [vmem:[%s4251_s1 + $0x470] ss:$8 sps:$4 sm:$0xff]  }
  0xa5   : > { %2169 = vmatpush1.bf16.msra.mxu0 %v3234_v29  ;;  %2723 = vmatprep.subr.bf16.mxu1 %v3691_v45  ;;  %v3251_v45 = vld [vmem:[%s3495_s17 + $0x128] ss:$36 sps:$4 sm:$0xff]  }
  0xa6   : > { %2170 = vmatprep.subr.bf16.mxu0 %v3245_v33  ;;  %v522_v33 = vlaneseq }
  0xa7   : > { %1852 = vmatmul.mubr.bf16.gmra.mrb[12].mxu1 %v3241_v18 }
  0xa8   : > { %2098 = vmatmul.mubr.bf16.gmra.mrb[12].mxu0 %v3242_v19  ;;  %2739 = vmatpush1.bf16.msra.mxu1 %v3699_v47  ;;  %v3253_v47 = vld [vmem:[%s3495_s17 + $0x174] ss:$36 sps:$4 sm:$0xff]  }
  0xa9   : > { %2171 = vmatpush1.bf16.msra.mxu0 %v3243_v35  ;;  %1861 = vmatprep.mubr.bf16.mxu1 %v3249_v37 }
  0xaa   : > { %2172 = vmatprep.subr.bf16.mxu0 %v3248_v22  ;;  %2190 = vmatprep.mubr.bf16.mxu0 %v3312_v26  ;;  %v523_v22 = vshrl.u32 %v522_v33, 7 }
  0xab   : > { %2724 = vmatprep.subr.bf16.mxu1 %v3708_v49  ;;  %v3255_v49 = vld [vmem:[%s3495_s17 + $0x170] ss:$36 sps:$4 sm:$0xff]  }
  0xac   : > { %2740 = vmatpush1.bf16.msra.mxu1 %v3720_v53  ;;  %v3257_v53 = vld [vmem:[%s3495_s17 + $0x1bc] ss:$36 sps:$4 sm:$0xff]  }
  0xad   : > { %2173 = vmatpush1.bf16.msra.mxu0 %v3246_v41  ;;  %2725 = vmatprep.subr.bf16.mxu1 %v3728_v56  ;;  %v3259_v56 = vld [vmem:[%s3495_s17 + $0x1b8] ss:$36 sps:$4 sm:$0xff]   ;;  %v524_v41 = vsub.s32 0, %v523_v22 }
  0xaf   : > { %1862 = vmatmul.mubr.bf16.gmra.mrb[16].mxu1 %v3251_v45  ;;  %v528_v45 = vsub.s32 1, %v523_v22 }
  0xb0   : > { %2191 = vmatmul.mubr.bf16.vlgmr.msra.gmra.mrb[0].mxu0 %v3252_v27  ;;  %2741 = vmatpush1.bf16.msra.mxu1 %v3736_v58  ;;  %v3260_v58 = vld [vmem:[%s3495_s17 + $0xb0] ss:$36 sps:$4 sm:$0xff]  }
  0xb1   : > { %1871 = vmatprep.mubr.bf16.mxu1 %v3253_v47  ;;  %2200 = vmatprep.mubr.bf16.mxu0 %v3312_v26 }
  0xb2   : > { %2726 = vmatprep.subr.bf16.mxu1 %v3745_v60  ;;  %v3261_v60 = vld [vmem:[%s3495_s17 + $0x204] ss:$36 sps:$4 sm:$0xff]  }
  0xb4   : > { %2742 = vmatpush1.bf16.msra.mxu1 %v3756_v0  ;;  %v3263_v0 = vld [vmem:[%s3495_s17 + $0x200] ss:$36 sps:$4 sm:$0xff]  }
  0xb5   : > { %2727 = vmatprep.subr.bf16.mxu1 %v3768_v5  ;;  %v3264_v5 = vld [vmem:[%s3495_s17 + $0xf8] ss:$36 sps:$4 sm:$0xff]  }
  0xb7   : > { %1872 = vmatmul.mubr.bf16.gmra.mrb[20].mxu1 %v3255_v49 }
  0xb8   : > { %2201 = vmatmul.mubr.bf16.gmra.mrb[4].mxu0 %v3256_v30  ;;  %2743 = vmatpush1.bf16.msra.mxu1 %v3776_v7  ;;  %v3265_v7 = vld [vmem:[%s3495_s17 + $0x24c] ss:$36 sps:$4 sm:$0xff]  }
  0xb9   : > { %1881 = vmatprep.mubr.bf16.mxu1 %v3257_v53  ;;  %2210 = vmatprep.mubr.bf16.mxu0 %v3312_v26 }
  0xba   : > { %2728 = vmatprep.subr.bf16.mxu1 %v3785_v9  ;;  %v3267_v9 = vld [vmem:[%s3495_s17 + $0x248] ss:$36 sps:$4 sm:$0xff]  }
  0xbc   : > { %2744 = vmatpush1.bf16.msra.mxu1 %v3796_v15  ;;  %v3271_v15 = vld [vmem:[%s3495_s17 + $0x140] ss:$36 sps:$4 sm:$0xff]  }
  0xbd   : > { %2729 = vmatprep.subr.bf16.mxu1 %v3808_v20  ;;  %v3270_v20 = vld [vmem:[%s3495_s17 + $0x13c] ss:$36 sps:$4 sm:$0xff]  }
  0xbf   : > { %1882 = vmatmul.mubr.bf16.gmra.mrb[24].mxu1 %v3259_v56 }
  0xc0   : > { %2211 = vmatmul.mubr.bf16.gmra.mrb[8].mxu0 %v3260_v58  ;;  %1891 = vmatprep.mubr.bf16.mxu1 %v3261_v60 }
  0xc1   : > { %2745 = vmatpush1.bf16.msra.mxu1 %v3817_v25  ;;  %2220 = vmatprep.mubr.bf16.mxu0 %v3312_v26  ;;  %v3268_v25 = vld [vmem:[%s3495_s17 + $0x138] ss:$36 sps:$4 sm:$0xff]  }
  0xc2   : > { %2730 = vmatprep.subr.bf16.mxu1 %v3826_v28  ;;  %v3275_v28 = vld [vmem:[%s3495_s17 + $0x188] ss:$36 sps:$4 sm:$0xff]  }
  0xc5   : > { %2746 = vmatpush1.bf16.msra.mxu1 %v3836_v32  ;;  %v3274_v32 = vld [vmem:[%s3495_s17 + $0x180] ss:$36 sps:$4 sm:$0xff]  }
  0xc6   : > { %2731 = vmatprep.subr.bf16.mxu1 %v3848_v39  ;;  %v3283_v39 = vld [vmem:[%s3495_s17 + $0x218] ss:$36 sps:$4 sm:$0xff]  }
  0xc7   : > { %1892 = vmatmul.mubr.bf16.gmra.mrb[28].mxu1 %v3263_v0 }
  0xc8   : > { %2221 = vmatmul.mubr.bf16.gmra.mrb[12].mxu0 %v3264_v5  ;;  %1901 = vmatprep.mubr.bf16.mxu1 %v3265_v7 }
  0xc9   : > { %2747 = vmatpush1.bf16.msra.mxu1 %v3856_v42  ;;  %2230 = vmatprep.mubr.bf16.mxu0 %v3312_v26  ;;  %v3282_v42 = vld [vmem:[%s3495_s17 + $0x210] ss:$36 sps:$4 sm:$0xff]  }
  0xca   : > { %2732 = vmatprep.subr.bf16.mxu1 %v3865_v44  ;;  %v3284_v44 = vld [vmem:[%s3495_s17 + $0x25c] ss:$36 sps:$4 sm:$0xff]  }
  0xcd   : > { %2748 = vmatpush1.bf16.msra.mxu1 %v3873_v50 }
  0xcf   : > { %1902 = vmatmul.mubr.bf16.gmra.mrb[32].mxu1 %v3267_v9 }
  0xd0   : > { %2231 = vmatmul.mubr.bf16.gmra.mrb[36].mxu0 %v3271_v15  ;;  %2107 = vmatprep.mubr.bf16.mxu1 %v3270_v20 }
  0xd1   : > { %2240 = vmatprep.mubr.bf16.mxu0 %v3312_v26 }
  0xd7   : > { %2108 = vmatmul.mubr.bf16.vlgmr.msra.gmra.mrb[36].mxu1 %v3268_v25 }
  0xd8   : > { %2241 = vmatmul.mubr.bf16.gmra.mrb[40].mxu0 %v3275_v28  ;;  %2117 = vmatprep.mubr.bf16.mxu1 %v3272_v31 }
  0xd9   : > { %2250 = vmatprep.mubr.bf16.mxu0 %v3312_v26 }
  0xdf   : > { %2118 = vmatmul.mubr.bf16.gmra.mrb[40].mxu1 %v3274_v32 }
  0xe0   : > { %2251 = vmatmul.mubr.bf16.gmra.mrb[44].mxu0 %v3279_v34  ;;  %2127 = vmatprep.mubr.bf16.mxu1 %v3276_v36 }
  0xe1   : > { %2260 = vmatprep.mubr.bf16.mxu0 %v3312_v26 }
  0xe7   : > { %2128 = vmatmul.mubr.bf16.gmra.mrb[44].mxu1 %v3278_v38 }
  0xe8   : > { %2261 = vmatmul.mubr.bf16.gmra.mrb[48].mxu0 %v3283_v39  ;;  %2137 = vmatprep.mubr.bf16.mxu1 %v3280_v40 }
  0xe9   : > { %2270 = vmatprep.mubr.bf16.mxu0 %v3312_v26  ;;  %v520_v26 = vld [vmem:[%s4252_s2] sm:$0x3] }
  0xea   : > { %v4069_v30 = vrot.slane %v520_v26, %v524_v41  ;;  %v4073_v56 = vrot.slane %v520_v26, %v528_v45 }
  0xef   : > { %2138 = vmatmul.mubr.bf16.gmra.mrb[48].mxu1 %v3282_v42 }
  0xf0   : > { %2271 = vmatmul.mubr.bf16.gmra.mrb[52].mxu0 %v3287_v43  ;;  %2147 = vmatprep.mubr.bf16.mxu1 %v3284_v44 }
  0xf7   : > { %2148 = vmatmul.mubr.bf16.gmra.mrb[52].mxu1 %v3286_v46 }
 0x13b   : > { %v4012_v48 = vpop.f32.mrb[16].mxu0 }
 0x13c   : > { %v4014_v50 = vpop.f32.mrb[17].mxu0 }
 0x13d   : > { %v4016_v51 = vpop.f32.mrb[18].mxu0 }
 0x13e   : > { %v4018_v52 = vpop.f32.mrb[19].mxu0 }
 0x143   : > { %v4020_v54 = vpop.f32.mrb[20].mxu0 }
 0x144   : > { %v4022_v55 = vpop.f32.mrb[21].mxu0 }
 0x145   : > { %v4024_v57 = vpop.f32.mrb[22].mxu0 }
 0x146   : > { %v4026_v59 = vpop.f32.mrb[23].mxu0 }
 0x14b   : > { %v4028_v61 = vpop.f32.mrb[24].mxu0 }
 0x14c   : > { %v4030_v3 = vpop.f32.mrb[25].mxu0 }
 0x14d   : > { %v4032_v62 = vpop.f32.mrb[26].mxu0 }
 0x14e   : > { %v4034_v63 = vpop.f32.mrb[27].mxu0 }
 0x153   : > { %v4036_v1 = vpop.f32.mrb[28].mxu0 }
 0x154   : > { %v4038_v2 = vpop.f32.mrb[29].mxu0 }
 0x155   : > { %v4040_v4 = vpop.f32.mrb[30].mxu0 }
 0x156   : > { %v4042_v10 = vpop.f32.mrb[31].mxu0 }
 0x15b   : > { %v4044_v11 = vpop.f32.mrb[32].mxu0 }
 0x15c   : > { %v4046_v6 = vpop.f32.mrb[33].mxu0 }
 0x15d   : > { %v4048_v8 = vpop.f32.mrb[34].mxu0 }
 0x15e   : > { %v4050_v16 = vpop.f32.mrb[35].mxu0 }
 0x162   : > { %v1823_v21 = vpop.f32.mrb[0].mxu1 }
 0x163   : > { %v1825_v12 = vpop.f32.mrb[1].mxu1  ;;  %v2749_v58 = vadd.f32 %v1823_v21, %v4069_v30 }
 0x164   : > { %v1827_v13 = vpop.f32.mrb[2].mxu1  ;;  %v2751_v60 = vadd.f32 %v1825_v12, %v4073_v56 }
 0x165   : > { %v1829_v23 = vpop.f32.mrb[3].mxu1  ;;  %v2753_v7 = vadd.f32 %v1827_v13, %v4069_v30 }
 0x166   : > { %v2755_v28 = vadd.f32 %v1829_v23, %v4073_v56 }
 0x16a   : > { %v1833_v24 = vpop.f32.mrb[4].mxu1 }
 0x16b   : > { %v1835_v14 = vpop.f32.mrb[5].mxu1 }
 0x16c   : > { %v1837_v17 = vpop.f32.mrb[6].mxu1  ;;  %v2759_v26 = vadd.f32 %v1835_v14, %v4073_v56 }
 0x16d   : > { %v1839_v29 = vpop.f32.mrb[7].mxu1 }
 0x172   : > { %v4052_v18 = vpop.f32.mrb[8].mxu1 }
 0x173   : > { %v4054_v19 = vpop.f32.mrb[9].mxu1 }
 0x174   : > { %v4056_v35 = vpop.f32.mrb[10].mxu1 }
 0x175   : > { %v4058_v37 = vpop.f32.mrb[11].mxu1 }
 0x17a   : > { %v4063_v27 = vpop.f32.mrb[12].mxu1 }
 0x17b   : > { %v4065_v47 = vpop.f32.mrb[13].mxu1 }
 0x17c   : > { %v4067_v49 = vpop.f32.mrb[14].mxu1 }
 0x17d   : > { %v4071_v53 = vpop.f32.mrb[15].mxu1 }
 0x182   : > { %v1863_v0 = vpop.f32.mrb[16].mxu1 }
 0x183   : > { %v2192_v5 = vpop.f32.mrb[0].mxu0  ;;  %v2781_v9 = vadd.f32 %v1863_v0, %v4069_v30  ;;  %v1865_v20 = vpop.f32.mrb[17].mxu1 }
 0x184   : > { %v2750_v15 = vadd.f32 %v2749_v58, %v2192_v5  ;;  %v2194_v25 = vpop.f32.mrb[1].mxu0  ;;  %v2785_v31 = vadd.f32 %v1865_v20, %v4073_v56  ;;  %v1867_v34 = vpop.f32.mrb[18].mxu1 }
 0x185   : > { %v2752_v32 = vadd.f32 %v2751_v60, %v2194_v25  ;;  %v2196_v36 = vpop.f32.mrb[2].mxu0  ;;  %v2789_v39 = vadd.f32 %v1867_v34, %v4069_v30  ;;  %v1869_v42 = vpop.f32.mrb[19].mxu1  ;;  %v4089_v44 = vadd.f32 %v2781_v9, %v4012_v48  ;;  %v2757_v48 = vadd.f32 %v1833_v24, %v4069_v30 }
 0x186   : > { %v2281_v38 = vmax.f32 %v2750_v15, 0.0  ;;  %v2754_v40 = vadd.f32 %v2753_v7, %v2196_v36  ;;  %v2198_v43 = vpop.f32.mrb[3].mxu0  ;;  %v2793_v21 = vadd.f32 %v1869_v42, %v4073_v56  ;;  %v4093_v13 = vadd.f32 %v2785_v31, %v4014_v50 }
 0x187   : > { %v2282_v46 = vmax.f32 %v2752_v32, 0.0  ;;  %v2756_v12 = vadd.f32 %v2755_v28, %v2198_v43  ;;  %v4097_v33 = vadd.f32 %v2789_v39, %v4016_v51  ;;  %v2761_v50 = vadd.f32 %v1837_v17, %v4069_v30 }
 0x188   : > { %2317 = vst [vmem:[%s4084_s22] sm:$0xff] %v2281_v38  ;;  %v2283_v23 = vmax.f32 %v2754_v40, 0.0  ;;  %v4101_v41 = vadd.f32 %v2793_v21, %v4018_v52  ;;  %v2763_v7 = vadd.f32 %v1839_v29, %v4073_v56  ;;  %v2767_v43 = vadd.f32 %v4054_v19, %v4073_v56 }
 0x189   : > { %2318 = vst [vmem:[%s4084_s22 + $0x8] sm:$0xff] %v2282_v46  ;;  %v2284_v22 = vmax.f32 %v2756_v12, 0.0  ;;  %v2769_v21 = vadd.f32 %v4056_v35, %v4069_v30 }
 0x18a   : > { %2319 = vst [vmem:[%s4084_s22 + $0x10] sm:$0xff] %v2283_v23  ;;  %v1873_v45 = vpop.f32.mrb[20].mxu1 }
 0x18b   : > { %2320 = vst [vmem:[%s4084_s22 + $0x18] sm:$0xff] %v2284_v22  ;;  %v2202_v58 = vpop.f32.mrb[4].mxu0  ;;  %v2797_v60 = vadd.f32 %v1873_v45, %v4069_v30  ;;  %v1875_v51 = vpop.f32.mrb[21].mxu1 }
 0x18c   : > { %v2758_v0 = vadd.f32 %v2757_v48, %v2202_v58  ;;  %v2204_v5 = vpop.f32.mrb[5].mxu0  ;;  %v2801_v52 = vadd.f32 %v1875_v51, %v4073_v56  ;;  %v1877_v24 = vpop.f32.mrb[22].mxu1 }
 0x18d   : > { %v2760_v9 = vadd.f32 %v2759_v26, %v2204_v5  ;;  %v2206_v15 = vpop.f32.mrb[6].mxu0  ;;  %v2805_v20 = vadd.f32 %v1877_v24, %v4069_v30  ;;  %v1879_v17 = vpop.f32.mrb[23].mxu1  ;;  %v4113_v31 = vadd.f32 %v2797_v60, %v4020_v54  ;;  %v2765_v54 = vadd.f32 %v4052_v18, %v4069_v30 }
 0x18e   : > { %v2285_v14 = vmax.f32 %v2758_v0, 0.0  ;;  %v2762_v25 = vadd.f32 %v2761_v50, %v2206_v15  ;;  %v2208_v28 = vpop.f32.mrb[7].mxu0  ;;  %v2809_v29 = vadd.f32 %v1879_v17, %v4073_v56  ;;  %v4117_v36 = vadd.f32 %v2801_v52, %v4022_v55 }
 0x18f   : > { %v2286_v32 = vmax.f32 %v2760_v9, 0.0  ;;  %v2764_v34 = vadd.f32 %v2763_v7, %v2208_v28  ;;  %v4121_v39 = vadd.f32 %v2805_v20, %v4024_v57 }
 0x190   : > { %2321 = vst [vmem:[%s4084_s22 + $0x20] sm:$0xff] %v2285_v14  ;;  %v2287_v38 = vmax.f32 %v2762_v25, 0.0  ;;  %v4125_v42 = vadd.f32 %v2809_v29, %v4026_v59  ;;  %v2771_v59 = vadd.f32 %v4058_v37, %v4073_v56  ;;  %v2775_v14 = vadd.f32 %v4065_v47, %v4073_v56 }
 0x191   : > { %2322 = vst [vmem:[%s4084_s22 + $0x28] sm:$0xff] %v2286_v32  ;;  %v2288_v40 = vmax.f32 %v2764_v34, 0.0  ;;  %v2777_v25 = vadd.f32 %v4067_v49, %v4069_v30 }
 0x192   : > { %2323 = vst [vmem:[%s4084_s22 + $0x30] sm:$0xff] %v2287_v38  ;;  %v1883_v55 = vpop.f32.mrb[24].mxu1 }
 0x193   : > { %2324 = vst [vmem:[%s4084_s22 + $0x38] sm:$0xff] %v2288_v40  ;;  %v2212_v46 = vpop.f32.mrb[8].mxu0  ;;  %v2813_v57 = vadd.f32 %v1883_v55, %v4069_v30  ;;  %v1885_v23 = vpop.f32.mrb[25].mxu1 }
 0x194   : > { %v2766_v12 = vadd.f32 %v2765_v54, %v2212_v46  ;;  %v2214_v22 = vpop.f32.mrb[9].mxu0  ;;  %v2817_v18 = vadd.f32 %v1885_v23, %v4073_v56  ;;  %v1887_v19 = vpop.f32.mrb[26].mxu1 }
 0x195   : > { %v2768_v48 = vadd.f32 %v2767_v43, %v2214_v22  ;;  %v2216_v26 = vpop.f32.mrb[10].mxu0  ;;  %v2821_v58 = vadd.f32 %v1887_v19, %v4069_v30  ;;  %v1889_v50 = vpop.f32.mrb[27].mxu1  ;;  %v4141_v0 = vadd.f32 %v2813_v57, %v4028_v61  ;;  %v2773_v61 = vadd.f32 %v4063_v27, %v4069_v30 }
 0x196   : > { %v2289_v45 = vmax.f32 %v2766_v12, 0.0  ;;  %v2770_v35 = vadd.f32 %v2769_v21, %v2216_v26  ;;  %v2218_v60 = vpop.f32.mrb[11].mxu0  ;;  %v2825_v37 = vadd.f32 %v1889_v50, %v4073_v56  ;;  %v4145_v7 = vadd.f32 %v2817_v18, %v4030_v3 }
 0x197   : > { %v2290_v51 = vmax.f32 %v2768_v48, 0.0  ;;  %v2772_v5 = vadd.f32 %v2771_v59, %v2218_v60  ;;  %v4149_v9 = vadd.f32 %v2821_v58, %v4032_v62 }
 0x198   : > { %2325 = vst [vmem:[%s4084_s22 + $0x40] sm:$0xff] %v2289_v45  ;;  %v2291_v52 = vmax.f32 %v2770_v35, 0.0  ;;  %v4153_v15 = vadd.f32 %v2825_v37, %v4034_v63  ;;  %v2779_v63 = vadd.f32 %v4071_v53, %v4073_v56 }
 0x199   : > { %2326 = vst [vmem:[%s4084_s22 + $0x48] sm:$0xff] %v2290_v51  ;;  %v2292_v24 = vmax.f32 %v2772_v5, 0.0 }
 0x19a   : > { %2327 = vst [vmem:[%s4084_s22 + $0x50] sm:$0xff] %v2291_v52  ;;  %v1893_v3 = vpop.f32.mrb[28].mxu1 }
 0x19b   : > { %2328 = vst [vmem:[%s4084_s22 + $0x58] sm:$0xff] %v2292_v24  ;;  %v2222_v20 = vpop.f32.mrb[12].mxu0  ;;  %v2829_v62 = vadd.f32 %v1893_v3, %v4069_v30  ;;  %v1895_v28 = vpop.f32.mrb[29].mxu1 }
 0x19c   : > { %v2774_v17 = vadd.f32 %v2773_v61, %v2222_v20  ;;  %v2224_v32 = vpop.f32.mrb[13].mxu0  ;;  %v2833_v27 = vadd.f32 %v1895_v28, %v4073_v56  ;;  %v1897_v47 = vpop.f32.mrb[30].mxu1 }
 0x19d   : > { %v2776_v29 = vadd.f32 %v2775_v14, %v2224_v32  ;;  %v2226_v34 = vpop.f32.mrb[14].mxu0  ;;  %v2837_v40 = vadd.f32 %v1897_v47, %v4069_v30  ;;  %v1899_v54 = vpop.f32.mrb[31].mxu1  ;;  %v4169_v55 = vadd.f32 %v2829_v62, %v4036_v1 }
 0x19e   : > { %v2293_v38 = vmax.f32 %v2774_v17, 0.0  ;;  %v2778_v49 = vadd.f32 %v2777_v25, %v2226_v34  ;;  %v2228_v43 = vpop.f32.mrb[15].mxu0  ;;  %v2841_v53 = vadd.f32 %v1899_v54, %v4073_v56  ;;  %v4173_v57 = vadd.f32 %v2833_v27, %v4038_v2 }
 0x19f   : > { %v2294_v46 = vmax.f32 %v2776_v29, 0.0  ;;  %v2780_v21 = vadd.f32 %v2779_v63, %v2228_v43  ;;  %v4177_v23 = vadd.f32 %v2837_v40, %v4040_v4 }
 0x1a0   : > { %2329 = vst [vmem:[%s4084_s22 + $0x60] sm:$0xff] %v2293_v38  ;;  %v2295_v12 = vmax.f32 %v2778_v49, 0.0  ;;  %v4181_v59 = vadd.f32 %v2841_v53, %v4042_v10 }
 0x1a1   : > { %2330 = vst [vmem:[%s4084_s22 + $0x68] sm:$0xff] %v2294_v46  ;;  %v2296_v22 = vmax.f32 %v2780_v21, 0.0 }
 0x1a2   : > { %2331 = vst [vmem:[%s4084_s22 + $0x70] sm:$0xff] %v2295_v12  ;;  %v1903_v1 = vpop.f32.mrb[32].mxu1 }
 0x1a3   : > { %2332 = vst [vmem:[%s4084_s22 + $0x78] sm:$0xff] %v2296_v22  ;;  %v2232_v18 = vpop.f32.mrb[36].mxu0  ;;  %v2845_v48 = vadd.f32 %v1903_v1, %v4069_v30  ;;  %v1905_v19 = vpop.f32.mrb[33].mxu1 }
 0x1a4   : > { %v2234_v26 = vpop.f32.mrb[37].mxu0  ;;  %v2849_v2 = vadd.f32 %v1905_v19, %v4073_v56  ;;  %v1907_v45 = vpop.f32.mrb[34].mxu1 }
 0x1a5   : > { %v2236_v58 = vpop.f32.mrb[38].mxu0  ;;  %v2853_v4 = vadd.f32 %v1907_v45, %v4069_v30  ;;  %v1909_v35 = vpop.f32.mrb[35].mxu1  ;;  %v4189_v60 = vadd.f32 %v2845_v48, %v4044_v11 }
 0x1a6   : > { %v2238_v50 = vpop.f32.mrb[39].mxu0  ;;  %v2857_v10 = vadd.f32 %v1909_v35, %v4073_v56  ;;  %v4193_v51 = vadd.f32 %v2849_v2, %v4046_v6 }
 0x1a7   : > { %v4196_v37 = vadd.f32 %v2853_v4, %v4048_v8 }
 0x1a8   : > { %v4199_v5 = vadd.f32 %v2857_v10, %v4050_v16 }
 0x1aa   : > { %v2109_v52 = vpop.f32.mrb[36].mxu1 }
 0x1ab   : > { %v2242_v24 = vpop.f32.mrb[40].mxu0  ;;  %v2783_v30 = vadd.f32 %v4089_v44, %v2109_v52  ;;  %v2111_v61 = vpop.f32.mrb[37].mxu1 }
 0x1ac   : > { %v2244_v14 = vpop.f32.mrb[41].mxu0  ;;  %v2787_v11 = vadd.f32 %v4093_v13, %v2111_v61  ;;  %v2113_v56 = vpop.f32.mrb[38].mxu1 }
 0x1ad   : > { %v2246_v3 = vpop.f32.mrb[42].mxu0  ;;  %v2784_v6 = vadd.f32 %v2783_v30, %v2232_v18  ;;  %v2791_v8 = vadd.f32 %v4097_v33, %v2113_v56  ;;  %v2115_v20 = vpop.f32.mrb[39].mxu1 }
 0x1ae   : > { %v2248_v25 = vpop.f32.mrb[43].mxu0  ;;  %v2788_v16 = vadd.f32 %v2787_v11, %v2234_v26  ;;  %v2795_v62 = vadd.f32 %v4101_v41, %v2115_v20 }
 0x1af   : > { %v2297_v17 = vmax.f32 %v2784_v6, 0.0  ;;  %v2792_v44 = vadd.f32 %v2791_v8, %v2236_v58 }
 0x1b0   : > { %v2298_v28 = vmax.f32 %v2788_v16, 0.0  ;;  %v2796_v32 = vadd.f32 %v2795_v62, %v2238_v50 }
 0x1b1   : > { %2333 = vst [vmem:[%s4084_s22 + $0x80] sm:$0xff] %v2297_v17  ;;  %v2299_v63 = vmax.f32 %v2792_v44, 0.0 }
 0x1b2   : > { %2334 = vst [vmem:[%s4084_s22 + $0x88] sm:$0xff] %v2298_v28  ;;  %v2300_v13 = vmax.f32 %v2796_v32, 0.0  ;;  %v2119_v27 = vpop.f32.mrb[40].mxu1 }
 0x1b3   : > { %v2252_v29 = vpop.f32.mrb[44].mxu0  ;;  %2335 = vst [vmem:[%s4084_s22 + $0x90] sm:$0xff] %v2299_v63  ;;  %v2799_v47 = vadd.f32 %v4113_v31, %v2119_v27  ;;  %v2121_v33 = vpop.f32.mrb[41].mxu1 }
 0x1b4   : > { %v2254_v34 = vpop.f32.mrb[45].mxu0  ;;  %2336 = vst [vmem:[%s4084_s22 + $0x98] sm:$0xff] %v2300_v13  ;;  %v2803_v41 = vadd.f32 %v4117_v36, %v2121_v33  ;;  %v2123_v38 = vpop.f32.mrb[42].mxu1 }
 0x1b5   : > { %v2256_v40 = vpop.f32.mrb[46].mxu0  ;;  %v2800_v49 = vadd.f32 %v2799_v47, %v2242_v24  ;;  %v2807_v54 = vadd.f32 %v4121_v39, %v2123_v38  ;;  %v2125_v43 = vpop.f32.mrb[43].mxu1 }
 0x1b6   : > { %v2258_v46 = vpop.f32.mrb[47].mxu0  ;;  %v2804_v53 = vadd.f32 %v2803_v41, %v2244_v14  ;;  %v2811_v21 = vadd.f32 %v4125_v42, %v2125_v43 }
 0x1b7   : > { %v2301_v31 = vmax.f32 %v2800_v49, 0.0  ;;  %v2808_v12 = vadd.f32 %v2807_v54, %v2246_v3 }
 0x1b8   : > { %v2302_v22 = vmax.f32 %v2804_v53, 0.0  ;;  %v2812_v1 = vadd.f32 %v2811_v21, %v2248_v25 }
 0x1b9   : > { %2337 = vst [vmem:[%s4084_s22 + $0xa0] sm:$0xff] %v2301_v31  ;;  %v2303_v18 = vmax.f32 %v2808_v12, 0.0 }
 0x1ba   : > { %2338 = vst [vmem:[%s4084_s22 + $0xa8] sm:$0xff] %v2302_v22  ;;  %v2304_v36 = vmax.f32 %v2812_v1, 0.0  ;;  %v2129_v48 = vpop.f32.mrb[44].mxu1 }
 0x1bb   : > { %v2262_v19 = vpop.f32.mrb[48].mxu0  ;;  %2339 = vst [vmem:[%s4084_s22 + $0xb0] sm:$0xff] %v2303_v18  ;;  %v2815_v26 = vadd.f32 %v4141_v0, %v2129_v48  ;;  %v2131_v39 = vpop.f32.mrb[45].mxu1 }
 0x1bc   : > { %v2264_v2 = vpop.f32.mrb[49].mxu0  ;;  %2340 = vst [vmem:[%s4084_s22 + $0xb8] sm:$0xff] %v2304_v36  ;;  %v2819_v42 = vadd.f32 %v4145_v7, %v2131_v39  ;;  %v2133_v45 = vpop.f32.mrb[46].mxu1 }
 0x1bd   : > { %v2266_v58 = vpop.f32.mrb[50].mxu0  ;;  %v2816_v4 = vadd.f32 %v2815_v26, %v2252_v29  ;;  %v2823_v35 = vadd.f32 %v4149_v9, %v2133_v45  ;;  %v2135_v50 = vpop.f32.mrb[47].mxu1 }
 0x1be   : > { %v2268_v10 = vpop.f32.mrb[51].mxu0  ;;  %v2820_v52 = vadd.f32 %v2819_v42, %v2254_v34  ;;  %v2827_v24 = vadd.f32 %v4153_v15, %v2135_v50 }
 0x1bf   : > { %v2305_v0 = vmax.f32 %v2816_v4, 0.0  ;;  %v2824_v30 = vadd.f32 %v2823_v35, %v2256_v40 }
 0x1c0   : > { %v2306_v61 = vmax.f32 %v2820_v52, 0.0  ;;  %v2828_v14 = vadd.f32 %v2827_v24, %v2258_v46 }
 0x1c1   : > { %2341 = vst [vmem:[%s4084_s22 + $0xc0] sm:$0xff] %v2305_v0  ;;  %v2307_v11 = vmax.f32 %v2824_v30, 0.0 }
 0x1c2   : > { %2342 = vst [vmem:[%s4084_s22 + $0xc8] sm:$0xff] %v2306_v61  ;;  %v2308_v7 = vmax.f32 %v2828_v14, 0.0  ;;  %v2139_v56 = vpop.f32.mrb[48].mxu1 }
 0x1c3   : > { %v2272_v3 = vpop.f32.mrb[52].mxu0  ;;  %2343 = vst [vmem:[%s4084_s22 + $0xd0] sm:$0xff] %v2307_v11  ;;  %v2831_v6 = vadd.f32 %v4169_v55, %v2139_v56  ;;  %v2141_v9 = vpop.f32.mrb[49].mxu1 }
 0x1c4   : > { %v2274_v8 = vpop.f32.mrb[53].mxu0  ;;  %2344 = vst [vmem:[%s4084_s22 + $0xd8] sm:$0xff] %v2308_v7  ;;  %v2835_v15 = vadd.f32 %v4173_v57, %v2141_v9  ;;  %v2143_v20 = vpop.f32.mrb[50].mxu1 }
 0x1c5   : > { %v2276_v25 = vpop.f32.mrb[54].mxu0  ;;  %v2832_v16 = vadd.f32 %v2831_v6, %v2262_v19  ;;  %v2839_v62 = vadd.f32 %v4177_v23, %v2143_v20  ;;  %v2145_v17 = vpop.f32.mrb[51].mxu1 }
 0x1c6   : > { %v2278_v44 = vpop.f32.mrb[55].mxu0  ;;  %v2836_v28 = vadd.f32 %v2835_v15, %v2264_v2  ;;  %v2843_v32 = vadd.f32 %v4181_v59, %v2145_v17 }
 0x1c7   : > { %v2309_v55 = vmax.f32 %v2832_v16, 0.0  ;;  %v2840_v63 = vadd.f32 %v2839_v62, %v2266_v58 }
 0x1c8   : > { %v2310_v13 = vmax.f32 %v2836_v28, 0.0  ;;  %v2844_v27 = vadd.f32 %v2843_v32, %v2268_v10 }
 0x1c9   : > { %2345 = vst [vmem:[%s4084_s22 + $0xe0] sm:$0xff] %v2309_v55  ;;  %v2311_v29 = vmax.f32 %v2840_v63, 0.0 }
 0x1ca   : > { %2346 = vst [vmem:[%s4084_s22 + $0xe8] sm:$0xff] %v2310_v13  ;;  %v2312_v57 = vmax.f32 %v2844_v27, 0.0  ;;  %v2149_v47 = vpop.f32.mrb[52].mxu1 }
 0x1cb   : > { %2347 = vst [vmem:[%s4084_s22 + $0xf0] sm:$0xff] %v2311_v29  ;;  %v2847_v33 = vadd.f32 %v4189_v60, %v2149_v47  ;;  %v2151_v23 = vpop.f32.mrb[53].mxu1 }
 0x1cc   : > { %2348 = vst [vmem:[%s4084_s22 + $0xf8] sm:$0xff] %v2312_v57  ;;  %v2851_v34 = vadd.f32 %v4193_v51, %v2151_v23  ;;  %v2153_v59 = vpop.f32.mrb[54].mxu1 }
 0x1cd   : > { %v2848_v41 = vadd.f32 %v2847_v33, %v2272_v3  ;;  %v2855_v38 = vadd.f32 %v4196_v37, %v2153_v59  ;;  %v2155_v40 = vpop.f32.mrb[55].mxu1 }
 0x1ce   : > { %v2852_v49 = vadd.f32 %v2851_v34, %v2274_v8  ;;  %v2859_v54 = vadd.f32 %v4199_v5, %v2155_v40 }
 0x1cf   : > { %v2313_v43 = vmax.f32 %v2848_v41, 0.0  ;;  %v2856_v46 = vadd.f32 %v2855_v38, %v2276_v25 }
 0x1d0   : > { %v2314_v53 = vmax.f32 %v2852_v49, 0.0  ;;  %v2860_v21 = vadd.f32 %v2859_v54, %v2278_v44 }
 0x1d1   : > { %2349 = vst [vmem:[%s4084_s22 + $0x100] sm:$0xff] %v2313_v43  ;;  %v2315_v60 = vmax.f32 %v2856_v46, 0.0 }
 0x1d2   : > { %2350 = vst [vmem:[%s4084_s22 + $0x108] sm:$0xff] %v2314_v53  ;;  %v2316_v31 = vmax.f32 %v2860_v21, 0.0 }
 0x1d3   : > { %2351 = vst [vmem:[%s4084_s22 + $0x110] sm:$0xff] %v2315_v60 }
 0x1d4   : > { %2352 = vst [vmem:[%s4084_s22 + $0x118] sm:$0xff] %v2316_v31 }
 0x1d5 PF: > { %s13_s14 = sadd.s32 1, %s3310_s14   ;;  %s4254_s12 = smov %s3306_s13 }
 0x1d6   : > { %p10_p5 = scmp.ge.s32.totalorder %s13_s14, 4   ;;  %s4255_s13 = smov %s4257_s15 }
 0x1d8   :  { %12 = sbr.rel (!%p10_p5) target bundleno = 2 (0x2), region = 68 }

// kernel: _lambda_.7
= control target key start
LH: loop header
LB: loop body
LE: loop exit
PB: predicated region body
PF: predicated region fallthrough
CT: control target
= control target key end

     0   :  { %s2936_s24 = smov 0   ;;  %s2938_s25 = smov 0   ;;  %s3278_s0 = inlined_call_operand.vmem [shape: bf16[16,9216], index: 0, kind: input, shape index: {}]   ;;  %s3279_s1 = inlined_call_operand.vmem [shape: bf16[9216,256], index: 1, kind: input, shape index: {}]   ;;  %s3280_s2 = inlined_call_operand.vmem [shape: f32[1,256], index: 2, kind: input, shape index: {}]   ;;  %s3281_s3 = inlined_call_operand.vmem [shape: bf16[256,128], index: 3, kind: input, shape index: {}]   ;;  %s3282_s4 = inlined_call_operand.vmem [shape: f32[1,128], index: 4, kind: input, shape index: {}, may-alias: {4,6}]   ;;  %s3283_s5 = inlined_call_operand.vmem [shape: f32[1,128], index: 5, kind: input, shape index: {}]   ;;  %s3284_s6 = inlined_call_operand.vmem [shape: f32[1,128], index: 6, kind: input, shape index: {}, may-alias: {4,6}]   ;;  %s3285_s7 = inlined_call_operand.vmem [shape: f32[16,128], index: 7, kind: output, shape index: {}]  }
   0x1   :  { %s2940_s26 = smov 0   ;;  %s2942_s27 = smov 0  }
   0x2   :  { %s2944_s28 = smov 0  }
   0x3 LB: > { %s26_s29 = sadd.s32 1, %s2890_s27  ;;  %p45_p1 = scmp.ne.s32.totalorder %s2882_s25, %s2878_s24  ;;  %s2894_s28 = sphi %s2944_s28, %s17_s28   ;;  %s2890_s27 = sphi %s2942_s27, %s3289_s27   ;;  %s2886_s26 = sphi %s2940_s26, %s3288_s26   ;;  %s2882_s25 = sphi %s2938_s25, %s3287_s25   ;;  %s2878_s24 = sphi %s2936_s24, %s3286_s24  }
   0x4   : > { %p27_p0 = scmp.ge.s32.totalorder %s26_s29, 6  ;;  %p46_p2 = scmp.eq.s32.totalorder %s2894_s28, 0 }
   0x5   : > { %s38_s8 = sadd.s32 1, %s2882_s25  ;;  %p2209_p5 = scmp.ge.s32.totalorder %s2894_s28, 6 }
   0x6   : > { %s3291_s29 = smov (%p27_p0, %s26_s29), 0  ;;  %p47_p3 = por %p46_p2, %p45_p1 }
   0x7   : > { %s34_s30 = ssub.s32 %s2890_s27, %s3291_s29  ;;  %243 = sbr.rel (%p2209_p5) target bundleno = 25 (0x19), region = 36 }
   0x8   : > { %p36_p4 = scmp.eq.s32.totalorder %s34_s30, 0 }
   0xa   : > { %s2971_s9 = scalar_select %p36_p4, %s2882_s25, %s38_s8  }
   0xe   : > { %246 = sbr.rel (!%p47_p3) target bundleno = 25 (0x19), region = 40  ;;  %s248_s10 = sand.u32 (%p47_p3), 1, %s2882_s25  }
   0xf   : > { %s2444_s11 = smul.u32 (%p47_p3), 48, %s2890_s27 }
  0x10   : > { %s2488_s12 = smul.u32 (%p47_p3), 96, %s248_s10 }
  0x11   : > { %s256_s15 = scalar_lea.vmem (%p47_p3), %s3278_s0, %s2444_s11 }
  0x12   : > { %v269_v0 = vld [vmem:[%s256_s15] sm:$0xff] (%p47_p3)  ;;  %v271_v1 = vld [vmem:[%s256_s15 + $0x8] sm:$0xff] (%p47_p3)  ;;  %v273_v2 = vld [vmem:[%s256_s15 + $0x10] sm:$0xff] (%p47_p3)  ;;  %s250_s16 = scalar_lea.vmem (%p47_p3), [#allocation3], %s2488_s12 }
  0x13   : > { %270 = vst [vmem:[%s250_s16] sm:$0xff] (%p47_p3), %v269_v0  ;;  %272 = vst [vmem:[%s250_s16 + $0x8] sm:$0xff] (%p47_p3), %v271_v1  ;;  %v275_v3 = vld [vmem:[%s256_s15 + $0x18] sm:$0xff] (%p47_p3)  ;;  %v277_v4 = vld [vmem:[%s256_s15 + $0x20] sm:$0xff] (%p47_p3) }
  0x14   : > { %274 = vst [vmem:[%s250_s16 + $0x10] sm:$0xff] (%p47_p3), %v273_v2  ;;  %v279_v5 = vld [vmem:[%s256_s15 + $0x28] sm:$0xff] (%p47_p3)  ;;  %276 = vst [vmem:[%s250_s16 + $0x18] sm:$0xff] (%p47_p3), %v275_v3  ;;  %v281_v6 = vld [vmem:[%s256_s15 + $0x120] sm:$0xff] (%p47_p3) }
  0x15   : > { %278 = vst [vmem:[%s250_s16 + $0x20] sm:$0xff] %v277_v4  ;;  %280 = vst [vmem:[%s250_s16 + $0x28] sm:$0xff] %v279_v5  ;;  %v283_v7 = vld [vmem:[%s256_s15 + $0x128] sm:$0xff]  ;;  %v285_v8 = vld [vmem:[%s256_s15 + $0x130] sm:$0xff] }
  0x16   : > { %282 = vst [vmem:[%s250_s16 + $0x30] sm:$0xff] %v281_v6  ;;  %284 = vst [vmem:[%s250_s16 + $0x38] sm:$0xff] %v283_v7  ;;  %v287_v9 = vld [vmem:[%s256_s15 + $0x138] sm:$0xff]  ;;  %v289_v10 = vld [vmem:[%s256_s15 + $0x140] sm:$0xff] }
  0x17   : > { %286 = vst [vmem:[%s250_s16 + $0x40] sm:$0xff] %v285_v8  ;;  %v291_v11 = vld [vmem:[%s256_s15 + $0x148] sm:$0xff]  ;;  %288 = vst [vmem:[%s250_s16 + $0x48] sm:$0xff] %v287_v9 }
  0x18   : > { %290 = vst [vmem:[%s250_s16 + $0x50] sm:$0xff] %v289_v10  ;;  %292 = vst [vmem:[%s250_s16 + $0x58] sm:$0xff] %v291_v11 }
  0x19 PF: > { %p2211_p6 = scmp.ge.s32.totalorder %s2894_s28, 1  ;;  %p307_p7 = scmp.lt.s32.totalorder %s2894_s28, 7 }
  0x1b   : > { %p308_p8 = pnand %p2211_p6, %p307_p7 }
  0x1c   : > { %s353_s17 = smul.u32 (!%p308_p8), 192, %s2886_s26  ;;  %s314_s18 = sand.u32 (!%p308_p8), 1, %s2878_s24  }
  0x1d   : > { %311 = sbr.rel (%p308_p8) target bundleno = 1031 (0x407), region = 67  ;;  %p2418_p10 = scmp.ne.s32.totalorder (!%p308_p8), %s2886_s26, 0 }
  0x1e   : > { %s2489_s19 = smul.u32 (!%p308_p8), 96, %s314_s18  ;;  %p354_p9 = scmp.lt.s32.totalorder (!%p308_p8), %s353_s17, 1151 }
  0x20   : > { %s2983_s20 = scalar_lea.vmem (!%p308_p8), [#allocation3], %s2489_s19 }
  0x21   : > { %v2628_v12 = vld [vmem:[%s2983_s20 + $0x4] ss:$48 sps:$4 sm:$0xff] (!%p308_p8)   ;;  %v2634_v13 = vld [vmem:[%s2983_s20 + $0x1c] ss:$48 sps:$4 sm:$0xff] (!%p308_p8)  }
  0x22   : > { %1623 = vmatprep.mubr.bf16.mxu1 (!%p308_p8), %v2628_v12  ;;  %1752 = vmatprep.mubr.bf16.mxu0 (!%p308_p8), %v2634_v13 }
  0x24   : > { %s3293_s17 = smov (!%p354_p9, %s353_s17), 1151 }
  0x25   : > { %s2445_s21 = sshll.u32 %s3293_s17, 3 }
  0x26   : > { %s2990_s30 = scalar_lea.vmem %s3279_s1, %s2445_s21 }
  0x27   : > { %v2530_v14 = vld [vmem:[%s2990_s30 + $0x4] ss:$8 sps:$4 sm:$0xff]   ;;  %v2534_v16 = vld [vmem:[%s2990_s30] ss:$8 sps:$4 sm:$0xff]   ;;  %v2536_v18 = vld [vmem:[%s2990_s30 + $0x14] ss:$8 sps:$4 sm:$0xff]  }
  0x28   : > { %v2532_v15 = vld [vmem:[%s2990_s30 + $0x304] ss:$8 sps:$4 sm:$0xff]   ;;  %1591 = vmatprep.subr.bf16.mxu1 %v2530_v14  ;;  %v2535_v17 = vld [vmem:[%s2990_s30 + $0x300] ss:$8 sps:$4 sm:$0xff]   ;;  %v2538_v19 = vld [vmem:[%s2990_s30 + $0x314] ss:$8 sps:$4 sm:$0xff]  }
  0x29   : > { %1720 = vmatprep.subr.bf16.mxu0 %v2532_v15  ;;  %1592 = vmatpush1.bf16.msra.mxu1 %v2534_v16  ;;  %v2540_v20 = vld [vmem:[%s2990_s30 + $0x10] ss:$8 sps:$4 sm:$0xff]   ;;  %v2542_v22 = vld [vmem:[%s2990_s30 + $0x24] ss:$8 sps:$4 sm:$0xff]   ;;  %v2546_v24 = vld [vmem:[%s2990_s30 + $0x20] ss:$8 sps:$4 sm:$0xff]  }
  0x2a   : > { %1721 = vmatpush1.bf16.msra.mxu0 %v2535_v17  ;;  %1593 = vmatprep.subr.bf16.mxu1 %v2536_v18  ;;  %v2541_v21 = vld [vmem:[%s2990_s30 + $0x310] ss:$8 sps:$4 sm:$0xff]   ;;  %v2544_v23 = vld [vmem:[%s2990_s30 + $0x324] ss:$8 sps:$4 sm:$0xff]   ;;  %v2547_v25 = vld [vmem:[%s2990_s30 + $0x320] ss:$8 sps:$4 sm:$0xff]  }
  0x2b   : > { %1722 = vmatprep.subr.bf16.mxu0 %v2538_v19  ;;  %v2548_v26 = vld [vmem:[%s2990_s30 + $0x34] ss:$8 sps:$4 sm:$0xff]   ;;  %v2552_v28 = vld [vmem:[%s2990_s30 + $0x30] ss:$8 sps:$4 sm:$0xff]   ;;  %v2554_v30 = vld [vmem:[%s2990_s30 + $0x44] ss:$8 sps:$4 sm:$0xff]  }
  0x2c   : > { %v2550_v27 = vld [vmem:[%s2990_s30 + $0x334] ss:$8 sps:$4 sm:$0xff]   ;;  %v2553_v29 = vld [vmem:[%s2990_s30 + $0x330] ss:$8 sps:$4 sm:$0xff]   ;;  %v2556_v31 = vld [vmem:[%s2990_s30 + $0x344] ss:$8 sps:$4 sm:$0xff]  }
  0x2d   : > { %1594 = vmatpush1.bf16.msra.mxu1 %v2540_v20  ;;  %v2558_v32 = vld [vmem:[%s2990_s30 + $0x40] ss:$8 sps:$4 sm:$0xff]   ;;  %v2560_v34 = vld [vmem:[%s2990_s30 + $0x54] ss:$8 sps:$4 sm:$0xff]   ;;  %v2564_v36 = vld [vmem:[%s2990_s30 + $0x50] ss:$8 sps:$4 sm:$0xff]  }
  0x2e   : > { %1723 = vmatpush1.bf16.msra.mxu0 %v2541_v21  ;;  %1595 = vmatprep.subr.bf16.mxu1 %v2542_v22  ;;  %v2559_v33 = vld [vmem:[%s2990_s30 + $0x340] ss:$8 sps:$4 sm:$0xff]   ;;  %v2562_v35 = vld [vmem:[%s2990_s30 + $0x354] ss:$8 sps:$4 sm:$0xff]   ;;  %v2565_v37 = vld [vmem:[%s2990_s30 + $0x350] ss:$8 sps:$4 sm:$0xff]  }
  0x2f   : > { %1724 = vmatprep.subr.bf16.mxu0 %v2544_v23  ;;  %v2566_v38 = vld [vmem:[%s2990_s30 + $0x64] ss:$8 sps:$4 sm:$0xff]   ;;  %v2570_v40 = vld [vmem:[%s2990_s30 + $0x60] ss:$8 sps:$4 sm:$0xff]   ;;  %v2572_v42 = vld [vmem:[%s2990_s30 + $0x74] ss:$8 sps:$4 sm:$0xff]  }
  0x30   : > { %v2568_v39 = vld [vmem:[%s2990_s30 + $0x364] ss:$8 sps:$4 sm:$0xff]   ;;  %v2571_v41 = vld [vmem:[%s2990_s30 + $0x360] ss:$8 sps:$4 sm:$0xff]   ;;  %v2574_v43 = vld [vmem:[%s2990_s30 + $0x374] ss:$8 sps:$4 sm:$0xff]  }
  0x31   : > { %1596 = vmatpush1.bf16.msra.mxu1 %v2546_v24  ;;  %v2576_v44 = vld [vmem:[%s2990_s30 + $0x70] ss:$8 sps:$4 sm:$0xff]   ;;  %v2578_v46 = vld [vmem:[%s2990_s30 + $0x84] ss:$8 sps:$4 sm:$0xff]   ;;  %v2582_v48 = vld [vmem:[%s2990_s30 + $0x80] ss:$8 sps:$4 sm:$0xff]  }
  0x32   : > { %1725 = vmatpush1.bf16.msra.mxu0 %v2547_v25  ;;  %1597 = vmatprep.subr.bf16.mxu1 %v2548_v26  ;;  %v2577_v45 = vld [vmem:[%s2990_s30 + $0x370] ss:$8 sps:$4 sm:$0xff]   ;;  %v2580_v47 = vld [vmem:[%s2990_s30 + $0x384] ss:$8 sps:$4 sm:$0xff]   ;;  %v2583_v49 = vld [vmem:[%s2990_s30 + $0x380] ss:$8 sps:$4 sm:$0xff]  }
  0x33   : > { %1726 = vmatprep.subr.bf16.mxu0 %v2550_v27  ;;  %v2584_v50 = vld [vmem:[%s2990_s30 + $0x94] ss:$8 sps:$4 sm:$0xff]   ;;  %v2588_v52 = vld [vmem:[%s2990_s30 + $0x90] ss:$8 sps:$4 sm:$0xff]   ;;  %v2590_v54 = vld [vmem:[%s2990_s30 + $0xa4] ss:$8 sps:$4 sm:$0xff]  }
  0x34   : > { %v2586_v51 = vld [vmem:[%s2990_s30 + $0x394] ss:$8 sps:$4 sm:$0xff]   ;;  %v2589_v53 = vld [vmem:[%s2990_s30 + $0x390] ss:$8 sps:$4 sm:$0xff]   ;;  %v2592_v55 = vld [vmem:[%s2990_s30 + $0x3a4] ss:$8 sps:$4 sm:$0xff]  }
  0x35   : > { %1598 = vmatpush1.bf16.msra.mxu1 %v2552_v28  ;;  %v2594_v56 = vld [vmem:[%s2990_s30 + $0xa0] ss:$8 sps:$4 sm:$0xff]   ;;  %v2596_v58 = vld [vmem:[%s2990_s30 + $0xb4] ss:$8 sps:$4 sm:$0xff]   ;;  %v2600_v60 = vld [vmem:[%s2990_s30 + $0xb0] ss:$8 sps:$4 sm:$0xff]  }
  0x36   : > { %1727 = vmatpush1.bf16.msra.mxu0 %v2553_v29  ;;  %1599 = vmatprep.subr.bf16.mxu1 %v2554_v30  ;;  %v2595_v57 = vld [vmem:[%s2990_s30 + $0x3a0] ss:$8 sps:$4 sm:$0xff]   ;;  %v2598_v59 = vld [vmem:[%s2990_s30 + $0x3b4] ss:$8 sps:$4 sm:$0xff]   ;;  %v2601_v61 = vld [vmem:[%s2990_s30 + $0x3b0] ss:$8 sps:$4 sm:$0xff]  }
  0x37   : > { %1728 = vmatprep.subr.bf16.mxu0 %v2556_v31  ;;  %v2602_v62 = vld [vmem:[%s2990_s30 + $0xc4] ss:$8 sps:$4 sm:$0xff]   ;;  %v2606_v0 = vld [vmem:[%s2990_s30 + $0xc0] ss:$8 sps:$4 sm:$0xff]   ;;  %v2608_v2 = vld [vmem:[%s2990_s30 + $0xd4] ss:$8 sps:$4 sm:$0xff]  }
  0x38   : > { %v2604_v63 = vld [vmem:[%s2990_s30 + $0x3c4] ss:$8 sps:$4 sm:$0xff]   ;;  %v2607_v1 = vld [vmem:[%s2990_s30 + $0x3c0] ss:$8 sps:$4 sm:$0xff]   ;;  %v2610_v3 = vld [vmem:[%s2990_s30 + $0x3d4] ss:$8 sps:$4 sm:$0xff]  }
  0x39   : > { %1600 = vmatpush1.bf16.msra.mxu1 %v2558_v32  ;;  %v2612_v4 = vld [vmem:[%s2990_s30 + $0xd0] ss:$8 sps:$4 sm:$0xff]   ;;  %v2614_v6 = vld [vmem:[%s2990_s30 + $0xe4] ss:$8 sps:$4 sm:$0xff]   ;;  %v2618_v8 = vld [vmem:[%s2990_s30 + $0xe0] ss:$8 sps:$4 sm:$0xff]  }
  0x3a   : > { %1729 = vmatpush1.bf16.msra.mxu0 %v2559_v33  ;;  %1601 = vmatprep.subr.bf16.mxu1 %v2560_v34  ;;  %v2613_v5 = vld [vmem:[%s2990_s30 + $0x3d0] ss:$8 sps:$4 sm:$0xff]   ;;  %v2616_v7 = vld [vmem:[%s2990_s30 + $0x3e4] ss:$8 sps:$4 sm:$0xff]   ;;  %v2619_v9 = vld [vmem:[%s2990_s30 + $0x3e0] ss:$8 sps:$4 sm:$0xff]  }
  0x3b   : > { %1730 = vmatprep.subr.bf16.mxu0 %v2562_v35  ;;  %v2620_v10 = vld [vmem:[%s2990_s30 + $0xf4] ss:$8 sps:$4 sm:$0xff]   ;;  %v2624_v12 = vld [vmem:[%s2990_s30 + $0xf0] ss:$8 sps:$4 sm:$0xff]   ;;  %v2631_v14 = vld [vmem:[%s2990_s30 + $0x104] ss:$8 sps:$4 sm:$0xff]  }
  0x3c   : > { %v2622_v11 = vld [vmem:[%s2990_s30 + $0x3f4] ss:$8 sps:$4 sm:$0xff]   ;;  %v2625_v13 = vld [vmem:[%s2990_s30 + $0x3f0] ss:$8 sps:$4 sm:$0xff]   ;;  %v2637_v15 = vld [vmem:[%s2990_s30 + $0x404] ss:$8 sps:$4 sm:$0xff]  }
  0x3d   : > { %1602 = vmatpush1.bf16.msra.mxu1 %v2564_v36  ;;  %v2626_v16 = vld [vmem:[%s2983_s20] ss:$48 sps:$4 sm:$0xff]   ;;  %v2632_v17 = vld [vmem:[%s2983_s20 + $0x18] ss:$48 sps:$4 sm:$0xff]   ;;  %v2640_v20 = vld [vmem:[%s2990_s30 + $0x114] ss:$8 sps:$4 sm:$0xff]  }
  0x3e   : > { %1731 = vmatpush1.bf16.msra.mxu0 %v2565_v37  ;;  %1603 = vmatprep.subr.bf16.mxu1 %v2566_v38  ;;  %v2629_v18 = vld [vmem:[%s2990_s30 + $0x100] ss:$8 sps:$4 sm:$0xff]   ;;  %v2643_v21 = vld [vmem:[%s2990_s30 + $0x414] ss:$8 sps:$4 sm:$0xff]   ;;  %v2638_v22 = vld [vmem:[%s2990_s30 + $0x110] ss:$8 sps:$4 sm:$0xff]  }
  0x3f   : > { %1732 = vmatprep.subr.bf16.mxu0 %v2568_v39  ;;  %v2635_v19 = vld [vmem:[%s2990_s30 + $0x400] ss:$8 sps:$4 sm:$0xff]   ;;  %v2641_v23 = vld [vmem:[%s2990_s30 + $0x410] ss:$8 sps:$4 sm:$0xff]   ;;  %v2646_v24 = vld [vmem:[%s2990_s30 + $0x124] ss:$8 sps:$4 sm:$0xff]  }
  0x40   : > { %v2649_v25 = vld [vmem:[%s2990_s30 + $0x424] ss:$8 sps:$4 sm:$0xff]   ;;  %v2644_v26 = vld [vmem:[%s2990_s30 + $0x120] ss:$8 sps:$4 sm:$0xff]   ;;  %v2652_v28 = vld [vmem:[%s2990_s30 + $0x134] ss:$8 sps:$4 sm:$0xff]  }
  0x41   : > { %1604 = vmatpush1.bf16.msra.mxu1 %v2570_v40  ;;  %v2647_v27 = vld [vmem:[%s2990_s30 + $0x420] ss:$8 sps:$4 sm:$0xff]   ;;  %v2655_v29 = vld [vmem:[%s2990_s30 + $0x434] ss:$8 sps:$4 sm:$0xff]   ;;  %v2650_v30 = vld [vmem:[%s2990_s30 + $0x130] ss:$8 sps:$4 sm:$0xff]  }
  0x42   : > { %1733 = vmatpush1.bf16.msra.mxu0 %v2571_v41  ;;  %1605 = vmatprep.subr.bf16.mxu1 %v2572_v42  ;;  %v2653_v31 = vld [vmem:[%s2990_s30 + $0x430] ss:$8 sps:$4 sm:$0xff]   ;;  %v2658_v32 = vld [vmem:[%s2990_s30 + $0x144] ss:$8 sps:$4 sm:$0xff]   ;;  %v2656_v34 = vld [vmem:[%s2990_s30 + $0x140] ss:$8 sps:$4 sm:$0xff]  }
  0x43   : > { %1734 = vmatprep.subr.bf16.mxu0 %v2574_v43  ;;  %v2661_v33 = vld [vmem:[%s2990_s30 + $0x444] ss:$8 sps:$4 sm:$0xff]   ;;  %v2659_v35 = vld [vmem:[%s2990_s30 + $0x440] ss:$8 sps:$4 sm:$0xff]   ;;  %v2664_v36 = vld [vmem:[%s2990_s30 + $0x154] ss:$8 sps:$4 sm:$0xff]  }
  0x44   : > { %v2667_v37 = vld [vmem:[%s2990_s30 + $0x454] ss:$8 sps:$4 sm:$0xff]   ;;  %v2662_v38 = vld [vmem:[%s2990_s30 + $0x150] ss:$8 sps:$4 sm:$0xff]   ;;  %v2670_v40 = vld [vmem:[%s2990_s30 + $0x164] ss:$8 sps:$4 sm:$0xff]  }
  0x45   : > { %1606 = vmatpush1.bf16.msra.mxu1 %v2576_v44  ;;  %v2665_v39 = vld [vmem:[%s2990_s30 + $0x450] ss:$8 sps:$4 sm:$0xff]   ;;  %v2673_v41 = vld [vmem:[%s2990_s30 + $0x464] ss:$8 sps:$4 sm:$0xff]   ;;  %v2668_v43 = vld [vmem:[%s2990_s30 + $0x160] ss:$8 sps:$4 sm:$0xff]  }
  0x46   : > { %1735 = vmatpush1.bf16.msra.mxu0 %v2577_v45  ;;  %1607 = vmatprep.subr.bf16.mxu1 %v2578_v46  ;;  %v2730_v42 = vld [vmem:[%s2983_s20 + $0xc] ss:$48 sps:$4 sm:$0xff]   ;;  %v2671_v44 = vld [vmem:[%s2990_s30 + $0x460] ss:$8 sps:$4 sm:$0xff]   ;;  %v2736_v45 = vld [vmem:[%s2983_s20 + $0x24] ss:$48 sps:$4 sm:$0xff]  }
  0x47   : > { %1736 = vmatprep.subr.bf16.mxu0 %v2580_v47  ;;  %v2676_v46 = vld [vmem:[%s2990_s30 + $0x174] ss:$8 sps:$4 sm:$0xff]  }
  0x48   : > { %v2679_v47 = vld [vmem:[%s2990_s30 + $0x474] ss:$8 sps:$4 sm:$0xff]  }
  0x49   : > { %1608 = vmatpush1.bf16.msra.mxu1 %v2582_v48  ;;  %v2674_v48 = vld [vmem:[%s2990_s30 + $0x170] ss:$8 sps:$4 sm:$0xff]  }
  0x4a   : > { %1737 = vmatpush1.bf16.msra.mxu0 %v2583_v49  ;;  %1609 = vmatprep.subr.bf16.mxu1 %v2584_v50  ;;  %v2677_v49 = vld [vmem:[%s2990_s30 + $0x470] ss:$8 sps:$4 sm:$0xff]   ;;  %v2682_v50 = vld [vmem:[%s2990_s30 + $0x184] ss:$8 sps:$4 sm:$0xff]  }
  0x4b   : > { %1738 = vmatprep.subr.bf16.mxu0 %v2586_v51  ;;  %v2685_v51 = vld [vmem:[%s2990_s30 + $0x484] ss:$8 sps:$4 sm:$0xff]  }
  0x4d   : > { %1610 = vmatpush1.bf16.msra.mxu1 %v2588_v52  ;;  %v2680_v52 = vld [vmem:[%s2990_s30 + $0x180] ss:$8 sps:$4 sm:$0xff]  }
  0x4e   : > { %1739 = vmatpush1.bf16.msra.mxu0 %v2589_v53  ;;  %1611 = vmatprep.subr.bf16.mxu1 %v2590_v54  ;;  %v2683_v53 = vld [vmem:[%s2990_s30 + $0x480] ss:$8 sps:$4 sm:$0xff]   ;;  %v2688_v54 = vld [vmem:[%s2990_s30 + $0x194] ss:$8 sps:$4 sm:$0xff]  }
  0x4f   : > { %1740 = vmatprep.subr.bf16.mxu0 %v2592_v55  ;;  %v2691_v55 = vld [vmem:[%s2990_s30 + $0x494] ss:$8 sps:$4 sm:$0xff]  }
  0x51   : > { %1612 = vmatpush1.bf16.msra.mxu1 %v2594_v56  ;;  %v2686_v56 = vld [vmem:[%s2990_s30 + $0x190] ss:$8 sps:$4 sm:$0xff]  }
  0x52   : > { %1741 = vmatpush1.bf16.msra.mxu0 %v2595_v57  ;;  %1613 = vmatprep.subr.bf16.mxu1 %v2596_v58  ;;  %v2689_v57 = vld [vmem:[%s2990_s30 + $0x490] ss:$8 sps:$4 sm:$0xff]   ;;  %v2694_v58 = vld [vmem:[%s2990_s30 + $0x1a4] ss:$8 sps:$4 sm:$0xff]  }
  0x53   : > { %1742 = vmatprep.subr.bf16.mxu0 %v2598_v59  ;;  %v2697_v59 = vld [vmem:[%s2990_s30 + $0x4a4] ss:$8 sps:$4 sm:$0xff]  }
  0x55   : > { %1614 = vmatpush1.bf16.msra.mxu1 %v2600_v60  ;;  %v2692_v60 = vld [vmem:[%s2990_s30 + $0x1a0] ss:$8 sps:$4 sm:$0xff]  }
  0x56   : > { %1743 = vmatpush1.bf16.msra.mxu0 %v2601_v61  ;;  %1615 = vmatprep.subr.bf16.mxu1 %v2602_v62  ;;  %v2695_v61 = vld [vmem:[%s2990_s30 + $0x4a0] ss:$8 sps:$4 sm:$0xff]   ;;  %v2700_v62 = vld [vmem:[%s2990_s30 + $0x1b4] ss:$8 sps:$4 sm:$0xff]  }
  0x57   : > { %1744 = vmatprep.subr.bf16.mxu0 %v2604_v63  ;;  %v2703_v63 = vld [vmem:[%s2990_s30 + $0x4b4] ss:$8 sps:$4 sm:$0xff]  }
  0x59   : > { %1616 = vmatpush1.bf16.msra.mxu1 %v2606_v0  ;;  %v2698_v0 = vld [vmem:[%s2990_s30 + $0x1b0] ss:$8 sps:$4 sm:$0xff]  }
  0x5a   : > { %1745 = vmatpush1.bf16.msra.mxu0 %v2607_v1  ;;  %1617 = vmatprep.subr.bf16.mxu1 %v2608_v2  ;;  %v2701_v1 = vld [vmem:[%s2990_s30 + $0x4b0] ss:$8 sps:$4 sm:$0xff]   ;;  %v2706_v2 = vld [vmem:[%s2990_s30 + $0x1c4] ss:$8 sps:$4 sm:$0xff]  }
  0x5b   : > { %1746 = vmatprep.subr.bf16.mxu0 %v2610_v3  ;;  %v2709_v3 = vld [vmem:[%s2990_s30 + $0x4c4] ss:$8 sps:$4 sm:$0xff]  }
  0x5d   : > { %1618 = vmatpush1.bf16.msra.mxu1 %v2612_v4  ;;  %v2704_v4 = vld [vmem:[%s2990_s30 + $0x1c0] ss:$8 sps:$4 sm:$0xff]  }
  0x5e   : > { %1747 = vmatpush1.bf16.msra.mxu0 %v2613_v5  ;;  %1619 = vmatprep.subr.bf16.mxu1 %v2614_v6  ;;  %v2707_v5 = vld [vmem:[%s2990_s30 + $0x4c0] ss:$8 sps:$4 sm:$0xff]   ;;  %v2712_v6 = vld [vmem:[%s2990_s30 + $0x1d4] ss:$8 sps:$4 sm:$0xff]  }
  0x5f   : > { %1748 = vmatprep.subr.bf16.mxu0 %v2616_v7  ;;  %v2715_v7 = vld [vmem:[%s2990_s30 + $0x4d4] ss:$8 sps:$4 sm:$0xff]  }
  0x61   : > { %1620 = vmatpush1.bf16.msra.mxu1 %v2618_v8  ;;  %v2710_v8 = vld [vmem:[%s2990_s30 + $0x1d0] ss:$8 sps:$4 sm:$0xff]  }
  0x62   : > { %1749 = vmatpush1.bf16.msra.mxu0 %v2619_v9  ;;  %1621 = vmatprep.subr.bf16.mxu1 %v2620_v10  ;;  %v2713_v9 = vld [vmem:[%s2990_s30 + $0x4d0] ss:$8 sps:$4 sm:$0xff]   ;;  %v2718_v10 = vld [vmem:[%s2990_s30 + $0x1e4] ss:$8 sps:$4 sm:$0xff]  }
  0x63   : > { %1750 = vmatprep.subr.bf16.mxu0 %v2622_v11  ;;  %v2721_v11 = vld [vmem:[%s2990_s30 + $0x4e4] ss:$8 sps:$4 sm:$0xff]  }
  0x65   : > { %1622 = vmatpush1.bf16.msra.mxu1 %v2624_v12  ;;  %v2716_v12 = vld [vmem:[%s2990_s30 + $0x1e0] ss:$8 sps:$4 sm:$0xff]  }
  0x66   : > { %1751 = vmatpush1.bf16.msra.mxu0 %v2625_v13  ;;  %1634 = vmatprep.subr.bf16.mxu1 %v2631_v14  ;;  %v2719_v13 = vld [vmem:[%s2990_s30 + $0x4e0] ss:$8 sps:$4 sm:$0xff]   ;;  %v2724_v14 = vld [vmem:[%s2990_s30 + $0x1f4] ss:$8 sps:$4 sm:$0xff]  }
  0x67   : > { %1763 = vmatprep.subr.bf16.mxu0 %v2637_v15  ;;  %v2727_v15 = vld [vmem:[%s2990_s30 + $0x4f4] ss:$8 sps:$4 sm:$0xff]  }
  0x68   : > { %1624 = vmatmul.mubr.bf16.vlgmr.msra.gmra.mrb[0].mxu1 %v2626_v16  ;;  %v2722_v16 = vld [vmem:[%s2990_s30 + $0x1f0] ss:$8 sps:$4 sm:$0xff]  }
  0x69   : > { %1753 = vmatmul.mubr.bf16.vlgmr.msra.gmra.mrb[0].mxu0 %v2632_v17  ;;  %1635 = vmatpush1.bf16.msra.mxu1 %v2629_v18  ;;  %v2725_v17 = vld [vmem:[%s2990_s30 + $0x4f0] ss:$8 sps:$4 sm:$0xff]   ;;  %v2733_v18 = vld [vmem:[%s2990_s30 + $0x204] ss:$8 sps:$4 sm:$0xff]  }
  0x6a   : > { %1764 = vmatpush1.bf16.msra.mxu0 %v2635_v19  ;;  %1636 = vmatprep.subr.bf16.mxu1 %v2640_v20  ;;  %v2739_v19 = vld [vmem:[%s2990_s30 + $0x504] ss:$8 sps:$4 sm:$0xff]   ;;  %v2728_v20 = vld [vmem:[%s2983_s20 + $0x8] ss:$48 sps:$4 sm:$0xff]  }
  0x6b   : > { %1765 = vmatprep.subr.bf16.mxu0 %v2643_v21  ;;  %1666 = vmatprep.mubr.bf16.mxu1 %v2730_v42  ;;  %v2731_v21 = vld [vmem:[%s2990_s30 + $0x200] ss:$8 sps:$4 sm:$0xff]   ;;  %v2766_v42 = vld [vmem:[%s2990_s30 + $0x254] ss:$8 sps:$4 sm:$0xff]  }
  0x6c   : > { %1795 = vmatprep.mubr.bf16.mxu0 %v2736_v45  ;;  %v2767_v45 = vld [vmem:[%s2990_s30 + $0x550] ss:$8 sps:$4 sm:$0xff]  }
  0x6d   : > { %1637 = vmatpush1.bf16.msra.mxu1 %v2638_v22  ;;  %v2734_v22 = vld [vmem:[%s2983_s20 + $0x20] ss:$48 sps:$4 sm:$0xff]  }
  0x6e   : > { %1766 = vmatpush1.bf16.msra.mxu0 %v2641_v23  ;;  %1638 = vmatprep.subr.bf16.mxu1 %v2646_v24  ;;  %v2737_v23 = vld [vmem:[%s2990_s30 + $0x500] ss:$8 sps:$4 sm:$0xff]   ;;  %v2742_v24 = vld [vmem:[%s2990_s30 + $0x214] ss:$8 sps:$4 sm:$0xff]  }
  0x6f   : > { %1767 = vmatprep.subr.bf16.mxu0 %v2649_v25  ;;  %v2745_v25 = vld [vmem:[%s2990_s30 + $0x514] ss:$8 sps:$4 sm:$0xff]  }
  0x71   : > { %1639 = vmatpush1.bf16.msra.mxu1 %v2644_v26  ;;  %v2832_v26 = vld [vmem:[%s2983_s20 + $0x14] ss:$48 sps:$4 sm:$0xff]  }
  0x72   : > { %1768 = vmatpush1.bf16.msra.mxu0 %v2647_v27  ;;  %1640 = vmatprep.subr.bf16.mxu1 %v2652_v28  ;;  %v2835_v27 = vld [vmem:[%s2983_s20 + $0x2c] ss:$48 sps:$4 sm:$0xff]   ;;  %v2740_v28 = vld [vmem:[%s2990_s30 + $0x210] ss:$8 sps:$4 sm:$0xff]  }
  0x73   : > { %1769 = vmatprep.subr.bf16.mxu0 %v2655_v29  ;;  %v2743_v29 = vld [vmem:[%s2990_s30 + $0x510] ss:$8 sps:$4 sm:$0xff]  }
  0x75   : > { %1641 = vmatpush1.bf16.msra.mxu1 %v2650_v30  ;;  %v2748_v30 = vld [vmem:[%s2990_s30 + $0x224] ss:$8 sps:$4 sm:$0xff]  }
  0x76   : > { %1770 = vmatpush1.bf16.msra.mxu0 %v2653_v31  ;;  %1642 = vmatprep.subr.bf16.mxu1 %v2658_v32  ;;  %v2751_v31 = vld [vmem:[%s2990_s30 + $0x524] ss:$8 sps:$4 sm:$0xff]   ;;  %v2746_v32 = vld [vmem:[%s2990_s30 + $0x220] ss:$8 sps:$4 sm:$0xff]  }
  0x77   : > { %1771 = vmatprep.subr.bf16.mxu0 %v2661_v33  ;;  %v2749_v33 = vld [vmem:[%s2990_s30 + $0x520] ss:$8 sps:$4 sm:$0xff]  }
  0x79   : > { %1643 = vmatpush1.bf16.msra.mxu1 %v2656_v34  ;;  %v2754_v34 = vld [vmem:[%s2990_s30 + $0x234] ss:$8 sps:$4 sm:$0xff]  }
  0x7a   : > { %1772 = vmatpush1.bf16.msra.mxu0 %v2659_v35  ;;  %1644 = vmatprep.subr.bf16.mxu1 %v2664_v36  ;;  %v2757_v35 = vld [vmem:[%s2990_s30 + $0x534] ss:$8 sps:$4 sm:$0xff]   ;;  %v2752_v36 = vld [vmem:[%s2990_s30 + $0x230] ss:$8 sps:$4 sm:$0xff]  }
  0x7b   : > { %1773 = vmatprep.subr.bf16.mxu0 %v2667_v37  ;;  %v2755_v37 = vld [vmem:[%s2990_s30 + $0x530] ss:$8 sps:$4 sm:$0xff]  }
  0x7d   : > { %1645 = vmatpush1.bf16.msra.mxu1 %v2662_v38  ;;  %v2760_v38 = vld [vmem:[%s2990_s30 + $0x244] ss:$8 sps:$4 sm:$0xff]  }
  0x7e   : > { %1774 = vmatpush1.bf16.msra.mxu0 %v2665_v39  ;;  %1646 = vmatprep.subr.bf16.mxu1 %v2670_v40  ;;  %v2763_v39 = vld [vmem:[%s2990_s30 + $0x544] ss:$8 sps:$4 sm:$0xff]   ;;  %v2758_v40 = vld [vmem:[%s2990_s30 + $0x240] ss:$8 sps:$4 sm:$0xff]  }
  0x7f   : > { %1775 = vmatprep.subr.bf16.mxu0 %v2673_v41  ;;  %v2761_v41 = vld [vmem:[%s2990_s30 + $0x540] ss:$8 sps:$4 sm:$0xff]  }
  0x81   : > { %1647 = vmatpush1.bf16.msra.mxu1 %v2668_v43  ;;  %v2769_v43 = vld [vmem:[%s2990_s30 + $0x554] ss:$8 sps:$4 sm:$0xff]  }
  0x82   : > { %1776 = vmatpush1.bf16.msra.mxu0 %v2671_v44  ;;  %1648 = vmatprep.subr.bf16.mxu1 %v2676_v46  ;;  %v2764_v44 = vld [vmem:[%s2990_s30 + $0x250] ss:$8 sps:$4 sm:$0xff]   ;;  %v2772_v46 = vld [vmem:[%s2990_s30 + $0x264] ss:$8 sps:$4 sm:$0xff]  }
  0x83   : > { %1777 = vmatprep.subr.bf16.mxu0 %v2679_v47  ;;  %v2775_v47 = vld [vmem:[%s2990_s30 + $0x564] ss:$8 sps:$4 sm:$0xff]  }
  0x85   : > { %1649 = vmatpush1.bf16.msra.mxu1 %v2674_v48  ;;  %v2770_v48 = vld [vmem:[%s2990_s30 + $0x260] ss:$8 sps:$4 sm:$0xff]  }
  0x86   : > { %1778 = vmatpush1.bf16.msra.mxu0 %v2677_v49  ;;  %1650 = vmatprep.subr.bf16.mxu1 %v2682_v50  ;;  %v2773_v49 = vld [vmem:[%s2990_s30 + $0x560] ss:$8 sps:$4 sm:$0xff]   ;;  %v2778_v50 = vld [vmem:[%s2990_s30 + $0x274] ss:$8 sps:$4 sm:$0xff]  }
  0x87   : > { %1779 = vmatprep.subr.bf16.mxu0 %v2685_v51  ;;  %v2781_v51 = vld [vmem:[%s2990_s30 + $0x574] ss:$8 sps:$4 sm:$0xff]  }
  0x89   : > { %1651 = vmatpush1.bf16.msra.mxu1 %v2680_v52  ;;  %v2776_v52 = vld [vmem:[%s2990_s30 + $0x270] ss:$8 sps:$4 sm:$0xff]  }
  0x8a   : > { %1780 = vmatpush1.bf16.msra.mxu0 %v2683_v53  ;;  %1652 = vmatprep.subr.bf16.mxu1 %v2688_v54  ;;  %v2779_v53 = vld [vmem:[%s2990_s30 + $0x570] ss:$8 sps:$4 sm:$0xff]   ;;  %v2784_v54 = vld [vmem:[%s2990_s30 + $0x284] ss:$8 sps:$4 sm:$0xff]  }
  0x8b   : > { %1781 = vmatprep.subr.bf16.mxu0 %v2691_v55  ;;  %v2787_v55 = vld [vmem:[%s2990_s30 + $0x584] ss:$8 sps:$4 sm:$0xff]  }
  0x8d   : > { %1653 = vmatpush1.bf16.msra.mxu1 %v2686_v56  ;;  %v2782_v56 = vld [vmem:[%s2990_s30 + $0x280] ss:$8 sps:$4 sm:$0xff]  }
  0x8e   : > { %1782 = vmatpush1.bf16.msra.mxu0 %v2689_v57  ;;  %1654 = vmatprep.subr.bf16.mxu1 %v2694_v58  ;;  %v2785_v57 = vld [vmem:[%s2990_s30 + $0x580] ss:$8 sps:$4 sm:$0xff]   ;;  %v2790_v58 = vld [vmem:[%s2990_s30 + $0x294] ss:$8 sps:$4 sm:$0xff]  }
  0x8f   : > { %1783 = vmatprep.subr.bf16.mxu0 %v2697_v59  ;;  %v2793_v59 = vld [vmem:[%s2990_s30 + $0x594] ss:$8 sps:$4 sm:$0xff]  }
  0x91   : > { %1655 = vmatpush1.bf16.msra.mxu1 %v2692_v60  ;;  %v2788_v60 = vld [vmem:[%s2990_s30 + $0x290] ss:$8 sps:$4 sm:$0xff]  }
  0x92   : > { %1784 = vmatpush1.bf16.msra.mxu0 %v2695_v61  ;;  %1656 = vmatprep.subr.bf16.mxu1 %v2700_v62  ;;  %v2791_v61 = vld [vmem:[%s2990_s30 + $0x590] ss:$8 sps:$4 sm:$0xff]   ;;  %v2796_v62 = vld [vmem:[%s2990_s30 + $0x2a4] ss:$8 sps:$4 sm:$0xff]  }
  0x93   : > { %1785 = vmatprep.subr.bf16.mxu0 %v2703_v63  ;;  %v2799_v63 = vld [vmem:[%s2990_s30 + $0x5a4] ss:$8 sps:$4 sm:$0xff]  }
  0x95   : > { %1657 = vmatpush1.bf16.msra.mxu1 %v2698_v0  ;;  %v2794_v0 = vld [vmem:[%s2990_s30 + $0x2a0] ss:$8 sps:$4 sm:$0xff]  }
  0x96   : > { %1786 = vmatpush1.bf16.msra.mxu0 %v2701_v1  ;;  %1658 = vmatprep.subr.bf16.mxu1 %v2706_v2  ;;  %v2797_v1 = vld [vmem:[%s2990_s30 + $0x5a0] ss:$8 sps:$4 sm:$0xff]   ;;  %v2802_v2 = vld [vmem:[%s2990_s30 + $0x2b4] ss:$8 sps:$4 sm:$0xff]  }
  0x97   : > { %1787 = vmatprep.subr.bf16.mxu0 %v2709_v3  ;;  %v2805_v3 = vld [vmem:[%s2990_s30 + $0x5b4] ss:$8 sps:$4 sm:$0xff]  }
  0x99   : > { %1659 = vmatpush1.bf16.msra.mxu1 %v2704_v4  ;;  %v2800_v4 = vld [vmem:[%s2990_s30 + $0x2b0] ss:$8 sps:$4 sm:$0xff]  }
  0x9a   : > { %1788 = vmatpush1.bf16.msra.mxu0 %v2707_v5  ;;  %1660 = vmatprep.subr.bf16.mxu1 %v2712_v6  ;;  %v2803_v5 = vld [vmem:[%s2990_s30 + $0x5b0] ss:$8 sps:$4 sm:$0xff]   ;;  %v2808_v6 = vld [vmem:[%s2990_s30 + $0x2c4] ss:$8 sps:$4 sm:$0xff]  }
  0x9b   : > { %1789 = vmatprep.subr.bf16.mxu0 %v2715_v7  ;;  %v2811_v7 = vld [vmem:[%s2990_s30 + $0x5c4] ss:$8 sps:$4 sm:$0xff]  }
  0x9d   : > { %1661 = vmatpush1.bf16.msra.mxu1 %v2710_v8  ;;  %v2806_v8 = vld [vmem:[%s2990_s30 + $0x2c0] ss:$8 sps:$4 sm:$0xff]  }
  0x9e   : > { %1790 = vmatpush1.bf16.msra.mxu0 %v2713_v9  ;;  %1662 = vmatprep.subr.bf16.mxu1 %v2718_v10  ;;  %v2809_v9 = vld [vmem:[%s2990_s30 + $0x5c0] ss:$8 sps:$4 sm:$0xff]   ;;  %v2814_v10 = vld [vmem:[%s2990_s30 + $0x2d4] ss:$8 sps:$4 sm:$0xff]  }
  0x9f   : > { %1791 = vmatprep.subr.bf16.mxu0 %v2721_v11  ;;  %v2817_v11 = vld [vmem:[%s2990_s30 + $0x5d4] ss:$8 sps:$4 sm:$0xff]  }
  0xa1   : > { %1663 = vmatpush1.bf16.msra.mxu1 %v2716_v12  ;;  %v2812_v12 = vld [vmem:[%s2990_s30 + $0x2d0] ss:$8 sps:$4 sm:$0xff]  }
  0xa2   : > { %1792 = vmatpush1.bf16.msra.mxu0 %v2719_v13  ;;  %1664 = vmatprep.subr.bf16.mxu1 %v2724_v14  ;;  %v2815_v13 = vld [vmem:[%s2990_s30 + $0x5d0] ss:$8 sps:$4 sm:$0xff]   ;;  %v2820_v14 = vld [vmem:[%s2990_s30 + $0x2e4] ss:$8 sps:$4 sm:$0xff]  }
  0xa3   : > { %1793 = vmatprep.subr.bf16.mxu0 %v2727_v15  ;;  %v2823_v15 = vld [vmem:[%s2990_s30 + $0x5e4] ss:$8 sps:$4 sm:$0xff]  }
  0xa5   : > { %1665 = vmatpush1.bf16.msra.mxu1 %v2722_v16  ;;  %v2818_v16 = vld [vmem:[%s2990_s30 + $0x2e0] ss:$8 sps:$4 sm:$0xff]  }
  0xa6   : > { %1794 = vmatpush1.bf16.msra.mxu0 %v2725_v17  ;;  %1677 = vmatprep.subr.bf16.mxu1 %v2733_v18  ;;  %v2821_v17 = vld [vmem:[%s2990_s30 + $0x5e0] ss:$8 sps:$4 sm:$0xff]   ;;  %v2826_v18 = vld [vmem:[%s2990_s30 + $0x2f4] ss:$8 sps:$4 sm:$0xff]  }
  0xa7   : > { %1806 = vmatprep.subr.bf16.mxu0 %v2739_v19  ;;  %v2829_v19 = vld [vmem:[%s2990_s30 + $0x5f4] ss:$8 sps:$4 sm:$0xff]  }
  0xa8   : > { %1667 = vmatmul.mubr.bf16.vlgmr.msra.gmra.mrb[0].mxu1 %v2728_v20  ;;  %v2824_v20 = vld [vmem:[%s2990_s30 + $0x2f0] ss:$8 sps:$4 sm:$0xff]  }
  0xa9   : > { %1796 = vmatmul.mubr.bf16.vlgmr.msra.gmra.mrb[0].mxu0 %v2734_v22  ;;  %1678 = vmatpush1.bf16.msra.mxu1 %v2731_v21  ;;  %v2827_v21 = vld [vmem:[%s2990_s30 + $0x5f0] ss:$8 sps:$4 sm:$0xff]  }
  0xaa   : > { %1807 = vmatpush1.bf16.msra.mxu0 %v2737_v23  ;;  %1679 = vmatprep.subr.bf16.mxu1 %v2742_v24  ;;  %v2830_v22 = vld [vmem:[%s2983_s20 + $0x10] ss:$48 sps:$4 sm:$0xff]   ;;  %v2833_v23 = vld [vmem:[%s2983_s20 + $0x28] ss:$48 sps:$4 sm:$0xff]  }
  0xab   : > { %1808 = vmatprep.subr.bf16.mxu0 %v2745_v25  ;;  %1709 = vmatprep.mubr.bf16.mxu1 %v2832_v26 }
  0xac   : > { %1838 = vmatprep.mubr.bf16.mxu0 %v2835_v27 }
  0xad   : > { %1680 = vmatpush1.bf16.msra.mxu1 %v2740_v28 }
  0xae   : > { %1809 = vmatpush1.bf16.msra.mxu0 %v2743_v29  ;;  %1681 = vmatprep.subr.bf16.mxu1 %v2748_v30 }
  0xaf   : > { %1810 = vmatprep.subr.bf16.mxu0 %v2751_v31 }
  0xb1   : > { %1682 = vmatpush1.bf16.msra.mxu1 %v2746_v32 }
  0xb2   : > { %1811 = vmatpush1.bf16.msra.mxu0 %v2749_v33  ;;  %1683 = vmatprep.subr.bf16.mxu1 %v2754_v34 }
  0xb3   : > { %1812 = vmatprep.subr.bf16.mxu0 %v2757_v35 }
  0xb5   : > { %1684 = vmatpush1.bf16.msra.mxu1 %v2752_v36 }
  0xb6   : > { %1813 = vmatpush1.bf16.msra.mxu0 %v2755_v37  ;;  %1685 = vmatprep.subr.bf16.mxu1 %v2760_v38 }
  0xb7   : > { %1814 = vmatprep.subr.bf16.mxu0 %v2763_v39 }
  0xb9   : > { %1686 = vmatpush1.bf16.msra.mxu1 %v2758_v40 }
  0xba   : > { %1815 = vmatpush1.bf16.msra.mxu0 %v2761_v41  ;;  %1687 = vmatprep.subr.bf16.mxu1 %v2766_v42 }
  0xbb   : > { %1816 = vmatprep.subr.bf16.mxu0 %v2769_v43 }
  0xbd   : > { %1688 = vmatpush1.bf16.msra.mxu1 %v2764_v44 }
  0xbe   : > { %1817 = vmatpush1.bf16.msra.mxu0 %v2767_v45  ;;  %1689 = vmatprep.subr.bf16.mxu1 %v2772_v46 }
  0xbf   : > { %1818 = vmatprep.subr.bf16.mxu0 %v2775_v47 }
  0xc1   : > { %1690 = vmatpush1.bf16.msra.mxu1 %v2770_v48 }
  0xc2   : > { %1819 = vmatpush1.bf16.msra.mxu0 %v2773_v49  ;;  %1691 = vmatprep.subr.bf16.mxu1 %v2778_v50 }
  0xc3   : > { %1820 = vmatprep.subr.bf16.mxu0 %v2781_v51 }
  0xc5   : > { %1692 = vmatpush1.bf16.msra.mxu1 %v2776_v52 }
  0xc6   : > { %1821 = vmatpush1.bf16.msra.mxu0 %v2779_v53  ;;  %1693 = vmatprep.subr.bf16.mxu1 %v2784_v54 }
  0xc7   : > { %1822 = vmatprep.subr.bf16.mxu0 %v2787_v55 }
  0xc9   : > { %1694 = vmatpush1.bf16.msra.mxu1 %v2782_v56 }
  0xca   : > { %1823 = vmatpush1.bf16.msra.mxu0 %v2785_v57  ;;  %1695 = vmatprep.subr.bf16.mxu1 %v2790_v58 }
  0xcb   : > { %1824 = vmatprep.subr.bf16.mxu0 %v2793_v59 }
  0xcd   : > { %1696 = vmatpush1.bf16.msra.mxu1 %v2788_v60 }
  0xce   : > { %1825 = vmatpush1.bf16.msra.mxu0 %v2791_v61  ;;  %1697 = vmatprep.subr.bf16.mxu1 %v2796_v62 }
  0xcf   : > { %1826 = vmatprep.subr.bf16.mxu0 %v2799_v63 }
  0xd1   : > { %1698 = vmatpush1.bf16.msra.mxu1 %v2794_v0 }
  0xd2   : > { %1827 = vmatpush1.bf16.msra.mxu0 %v2797_v1  ;;  %1699 = vmatprep.subr.bf16.mxu1 %v2802_v2 }
  0xd3   : > { %1828 = vmatprep.subr.bf16.mxu0 %v2805_v3 }
  0xd5   : > { %1700 = vmatpush1.bf16.msra.mxu1 %v2800_v4 }
  0xd6   : > { %1829 = vmatpush1.bf16.msra.mxu0 %v2803_v5  ;;  %1701 = vmatprep.subr.bf16.mxu1 %v2808_v6 }
  0xd7   : > { %1830 = vmatprep.subr.bf16.mxu0 %v2811_v7 }
  0xd9   : > { %1702 = vmatpush1.bf16.msra.mxu1 %v2806_v8 }
  0xda   : > { %1831 = vmatpush1.bf16.msra.mxu0 %v2809_v9  ;;  %1703 = vmatprep.subr.bf16.mxu1 %v2814_v10 }
  0xdb   : > { %1832 = vmatprep.subr.bf16.mxu0 %v2817_v11 }
  0xdd   : > { %1704 = vmatpush1.bf16.msra.mxu1 %v2812_v12 }
  0xde   : > { %1833 = vmatpush1.bf16.msra.mxu0 %v2815_v13  ;;  %1705 = vmatprep.subr.bf16.mxu1 %v2820_v14 }
  0xdf   : > { %1834 = vmatprep.subr.bf16.mxu0 %v2823_v15 }
  0xe1   : > { %1706 = vmatpush1.bf16.msra.mxu1 %v2818_v16 }
  0xe2   : > { %1835 = vmatpush1.bf16.msra.mxu0 %v2821_v17  ;;  %1707 = vmatprep.subr.bf16.mxu1 %v2826_v18 }
  0xe3   : > { %1836 = vmatprep.subr.bf16.mxu0 %v2829_v19 }
  0xe5   : > { %1708 = vmatpush1.bf16.msra.mxu1 %v2824_v20 }
  0xe6   : > { %1837 = vmatpush1.bf16.msra.mxu0 %v2827_v21 }
  0xe8   : > { %1710 = vmatmul.mubr.bf16.vlgmr.msra.gmra.mrb[0].mxu1 %v2830_v22 }
  0xe9   : > { %1839 = vmatmul.mubr.bf16.vlgmr.msra.gmra.mrb[0].mxu0 %v2833_v23 }
 0x1ba   : > { %1852 = sbr.rel (%p2418_p10) target bundleno = 451 (0x1c3), region = 75 }
 0x1bb   : > { %v1711_v24 = vpop.f32.mrb[0].mxu1 }
 0x1bc   : > { %v1840_v25 = vpop.f32.mrb[0].mxu0  ;;  %v1713_v27 = vpop.f32.mrb[1].mxu1 }
 0x1bd   : > { %v2468_v26 = vadd.f32 %v1840_v25, %v1711_v24  ;;  %v1842_v28 = vpop.f32.mrb[1].mxu0  ;;  %v1715_v30 = vpop.f32.mrb[2].mxu1 }
 0x1be   : > { %v2469_v29 = vadd.f32 %v1842_v28, %v1713_v27  ;;  %v1844_v31 = vpop.f32.mrb[2].mxu0  ;;  %v1717_v33 = vpop.f32.mrb[3].mxu1 }
 0x1bf   : > { %v2470_v32 = vadd.f32 %v1844_v31, %v1715_v30  ;;  %v1846_v34 = vpop.f32.mrb[3].mxu0  ;;  %1853 = vst [vmem:[#allocation2] sm:$0xff] (!%p2418_p10), %v2468_v26 }
 0x1c0   : > { %v2471_v35 = vadd.f32 %v1846_v34, %v1717_v33  ;;  %1854 = vst [vmem:[#allocation2 + $0x8] sm:$0xff] (!%p2418_p10), %v2469_v29 }
 0x1c1   : > { %1855 = vst [vmem:[#allocation2 + $0x10] sm:$0xff] %v2470_v32 }
 0x1c2   : > { %1856 = vst [vmem:[#allocation2 + $0x18] sm:$0xff] %v2471_v35 }
 0x1c3 PF: > { %p2419_p11 = scmp.le.s32.totalorder %s2886_s26, 0 }
 0x1c5   : > { %1860 = sbr.rel (%p2419_p11) target bundleno = 462 (0x1ce), region = 79 }
 0x1c8   : > { %v1861_v36 = vld [vmem:[#allocation2] sm:$0xff] (!%p2419_p11) }
 0x1c9   : > { %v1862_v37 = vld [vmem:[#allocation2 + $0x8] sm:$0xff] (!%p2419_p11)  ;;  %v1865_v39 = vadd.f32 (!%p2419_p11), %v2468_v26, %v1861_v36  ;;  %v1864_v42 = vld [vmem:[#allocation2 + $0x18] sm:$0xff] (!%p2419_p11) }
 0x1ca   : > { %v1863_v38 = vld [vmem:[#allocation2 + $0x10] sm:$0xff] (!%p2419_p11)  ;;  %v1866_v40 = vadd.f32 (!%p2419_p11), %v2469_v29, %v1862_v37  ;;  %v1868_v43 = vadd.f32 (!%p2419_p11), %v2471_v35, %v1864_v42 }
 0x1cb   : > { %v1867_v41 = vadd.f32 (!%p2419_p11), %v2470_v32, %v1863_v38  ;;  %1869 = vst [vmem:[#allocation2] sm:$0xff] (!%p2419_p11), %v1865_v39 }
 0x1cc   : > { %1870 = vst [vmem:[#allocation2 + $0x8] sm:$0xff] %v1866_v40  ;;  %1872 = vst [vmem:[#allocation2 + $0x18] sm:$0xff] %v1868_v43 }
 0x1cd   : > { %1871 = vst [vmem:[#allocation2 + $0x10] sm:$0xff] %v1867_v41 }
 0x1ce PF: > { %p2420_p12 = scmp.ne.s32.totalorder %s2886_s26, 5 }
 0x1cf   : > { %v2836_v44 = vld [vmem:[%s3281_s3 + $0x40] sm:$0xff] (!%p2420_p12)   ;;  %v2838_v46 = vld [vmem:[%s3281_s3 + $0x48] sm:$0xff] (!%p2420_p12)   ;;  %v2840_v48 = vld [vmem:[%s3281_s3 + $0x50] sm:$0xff] (!%p2420_p12)   ;;  %v1883_v49 = vlaneseq (!%p2420_p12) }
 0x1d0   : > { %1876 = sbr.rel (%p2420_p12) target bundleno = 1031 (0x407), region = 83  ;;  %v2837_v45 = vld [vmem:[%s3281_s3] sm:$0xff] (!%p2420_p12)   ;;  %2446 = vmatprep.subr.bf16.mxu0 (!%p2420_p12), %v2836_v44  ;;  %v2839_v47 = vld [vmem:[%s3281_s3 + $0x8] sm:$0xff] (!%p2420_p12)   ;;  %v2841_v50 = vld [vmem:[%s3281_s3 + $0x10] sm:$0xff] (!%p2420_p12)  }
 0x1d1   : > { %2447 = vmatpush3.bf16.msra.mxu0 (!%p2420_p12), %v2837_v45  ;;  %v2842_v51 = vld [vmem:[%s3281_s3 + $0x58] sm:$0xff] (!%p2420_p12)   ;;  %v1884_v52 = vshrl.u32 (!%p2420_p12), %v1883_v49, 7  ;;  %v2844_v54 = vld [vmem:[%s3281_s3 + $0x60] sm:$0xff] (!%p2420_p12)   ;;  %v2846_v58 = vld [vmem:[%s3281_s3 + $0x68] sm:$0xff] (!%p2420_p12)  }
 0x1d2   : > { %2448 = vmatprep.subr.bf16.mxu0 (!%p2420_p12), %v2838_v46  ;;  %v2843_v53 = vld [vmem:[%s3281_s3 + $0x18] sm:$0xff] (!%p2420_p12)   ;;  %v2845_v56 = vld [vmem:[%s3281_s3 + $0x20] sm:$0xff] (!%p2420_p12)   ;;  %v2847_v0 = vld [vmem:[%s3281_s3 + $0x28] sm:$0xff] (!%p2420_p12)  }
 0x1d3   : > { %v1889_v55 = vsub.s32 (!%p2420_p12), 1, %v1884_v52  ;;  %v1885_v57 = vsub.s32 (!%p2420_p12), 0, %v1884_v52  ;;  %v1881_v61 = vld [vmem:[%s3280_s2] sm:$0x3] (!%p2420_p12)  ;;  %v2848_v5 = vld [vmem:[%s3281_s3 + $0x70] sm:$0xff] (!%p2420_p12)   ;;  %v2850_v12 = vld [vmem:[%s3281_s3 + $0x78] sm:$0xff] (!%p2420_p12)  }
 0x1d4   : > { %v1877_v3 = vld [vmem:[#allocation2] sm:$0xff] (!%p2420_p12)  ;;  %v1879_v4 = vld [vmem:[#allocation2 + $0x10] sm:$0xff] (!%p2420_p12)  ;;  %v2851_v15 = vld [vmem:[%s3281_s3 + $0x38] sm:$0xff] (!%p2420_p12)  }
 0x1d5   : > { %2449 = vmatpush3.bf16.msra.mxu0 (!%p2420_p12), %v2839_v47  ;;  %v1878_v59 = vld [vmem:[#allocation2 + $0x8] sm:$0xff] (!%p2420_p12)  ;;  %v1880_v60 = vld [vmem:[#allocation2 + $0x18] sm:$0xff] (!%p2420_p12)  ;;  %v1890_v62 = vrot.slane (!%p2420_p12), %v1881_v61, %v1889_v55  ;;  %v1886_v63 = vrot.slane (!%p2420_p12), %v1881_v61, %v1885_v57  ;;  %v2849_v10 = vld [vmem:[%s3281_s3 + $0x30] sm:$0xff] (!%p2420_p12)  }
 0x1d6   : > { %2450 = vmatprep.subr.bf16.mxu0 (!%p2420_p12), %v2840_v48  ;;  %v2421_v19 = vld [vmem:[%s3282_s4] ss:$0 sm:$0xff] (!%p2420_p12) }
 0x1d7   : > { %v1894_v1 = vadd.f32 %v1890_v62, %v1878_v59  ;;  %v1896_v2 = vadd.f32 %v1890_v62, %v1880_v60  ;;  %v1893_v8 = vadd.f32 %v1886_v63, %v1877_v3  ;;  %v1895_v9 = vadd.f32 %v1886_v63, %v1879_v4  ;;  %v2438_v43 = vld [vmem:[%s3283_s5] ss:$0 sm:$0xff] }
 0x1d8   : > { %v2439_v45 = vld [vmem:[%s3284_s6] ss:$0 sm:$0xff] }
 0x1d9   : > { %2451 = vmatpush3.bf16.msra.mxu0 %v2841_v50  ;;  %v1898_v6 = vmax.f32 %v1894_v1, 0.0  ;;  %v1900_v7 = vmax.f32 %v1896_v2, 0.0  ;;  %v1897_v13 = vmax.f32 %v1893_v8, 0.0  ;;  %v1899_v14 = vmax.f32 %v1895_v9, 0.0 }
 0x1da   : > { %2452 = vmatprep.subr.bf16.mxu0 %v2842_v51 }
 0x1db   : > { %v1902_v11 = vpack.c.bf16 %v1900_v7, %v1898_v6  ;;  %v1901_v16 = vpack.c.bf16 %v1899_v14, %v1897_v13 }
 0x1dd   : > { %2453 = vmatpush3.bf16.msra.mxu0 %v2843_v53  ;;  %2070 = vmatprep.mubr.bf16.mxu0 %v1902_v11 }
 0x1de   : > { %2454 = vmatprep.subr.bf16.mxu0 %v2844_v54 }
 0x1e1   : > { %2455 = vmatpush3.bf16.msra.mxu0 %v2845_v56 }
 0x1e2   : > { %2456 = vmatprep.subr.bf16.mxu0 %v2846_v58 }
 0x1e5   : > { %2457 = vmatpush3.bf16.msra.mxu0 %v2847_v0 }
 0x1e6   : > { %2458 = vmatprep.subr.bf16.mxu0 %v2848_v5 }
 0x1e9   : > { %2459 = vmatpush3.bf16.msra.mxu0 %v2849_v10 }
 0x1ea   : > { %2460 = vmatprep.subr.bf16.mxu0 %v2850_v12 }
 0x1ed   : > { %2461 = vmatpush3.bf16.msra.mxu0 %v2851_v15 }
 0x1f0   : > { %2071 = vmatmul.mubr.bf16.vlgmr.msra.gmra.mrb[0].mxu0 %v1901_v16 }
 0x2c3   : > { %v2462_v17 = vpop.f32.mrb[0].mxu0 }
 0x2c4   : > { %v2463_v18 = vpop.f32.mrb[1].mxu0 }
 0x2c5   : > { %v2464_v20 = vadd.f32 %v2463_v18, %v2462_v17  ;;  %v2465_v21 = vpop.f32.mrb[2].mxu0 }
 0x2c6   : > { %v2466_v22 = vpop.f32.mrb[3].mxu0 }
 0x2c7   : > { %v2467_v23 = vadd.f32 %v2466_v22, %v2465_v21  ;;  %v2073_v24 = vadd.f32 %v2464_v20, %v2421_v19 }
 0x2c9   : > { %v2079_v25 = vmax.f32 %v2073_v24, 0.0  ;;  %v2076_v26 = vadd.f32 %v2467_v23, %v2421_v19 }
 0x2cb   : > { %2083 = vadd.xlane.f32.xlu0 %v2079_v25  ;;  %v2080_v27 = vmax.f32 %v2076_v26, 0.0 }
 0x2cf   : > { %2085 = vadd.xlane.f32.xlu0 %v2080_v27 }
 0x358   : > { %v2084_v28 = vpop.xlane.xlu0 %2083 }
 0x359   : > { %v2088_v29 = vmul.f32 0.0078125, %v2084_v28 }
 0x35b   : > { %v2090_v30 = vsub.f32 %v2079_v25, %v2088_v29 }
 0x35c   : > { %v2086_v31 = vpop.xlane.xlu0 %2085 }
 0x35d   : > { %v2089_v32 = vmul.f32 0.0078125, %v2086_v31  ;;  %v2092_v33 = vmul.f32 %v2090_v30, %v2090_v30 }
 0x35f   : > { %v2091_v34 = vsub.f32 %v2080_v27, %v2089_v32  ;;  %2094 = vadd.xlane.f32.xlu1 %v2092_v33 }
 0x361   : > { %v2093_v35 = vmul.f32 %v2091_v34, %v2091_v34 }
 0x363   : > { %2096 = vadd.xlane.f32.xlu1 %v2093_v35 }
 0x3ec   : > { %v2095_v36 = vpop.xlane.xlu1 %2094 }
 0x3ed   : > { %v2098_v37 = vmul.f32 0.0078125, %v2095_v36 }
 0x3ef   : > { %v2100_v38 = vadd.f32 1e-05, %v2098_v37 }
 0x3f0   : > { %v2097_v39 = vpop.xlane.xlu1 %2096 }
 0x3f1   : > { %2852 = vrsqrt.f32 %v2100_v38  ;;  %v2099_v40 = vmul.f32 0.0078125, %v2097_v39 }
 0x3f3   : > { %v2101_v41 = vadd.f32 1e-05, %v2099_v40 }
 0x3f5   : > { %2854 = vrsqrt.f32 %v2101_v41 }
 0x3fb   : > { %v2853_v42 = vpop.eup %2852 }
 0x3fc   : > { %v2104_v44 = vmul.f32 %v2853_v42, %v2090_v30 }
 0x3fe   : > { %v2112_v46 = vmul.f32 %v2438_v43, %v2104_v44 }
 0x3ff   : > { %v2855_v47 = vpop.eup %2854 }
 0x400   : > { %v2120_v48 = vadd.f32 %v2439_v45, %v2112_v46  ;;  %v2105_v49 = vmul.f32 %v2855_v47, %v2091_v34 }
 0x402   : > { %2122 = vst [vmem:[%s3285_s7] sm:$0xff] %v2120_v48  ;;  %v2113_v50 = vmul.f32 %v2438_v43, %v2105_v49 }
 0x404   : > { %v2121_v51 = vadd.f32 %v2439_v45, %v2113_v50 }
 0x406   : > { %2123 = vst [vmem:[%s3285_s7 + $0x8] sm:$0xff] %v2121_v51 }
 0x407 PF: > { %s17_s28 = sadd.s32 1, %s2894_s28   ;;  %s3286_s24 = smov %s2882_s25 }
 0x408   : > { %p14_p13 = scmp.ge.s32.totalorder %s17_s28, 8   ;;  %s3287_s25 = smov %s2971_s9 }
 0x409   : > { %s3288_s26 = smov %s2890_s27  ;;  %s3289_s27 = smov %s3291_s29 }
 0x40a   :  { %16 = sbr.rel (!%p14_p13) target bundleno = 3 (0x3), region = 121 }

</bundles_post_ra>
